<compile_context>
chip_gen: v5e
topology: v5e:2x2
jax: 0.10.0
libtpu: 0.0.40
codegen_flags: <defaults>
</compile_context>

<pallas_src>
import jax
import jax.numpy as jnp
from jax.experimental import pallas as pl
from jax.experimental.pallas import tpu as pltpu

C_IN = 3
HW = 64
PER_CHANNEL = HW * HW            # 4096
IN_FEATURES = C_IN * PER_CHANNEL  # 12288
H1 = 128
H2 = 64
OUT = 50
H2_PAD = 128                     # pad lane dims < 128 -> unmasked vst
OUT_PAD = 128


def _round_up(n, m):
    return ((n + m - 1) // m) * m


def _mlp_kernel(x_ref, w1_ref, b1_ref, w2_ref, b2_ref, w3_ref, b3_ref, out_ref):
    # fc1 + ReLU: (TB, K) bf16 @ (K, 128) bf16 -> (TB, 128) f32
    h1 = jnp.dot(x_ref[...], w1_ref[...], preferred_element_type=jnp.float32)
    h1 = jnp.maximum(h1 + b1_ref[...], 0.0)
    # fc2 + ReLU: (TB, 128) @ (128, 128) -> f32   (cols >= H2 are zero-padded)
    h2 = jnp.dot(h1.astype(jnp.bfloat16), w2_ref[...],
                 preferred_element_type=jnp.float32)
    h2 = jnp.maximum(h2 + b2_ref[...], 0.0)
    # fc3: (TB, 128) @ (128, 128) -> f32          (cols >= OUT are zero-padded)
    h3 = jnp.dot(h2.astype(jnp.bfloat16), w3_ref[...],
                 preferred_element_type=jnp.float32)
    out_ref[...] = h3 + b3_ref[...]


def net_forward(x, params):
    """x: (B, C, 64, 64) float32, C in {1, 3}. Returns (B, 50) float32."""
    w1, b1, w2, b2, w3, b3 = params
    B, C = x.shape[0], x.shape[1]

    if C == 1:
        # PyTorch does x.repeat(1, 3, 1, 1); fold the repeat into fc1 instead:
        # repeated channels @ w1  ==  single channel @ (sum of channel blocks).
        w1_eff = (w1[0:PER_CHANNEL]
                  + w1[PER_CHANNEL:2 * PER_CHANNEL]
                  + w1[2 * PER_CHANNEL:3 * PER_CHANNEL])
        x_flat = x.reshape(B, PER_CHANNEL)
    else:
        w1_eff = w1
        x_flat = x.reshape(B, IN_FEATURES)   # == torch.flatten(x, 1) (NCHW)

    K = x_flat.shape[1]

    # bf16 inputs to the MXU; biases stay f32 (accumulation/ReLU in f32).
    x_bf = x_flat.astype(jnp.bfloat16)
    w1_bf = w1_eff.astype(jnp.bfloat16)
    b1_r = b1.reshape(1, H1).astype(jnp.float32)
    w2_p = jnp.zeros((H1, H2_PAD), jnp.bfloat16).at[:, :H2].set(
        w2.astype(jnp.bfloat16))
    b2_p = jnp.zeros((1, H2_PAD), jnp.float32).at[:, :H2].set(b2.reshape(1, H2))
    w3_p = jnp.zeros((H2_PAD, OUT_PAD), jnp.bfloat16).at[:H2, :OUT].set(
        w3.astype(jnp.bfloat16))
    b3_p = jnp.zeros((1, OUT_PAD), jnp.float32).at[:, :OUT].set(
        b3.reshape(1, OUT))

    # Batch tiling: TB=128 for large batches (fits v7x 64 MiB VMEM with double
    # buffering), round small batches up to a multiple of 8 sublanes.
    TB = 128 if B >= 128 else _round_up(max(B, 1), 8)
    B_pad = _round_up(B, TB)
    if B_pad != B:
        x_bf = jnp.pad(x_bf, ((0, B_pad - B), (0, 0)))
    grid = (B_pad // TB,)

    # Tile-derived VMEM budget (double-buffered x/out tiles + resident weights),
    # with headroom; capped at v7x's 64 MiB physical VMEM.
    vmem_bytes = (2 * TB * K * 2            # x tile, bf16, double-buffered
                  + K * H1 * 2              # w1 resident (bf16)
                  + H1 * H2_PAD * 2 + H2_PAD * OUT_PAD * 2
                  + 2 * TB * OUT_PAD * 4    # out tile, f32, double-buffered
                  + (H1 + H2_PAD + OUT_PAD) * 4)
    vmem_limit = int(min(2 * vmem_bytes + (8 << 20), 64 << 20))

    cost = pl.CostEstimate(
        flops=2 * B_pad * (K * H1 + H1 * H2_PAD + H2_PAD * OUT_PAD),
        transcendentals=0,
        bytes_accessed=(B_pad * K * 2 + K * H1 * 2
                        + H1 * H2_PAD * 2 + H2_PAD * OUT_PAD * 2
                        + (H1 + H2_PAD + OUT_PAD) * 4
                        + B_pad * OUT_PAD * 4),
    )

    def resident(shape):  # weight/bias stays in VMEM across all grid steps
        return pl.BlockSpec(shape, lambda i: (0, 0))

    out_p = pl.pallas_call(
        _mlp_kernel,
        out_shape=jax.ShapeDtypeStruct((B_pad, OUT_PAD), jnp.float32),
        grid=grid,
        in_specs=[
            pl.BlockSpec((TB, K), lambda i: (i, 0)),   # x: pipelined per tile
            resident((K, H1)),
            resident((1, H1)),
            resident((H1, H2_PAD)),
            resident((1, H2_PAD)),
            resident((H2_PAD, OUT_PAD)),
            resident((1, OUT_PAD)),
        ],
        out_specs=pl.BlockSpec((TB, OUT_PAD), lambda i: (i, 0)),
        compiler_params=pltpu.CompilerParams(
            dimension_semantics=("parallel",),
            vmem_limit_bytes=vmem_limit),
        cost_estimate=cost,
    )(x_bf, w1_bf, b1_r, w2_p, b2_p, w3_p, b3_p)

    return out_p[:B, :OUT]


def init_params(key):
    """PyTorch-default Linear init; weights stored transposed (in, out)."""
    k1, k2, k3, k4, k5, k6 = jax.random.split(key, 6)

    def uniform(k, shape, fan_in):
        bound = 1.0 / jnp.sqrt(fan_in)
        return jax.random.uniform(k, shape, jnp.float32, -bound, bound)

    w1 = uniform(k1, (IN_FEATURES, H1), IN_FEATURES)
    b1 = uniform(k2, (1, H1), IN_FEATURES)
    w2 = uniform(k3, (H1, H2), H1)
    b2 = uniform(k4, (1, H2), H1)
    w3 = uniform(k5, (H2, OUT), H2)
    b3 = uniform(k6, (1, OUT), H2)
    return (w1, b1, w2, b2, w3, b3)


def _reference(x, params):
    """Pure-JAX reference with the same bf16-in / f32-accumulate numerics."""
    w1, b1, w2, b2, w3, b3 = params
    if x.shape[1] == 1:
        x = jnp.tile(x, (1, 3, 1, 1))
    xf = x.reshape(x.shape[0], -1)

    def mm(a, w):
        return jnp.dot(a.astype(jnp.bfloat16), w.astype(jnp.bfloat16),
                       preferred_element_type=jnp.float32)

    h = jnp.maximum(mm(xf, w1) + b1, 0.0)
    h = jnp.maximum(mm(h, w2) + b2, 0.0)
    return mm(h, w3) + b3


if __name__ == "__main__":
    key = jax.random.PRNGKey(0)
    kp, kx, kg = jax.random.split(key, 3)
    params = init_params(kp)

    # RGB path: B=2, C=3, 64x64 (what the module's fc1 implies).
    x = jax.random.normal(kx, (2, 3, 64, 64), dtype=jnp.float32)
    out = jax.block_until_ready(net_forward(x, params))
    assert out.shape == (2, 50), out.shape
    ref = _reference(x, params)
    assert jnp.allclose(out, ref, atol=5e-2, rtol=5e-2), (
        float(jnp.max(jnp.abs(out - ref))))

    # Grayscale path: channel repeat folded into w1 inside the wrapper.
    xg = jax.random.normal(kg, (2, 1, 64, 64), dtype=jnp.float32)
    out_g = jax.block_until_ready(net_forward(xg, params))
    assert out_g.shape == (2, 50), out_g.shape
    ref_g = _reference(xg, params)
    assert jnp.allclose(out_g, ref_g, atol=5e-2, rtol=5e-2), (
        float(jnp.max(jnp.abs(out_g - ref_g))))

    print("KERNEL_OK")
</pallas_src>

<mosaic_0001>
module attributes {stable_mosaic.version = 11 : i64} {
  func.func @_mlp_kernel(%arg0: i32, %arg1: memref<8x12288xbf16, #tpu.memory_space<vmem>>, %arg2: memref<12288x128xbf16, #tpu.memory_space<vmem>>, %arg3: memref<1x128xf32, #tpu.memory_space<vmem>>, %arg4: memref<128x128xbf16, #tpu.memory_space<vmem>>, %arg5: memref<1x128xf32, #tpu.memory_space<vmem>>, %arg6: memref<128x128xbf16, #tpu.memory_space<vmem>>, %arg7: memref<1x128xf32, #tpu.memory_space<vmem>>, %arg8: memref<8x128xf32, #tpu.memory_space<vmem>>) attributes {dimension_semantics = [#tpu.dimension_semantics<parallel>], iteration_bounds = array<i64: 1>, scalar_prefetch = 0 : i64, scratch_operands = 0 : i64, tpu.core_type = #tpu.core_type<tc>, window_params = [{transform_indices = @transform_0, window_bounds = array<i64: 8, 12288>}, {pipeline_mode = #tpu.pipeline_mode<synchronous>, transform_indices = @transform_1, window_bounds = array<i64: 12288, 128>}, {pipeline_mode = #tpu.pipeline_mode<synchronous>, transform_indices = @transform_2, window_bounds = array<i64: 1, 128>}, {pipeline_mode = #tpu.pipeline_mode<synchronous>, transform_indices = @transform_3, window_bounds = array<i64: 128, 128>}, {pipeline_mode = #tpu.pipeline_mode<synchronous>, transform_indices = @transform_4, window_bounds = array<i64: 1, 128>}, {pipeline_mode = #tpu.pipeline_mode<synchronous>, transform_indices = @transform_5, window_bounds = array<i64: 128, 128>}, {pipeline_mode = #tpu.pipeline_mode<synchronous>, transform_indices = @transform_6, window_bounds = array<i64: 1, 128>}, {transform_indices = @transform_7, window_bounds = array<i64: 8, 128>}]} {
    %c0 = arith.constant 0 : index
    %c0_0 = arith.constant 0 : index
    %0 = vector.load %arg1[%c0, %c0_0] : memref<8x12288xbf16, #tpu.memory_space<vmem>>, vector<8x12288xbf16>
    %c0_1 = arith.constant 0 : index
    %c0_2 = arith.constant 0 : index
    %1 = vector.load %arg2[%c0_1, %c0_2] : memref<12288x128xbf16, #tpu.memory_space<vmem>>, vector<12288x128xbf16>
    %cst = arith.constant dense<0.000000e+00> : vector<8x128xf32>
    %2 = tpu.matmul %0, %1, %cst {dimension_numbers = #tpu.dot_dimension_numbers<[1], [0], [0], [1], [0, 0, 1, 1], [], []>} : vector<8x12288xbf16>, vector<12288x128xbf16>, vector<8x128xf32> -> vector<8x128xf32>
    %c0_3 = arith.constant 0 : index
    %c0_4 = arith.constant 0 : index
    %3 = vector.load %arg3[%c0_3, %c0_4] : memref<1x128xf32, #tpu.memory_space<vmem>>, vector<1x128xf32>
    %4 = vector.broadcast %3 : vector<1x128xf32> to vector<8x128xf32>
    %5 = arith.addf %2, %4 : vector<8x128xf32>
    %cst_5 = arith.constant 0.000000e+00 : f32
    %6 = vector.broadcast %cst_5 : f32 to vector<8x128xf32>
    %7 = arith.maximumf %5, %6 : vector<8x128xf32>
    %8 = arith.truncf %7 : vector<8x128xf32> to vector<8x128xbf16>
    %c0_6 = arith.constant 0 : index
    %c0_7 = arith.constant 0 : index
    %9 = vector.load %arg4[%c0_6, %c0_7] : memref<128x128xbf16, #tpu.memory_space<vmem>>, vector<128x128xbf16>
    %cst_8 = arith.constant dense<0.000000e+00> : vector<8x128xf32>
    %10 = tpu.matmul %8, %9, %cst_8 {dimension_numbers = #tpu.dot_dimension_numbers<[1], [0], [0], [1], [0, 0, 1, 1], [], []>} : vector<8x128xbf16>, vector<128x128xbf16>, vector<8x128xf32> -> vector<8x128xf32>
    %c0_9 = arith.constant 0 : index
    %c0_10 = arith.constant 0 : index
    %11 = vector.load %arg5[%c0_9, %c0_10] : memref<1x128xf32, #tpu.memory_space<vmem>>, vector<1x128xf32>
    %12 = vector.broadcast %11 : vector<1x128xf32> to vector<8x128xf32>
    %13 = arith.addf %10, %12 : vector<8x128xf32>
    %cst_11 = arith.constant 0.000000e+00 : f32
    %14 = vector.broadcast %cst_11 : f32 to vector<8x128xf32>
    %15 = arith.maximumf %13, %14 : vector<8x128xf32>
    %16 = arith.truncf %15 : vector<8x128xf32> to vector<8x128xbf16>
    %c0_12 = arith.constant 0 : index
    %c0_13 = arith.constant 0 : index
    %17 = vector.load %arg6[%c0_12, %c0_13] : memref<128x128xbf16, #tpu.memory_space<vmem>>, vector<128x128xbf16>
    %cst_14 = arith.constant dense<0.000000e+00> : vector<8x128xf32>
    %18 = tpu.matmul %16, %17, %cst_14 {dimension_numbers = #tpu.dot_dimension_numbers<[1], [0], [0], [1], [0, 0, 1, 1], [], []>} : vector<8x128xbf16>, vector<128x128xbf16>, vector<8x128xf32> -> vector<8x128xf32>
    %c0_15 = arith.constant 0 : index
    %c0_16 = arith.constant 0 : index
    %19 = vector.load %arg7[%c0_15, %c0_16] : memref<1x128xf32, #tpu.memory_space<vmem>>, vector<1x128xf32>
    %20 = vector.broadcast %19 : vector<1x128xf32> to vector<8x128xf32>
    %21 = arith.addf %18, %20 : vector<8x128xf32>
    %c0_17 = arith.constant 0 : index
    %c0_18 = arith.constant 0 : index
    %22 = vector.load %arg8[%c0_17, %c0_18] : memref<8x128xf32, #tpu.memory_space<vmem>>, vector<8x128xf32>
    tpu.vector_store %arg8[%c0_17, %c0_18], %21 {strides = array<i32>} : memref<8x128xf32, #tpu.memory_space<vmem>>, vector<8x128xf32>,
    return
  }
  func.func @transform_0(%arg0: i32) -> (i32, i32) {
    %c0_i32 = arith.constant 0 : i32
    %c0_i32_0 = arith.constant 0 : i32
    return %arg0, %c0_i32 : i32, i32
  }
  func.func @transform_1(%arg0: i32) -> (i32, i32) {
    %c0_i32 = arith.constant 0 : i32
    %c0_i32_0 = arith.constant 0 : i32
    %c0_i32_1 = arith.constant 0 : i32
    return %c0_i32, %c0_i32_0 : i32, i32
  }
  func.func @transform_2(%arg0: i32) -> (i32, i32) {
    %c0_i32 = arith.constant 0 : i32
    %c0_i32_0 = arith.constant 0 : i32
    %c0_i32_1 = arith.constant 0 : i32
    return %c0_i32, %c0_i32_0 : i32, i32
  }
  func.func @transform_3(%arg0: i32) -> (i32, i32) {
    %c0_i32 = arith.constant 0 : i32
    %c0_i32_0 = arith.constant 0 : i32
    %c0_i32_1 = arith.constant 0 : i32
    return %c0_i32, %c0_i32_0 : i32, i32
  }
  func.func @transform_4(%arg0: i32) -> (i32, i32) {
    %c0_i32 = arith.constant 0 : i32
    %c0_i32_0 = arith.constant 0 : i32
    %c0_i32_1 = arith.constant 0 : i32
    return %c0_i32, %c0_i32_0 : i32, i32
  }
  func.func @transform_5(%arg0: i32) -> (i32, i32) {
    %c0_i32 = arith.constant 0 : i32
    %c0_i32_0 = arith.constant 0 : i32
    %c0_i32_1 = arith.constant 0 : i32
    return %c0_i32, %c0_i32_0 : i32, i32
  }
  func.func @transform_6(%arg0: i32) -> (i32, i32) {
    %c0_i32 = arith.constant 0 : i32
    %c0_i32_0 = arith.constant 0 : i32
    %c0_i32_1 = arith.constant 0 : i32
    return %c0_i32, %c0_i32_0 : i32, i32
  }
  func.func @transform_7(%arg0: i32) -> (i32, i32) {
    %c0_i32 = arith.constant 0 : i32
    %c0_i32_0 = arith.constant 0 : i32
    return %arg0, %c0_i32 : i32, i32
  }
}

</mosaic_0001>

<bundles_post_ra>
// kernel: tpu_custom_call.1
= control target key start
LH: loop header
LB: loop body
LE: loop exit
PB: predicated region body
PF: predicated region fallthrough
CT: control target
= control target key end

     0   :  { %12 = vsyncpa [#allocation3], 0  ;;  %s12358_s0 = inlined_call_operand.hbm [shape: bf16[8,12288], index: 0, kind: input, shape index: {}]   ;;  %s12359_s1 = inlined_call_operand.hbm [shape: bf16[12288,128], index: 1, kind: input, shape index: {}]   ;;  %s12360_s2 = inlined_call_operand.hbm [shape: f32[1,128], index: 2, kind: input, shape index: {}]   ;;  %s12361_s3 = inlined_call_operand.hbm [shape: bf16[128,128], index: 3, kind: input, shape index: {}]   ;;  %s12362_s4 = inlined_call_operand.hbm [shape: f32[1,128], index: 4, kind: input, shape index: {}]   ;;  %s12363_s5 = inlined_call_operand.hbm [shape: bf16[128,128], index: 5, kind: input, shape index: {}]   ;;  %s12364_s6 = inlined_call_operand.hbm [shape: f32[1,128], index: 6, kind: input, shape index: {}]   ;;  %s12365_s7 = inlined_call_operand.hbm [shape: f32[8,128], index: 7, kind: output, shape index: {}]  }
   0x1   :  { %13 = vsyncpa [#allocation6], 0 }
   0x2   :  { %14 = vsyncpa [#allocation9], 0 }
   0x3   :  { %15 = vsyncpa [#allocation12], 0  ;;  %s32_s26 = sshll.u32 %s12359_s1, 4  ;;  %s33_s26 = int_to_ptr.hbm [resolvable:$true] %s32_s26 }
   0x4   :  { %16 = vsyncpa [#allocation4], 0  ;;  %s12230_s27 = smov [#allocation5]   ;;  %s56_s8 = sshll.u32 %s12361_s3, 4  ;;  %s57_s8 = int_to_ptr.hbm [resolvable:$true] %s56_s8 }
   0x5   :  { %s34_s28 = sshll.u32 %s12230_s27, 4  ;;  %s12231_s9 = smov 64   ;;  %s35_s28 = int_to_ptr.vmem [resolvable:$true] %s34_s28 }
   0x6   :  { %s12232_s10 = smov 4   ;;  %s12233_s11 = smov [#allocation8]  }
   0x7   :  { %40 = dma.hbm_to_vmem [thread:$0]  %s33_s26, 98304, %s35_s28, [#allocation6], %s12231_s9, %s12231_s9, %s12232_s10  }
   0x8   :  { %s58_s12 = sshll.u32 %s12233_s11, 4  ;;  %s80_s15 = sshll.u32 %s12363_s5, 4  ;;  %s59_s12 = int_to_ptr.vmem [resolvable:$true] %s58_s12  ;;  %s81_s15 = int_to_ptr.hbm [resolvable:$true] %s80_s15 }
   0x9   :  { %64 = dma.hbm_to_vmem [thread:$0]  %s57_s8, 1024, %s59_s12, [#allocation9], %s12231_s9, %s12231_s9, %s12232_s10  }
   0xa   :  { %s22_s17 = sshll.u32 %s12358_s0, 4  ;;  %s12234_s18 = smov [#allocation11]   ;;  %s23_s17 = int_to_ptr.hbm [resolvable:$true] %s22_s17 }
   0xb   :  { %s82_s19 = sshll.u32 %s12234_s18, 4  ;;  %s12235_s3 = smov [#allocation2]   ;;  %s83_s19 = int_to_ptr.vmem [resolvable:$true] %s82_s19 }
   0xc   :  { %88 = dma.hbm_to_vmem [thread:$0]  %s81_s15, 1024, %s83_s19, [#allocation12], %s12231_s9, %s12231_s9, %s12232_s10  }
   0xd   :  { %s24_s20 = sshll.u32 %s12235_s3, 4  ;;  %s46_s23 = sshll.u32 %s12360_s2, 4  ;;  %s25_s20 = int_to_ptr.vmem [resolvable:$true] %s24_s20  ;;  %s47_s23 = int_to_ptr.hbm [resolvable:$true] %s46_s23 }
   0xe   :  { %27 = dma.hbm_to_vmem [thread:$0]  %s23_s17, 6144, %s25_s20, [#allocation3]  }
   0xf   :  { %s70_s25 = sshll.u32 %s12362_s4, 4  ;;  %s12236_s26 = smov [#allocation7]   ;;  %s71_s25 = int_to_ptr.hbm [resolvable:$true] %s70_s25 }
  0x10   :  { %s48_s0 = sshll.u32 %s12236_s26, 4  ;;  %s12237_s27 = smov [#allocation10]   ;;  %s49_s0 = int_to_ptr.vmem [resolvable:$true] %s48_s0 }
  0x11   :  { %51 = dma.hbm_to_vmem [thread:$0]  %s47_s23, 16, %s49_s0, [#allocation6]  }
  0x12   :  { %s72_s28 = sshll.u32 %s12237_s27, 4  ;;  %s94_s8 = sshll.u32 %s12364_s6, 4  ;;  %s73_s28 = int_to_ptr.vmem [resolvable:$true] %s72_s28  ;;  %s95_s8 = int_to_ptr.hbm [resolvable:$true] %s94_s8 }
  0x13   :  { %75 = dma.hbm_to_vmem [thread:$0]  %s71_s25, 16, %s73_s28, [#allocation9]  }
  0x14   :  { %s12238_s2 = smov [#allocation13]  }
  0x15   :  { %s96_s9 = sshll.u32 %s12238_s2, 4  ;;  %s97_s9 = int_to_ptr.vmem [resolvable:$true] %s96_s9 }
  0x16   :  { %99 = dma.hbm_to_vmem [thread:$0]  %s95_s8, 16, %s97_s9, [#allocation12]  }
  0x17   :  { %12220 = dma.done.wait [#allocation3], 6144  }
  0x18   :  { %12221 = vsyncadd [#allocation3], 4294961152 }
  0x19   :  { %12222 = dma.done.wait [#allocation6], 98320  }
  0x1a   :  { %12223 = vsyncadd [#allocation6], 4294868976 }
  0x1b   :  { %12224 = dma.done.wait [#allocation9], 1040  }
  0x1c   :  { %12225 = vsyncadd [#allocation9], 4294966256 }
  0x1d   :  { %12226 = dma.done.wait [#allocation12], 1040  }
  0x1e   :  { %12227 = vsyncadd [#allocation12], 4294966256  ;;  %v11238_v0 = vld [vmem:[#allocation5 + $0x38] sm:$0xff]  ;;  %v11237_v4 = vld [vmem:[#allocation5 + $0x30] sm:$0xff]  ;;  %s12239_s4 = smov [#allocation14]   ;;  %s8082_s12 = sshll.u32 %s12365_s7, 4  ;;  %s8083_s12 = int_to_ptr.hbm [resolvable:$true] %s8082_s12 }
  0x1f   :  { %v11246_v1 = vld [vmem:[#allocation5 + $0x78] sm:$0xff]  ;;  %6660 = vmatpush.bf16.msra.mxu0 %v11238_v0  ;;  %v11245_v5 = vld [vmem:[#allocation5 + $0x70] sm:$0xff]  ;;  %v11236_v8 = vld [vmem:[#allocation5 + $0x28] sm:$0xff]  ;;  %s8080_s6 = sshll.u32 %s12239_s4, 4  ;;  %s8081_s6 = int_to_ptr.vmem [resolvable:$true] %s8080_s6 }
  0x20   :  { %v11254_v2 = vld [vmem:[#allocation5 + $0xb8] sm:$0xff]  ;;  %6673 = vmatpush.bf16.msra.mxu1 %v11246_v1  ;;  %v11253_v6 = vld [vmem:[#allocation5 + $0xb0] sm:$0xff]  ;;  %v11244_v9 = vld [vmem:[#allocation5 + $0x68] sm:$0xff] }
  0x21   :  { %v11262_v3 = vld [vmem:[#allocation5 + $0xf8] sm:$0xff]  ;;  %6686 = vmatpush.bf16.msra.mxu2 %v11254_v2  ;;  %v11261_v7 = vld [vmem:[#allocation5 + $0xf0] sm:$0xff]  ;;  %v11252_v10 = vld [vmem:[#allocation5 + $0xa8] sm:$0xff] }
  0x22   :  { %6699 = vmatpush.bf16.msra.mxu3 %v11262_v3  ;;  %v11260_v11 = vld [vmem:[#allocation5 + $0xe8] sm:$0xff]  ;;  %v11235_v12 = vld [vmem:[#allocation5 + $0x20] sm:$0xff]  ;;  %v11234_v16 = vld [vmem:[#allocation5 + $0x18] sm:$0xff] }
  0x23   :  { %6661 = vmatpush.bf16.msra.mxu0 %v11237_v4  ;;  %v11243_v13 = vld [vmem:[#allocation5 + $0x60] sm:$0xff]  ;;  %v11242_v17 = vld [vmem:[#allocation5 + $0x58] sm:$0xff]  ;;  %v11233_v20 = vld [vmem:[#allocation5 + $0x10] sm:$0xff] }
  0x24   :  { %6674 = vmatpush.bf16.msra.mxu1 %v11245_v5  ;;  %v11251_v14 = vld [vmem:[#allocation5 + $0xa0] sm:$0xff]  ;;  %v11250_v18 = vld [vmem:[#allocation5 + $0x98] sm:$0xff]  ;;  %v11241_v21 = vld [vmem:[#allocation5 + $0x50] sm:$0xff] }
  0x25   :  { %6687 = vmatpush.bf16.msra.mxu2 %v11253_v6  ;;  %v11259_v15 = vld [vmem:[#allocation5 + $0xe0] sm:$0xff]  ;;  %v11258_v19 = vld [vmem:[#allocation5 + $0xd8] sm:$0xff]  ;;  %v11249_v22 = vld [vmem:[#allocation5 + $0x90] sm:$0xff] }
  0x26   :  { %6700 = vmatpush.bf16.msra.mxu3 %v11261_v7  ;;  %v11257_v23 = vld [vmem:[#allocation5 + $0xd0] sm:$0xff]  ;;  %v11232_v24 = vld [vmem:[#allocation5 + $0x8] sm:$0xff]  ;;  %v128_v29 = vld [vmem:[#allocation2] sm:$0xff] }
  0x27   :  { %6662 = vmatpush.bf16.msra.mxu0 %v11236_v8  ;;  %v11240_v25 = vld [vmem:[#allocation5 + $0x48] sm:$0xff]  ;;  %v11231_v30 = vld [vmem:[#allocation5] sm:$0xff]  ;;  %v1764_v33 = vunpack.c.l.b16 %v128_v29  ;;  %v1765_v37 = vunpack.c.h.b16 %v128_v29  ;;  %v11270_v38 = vld [vmem:[#allocation5 + $0x138] sm:$0xff] }
  0x28   :  { %6675 = vmatpush.bf16.msra.mxu1 %v11244_v9  ;;  %v11248_v26 = vld [vmem:[#allocation5 + $0x88] sm:$0xff]  ;;  %v11239_v31 = vld [vmem:[#allocation5 + $0x40] sm:$0xff]  ;;  %v11278_v39 = vld [vmem:[#allocation5 + $0x178] sm:$0xff] }
  0x29   :  { %6688 = vmatpush.bf16.msra.mxu2 %v11252_v10  ;;  %v11256_v27 = vld [vmem:[#allocation5 + $0xc8] sm:$0xff]  ;;  %v11247_v34 = vld [vmem:[#allocation5 + $0x80] sm:$0xff]  ;;  %v11286_v40 = vld [vmem:[#allocation5 + $0x1b8] sm:$0xff]  ;;  %v1860_v43 = vpack.c.b16 %v1764_v33, %v1764_v33  ;;  %v1861_v45 = vpack.c.b16 %v1765_v37, %v1765_v37 }
  0x2a   :  { %6701 = vmatpush.bf16.msra.mxu3 %v11260_v11  ;;  %v129_v28 = vld [vmem:[#allocation2 + $0x8] sm:$0xff]  ;;  %v11255_v35 = vld [vmem:[#allocation5 + $0xc0] sm:$0xff]  ;;  %v11294_v41 = vld [vmem:[#allocation5 + $0x1f8] sm:$0xff] }
  0x2b   :  { %6663 = vmatpush.bf16.msra.mxu0 %v11235_v12  ;;  %v1766_v32 = vunpack.c.l.b16 %v129_v28  ;;  %v1767_v36 = vunpack.c.h.b16 %v129_v28  ;;  %v11269_v46 = vld [vmem:[#allocation5 + $0x130] sm:$0xff]  ;;  %v11268_v50 = vld [vmem:[#allocation5 + $0x128] sm:$0xff]  ;;  %v11267_v54 = vld [vmem:[#allocation5 + $0x120] sm:$0xff] }
  0x2c   :  { %6676 = vmatpush.bf16.msra.mxu1 %v11243_v13  ;;  %v11277_v47 = vld [vmem:[#allocation5 + $0x170] sm:$0xff]  ;;  %v11276_v51 = vld [vmem:[#allocation5 + $0x168] sm:$0xff]  ;;  %v11275_v55 = vld [vmem:[#allocation5 + $0x160] sm:$0xff] }
  0x2d   :  { %6689 = vmatpush.bf16.msra.mxu2 %v11251_v14  ;;  %v1862_v42 = vpack.c.b16 %v1766_v32, %v1766_v32  ;;  %v1863_v44 = vpack.c.b16 %v1767_v36, %v1767_v36  ;;  %v11285_v48 = vld [vmem:[#allocation5 + $0x1b0] sm:$0xff]  ;;  %v11284_v52 = vld [vmem:[#allocation5 + $0x1a8] sm:$0xff]  ;;  %v11283_v56 = vld [vmem:[#allocation5 + $0x1a0] sm:$0xff] }
  0x2e   :  { %6702 = vmatpush.bf16.msra.mxu3 %v11259_v15  ;;  %v11293_v49 = vld [vmem:[#allocation5 + $0x1f0] sm:$0xff]  ;;  %v11292_v53 = vld [vmem:[#allocation5 + $0x1e8] sm:$0xff]  ;;  %v11291_v57 = vld [vmem:[#allocation5 + $0x1e0] sm:$0xff] }
  0x2f   :  { %6664 = vmatpush.bf16.msra.mxu0 %v11234_v16  ;;  %v11266_v58 = vld [vmem:[#allocation5 + $0x118] sm:$0xff]  ;;  %v11265_v62 = vld [vmem:[#allocation5 + $0x110] sm:$0xff]  ;;  %v11264_v2 = vld [vmem:[#allocation5 + $0x108] sm:$0xff] }
  0x30   :  { %6677 = vmatpush.bf16.msra.mxu1 %v11242_v17  ;;  %v11274_v59 = vld [vmem:[#allocation5 + $0x158] sm:$0xff]  ;;  %v11273_v63 = vld [vmem:[#allocation5 + $0x150] sm:$0xff]  ;;  %v11272_v3 = vld [vmem:[#allocation5 + $0x148] sm:$0xff] }
  0x31   :  { %6690 = vmatpush.bf16.msra.mxu2 %v11250_v18  ;;  %v11282_v60 = vld [vmem:[#allocation5 + $0x198] sm:$0xff]  ;;  %v11281_v0 = vld [vmem:[#allocation5 + $0x190] sm:$0xff]  ;;  %v11280_v4 = vld [vmem:[#allocation5 + $0x188] sm:$0xff] }
  0x32   :  { %6703 = vmatpush.bf16.msra.mxu3 %v11258_v19  ;;  %v11290_v61 = vld [vmem:[#allocation5 + $0x1d8] sm:$0xff]  ;;  %v11289_v1 = vld [vmem:[#allocation5 + $0x1d0] sm:$0xff]  ;;  %v11288_v5 = vld [vmem:[#allocation5 + $0x1c8] sm:$0xff] }
  0x33   :  { %6665 = vmatpush.bf16.msra.mxu0 %v11233_v20  ;;  %v131_v6 = vld [vmem:[#allocation2 + $0x18] sm:$0xff]  ;;  %v130_v7 = vld [vmem:[#allocation2 + $0x10] sm:$0xff]  ;;  %v11263_v8 = vld [vmem:[#allocation5 + $0x100] sm:$0xff] }
  0x34   :  { %6678 = vmatpush.bf16.msra.mxu1 %v11241_v21  ;;  %v11271_v9 = vld [vmem:[#allocation5 + $0x140] sm:$0xff]  ;;  %v1770_v10 = vunpack.c.l.b16 %v131_v6  ;;  %v1768_v11 = vunpack.c.l.b16 %v130_v7  ;;  %v1771_v14 = vunpack.c.h.b16 %v131_v6  ;;  %v1769_v15 = vunpack.c.h.b16 %v130_v7  ;;  %v11302_v16 = vld [vmem:[#allocation5 + $0x238] sm:$0xff]  ;;  %v11300_v28 = vld [vmem:[#allocation5 + $0x228] sm:$0xff] }
  0x35   :  { %6691 = vmatpush.bf16.msra.mxu2 %v11249_v22  ;;  %v11279_v12 = vld [vmem:[#allocation5 + $0x180] sm:$0xff]  ;;  %v11310_v17 = vld [vmem:[#allocation5 + $0x278] sm:$0xff]  ;;  %v11308_v29 = vld [vmem:[#allocation5 + $0x268] sm:$0xff] }
  0x36   :  { %6704 = vmatpush.bf16.msra.mxu3 %v11257_v23  ;;  %v11287_v13 = vld [vmem:[#allocation5 + $0x1c0] sm:$0xff]  ;;  %v11318_v18 = vld [vmem:[#allocation5 + $0x2b8] sm:$0xff]  ;;  %v1866_v20 = vpack.c.b16 %v1770_v10, %v1770_v10  ;;  %v1864_v21 = vpack.c.b16 %v1768_v11, %v1768_v11  ;;  %v1867_v22 = vpack.c.b16 %v1771_v14, %v1771_v14  ;;  %v1865_v23 = vpack.c.b16 %v1769_v15, %v1769_v15  ;;  %v11332_v6 = vld [vmem:[#allocation5 + $0x328] sm:$0xff] }
  0x37   :  { %6666 = vmatpush.bf16.msra.mxu0 %v11232_v24  ;;  %v11326_v19 = vld [vmem:[#allocation5 + $0x2f8] sm:$0xff]  ;;  %v11301_v24 = vld [vmem:[#allocation5 + $0x230] sm:$0xff]  ;;  %v11299_v32 = vld [vmem:[#allocation5 + $0x220] sm:$0xff] }
  0x38   :  { %6679 = vmatpush.bf16.msra.mxu1 %v11240_v25  ;;  %v11309_v25 = vld [vmem:[#allocation5 + $0x270] sm:$0xff]  ;;  %v11307_v33 = vld [vmem:[#allocation5 + $0x260] sm:$0xff]  ;;  %v11298_v36 = vld [vmem:[#allocation5 + $0x218] sm:$0xff] }
  0x39   :  { %6692 = vmatpush.bf16.msra.mxu2 %v11248_v26  ;;  %v11317_v26 = vld [vmem:[#allocation5 + $0x2b0] sm:$0xff]  ;;  %v11306_v37 = vld [vmem:[#allocation5 + $0x258] sm:$0xff]  ;;  %v11340_v7 = vld [vmem:[#allocation5 + $0x368] sm:$0xff] }
  0x3a   :  { %6705 = vmatpush.bf16.msra.mxu3 %v11256_v27  ;;  %v11325_v27 = vld [vmem:[#allocation5 + $0x2f0] sm:$0xff]  ;;  %v11331_v10 = vld [vmem:[#allocation5 + $0x320] sm:$0xff]  ;;  %v11330_v14 = vld [vmem:[#allocation5 + $0x318] sm:$0xff] }
  0x3b   :  { %6667 = vmatpush.bf16.msra.mxu0 %v11231_v30  ;;  %v11316_v30 = vld [vmem:[#allocation5 + $0x2a8] sm:$0xff]  ;;  %v11339_v11 = vld [vmem:[#allocation5 + $0x360] sm:$0xff]  ;;  %v11338_v15 = vld [vmem:[#allocation5 + $0x358] sm:$0xff] }
  0x3c   :  { %6680 = vmatpush.bf16.msra.mxu1 %v11239_v31  ;;  %v11324_v31 = vld [vmem:[#allocation5 + $0x2e8] sm:$0xff] }
  0x3d   :  { %6693 = vmatpush.bf16.msra.mxu2 %v11247_v34  ;;  %v11315_v34 = vld [vmem:[#allocation5 + $0x2a0] sm:$0xff] }
  0x3e   :  { %6706 = vmatpush.bf16.msra.mxu3 %v11255_v35  ;;  %6668 = vmatmul.bf16.vlgmr.msra.gmra.mxu0 %v1860_v43  ;;  %v11323_v35 = vld [vmem:[#allocation5 + $0x2e0] sm:$0xff]  ;;  %v11321_v43 = vld [vmem:[#allocation5 + $0x2d0] sm:$0xff] }
  0x3f   :  { %6712 = vmatpush.bf16.msrb.mxu0 %v11270_v38  ;;  %6681 = vmatmul.bf16.vlgmr.msra.gmra.mxu1 %v1861_v45  ;;  %v11314_v38 = vld [vmem:[#allocation5 + $0x298] sm:$0xff]  ;;  %v11304_v45 = vld [vmem:[#allocation5 + $0x248] sm:$0xff] }
  0x40   :  { %6725 = vmatpush.bf16.msrb.mxu1 %v11278_v39  ;;  %6694 = vmatmul.bf16.vlgmr.msra.gmra.mxu2 %v1862_v42  ;;  %v11322_v39 = vld [vmem:[#allocation5 + $0x2d8] sm:$0xff]  ;;  %v11313_v42 = vld [vmem:[#allocation5 + $0x290] sm:$0xff] }
  0x41   :  { %6738 = vmatpush.bf16.msrb.mxu2 %v11286_v40  ;;  %6707 = vmatmul.bf16.vlgmr.msra.gmra.mxu3 %v1863_v44  ;;  %v11297_v40 = vld [vmem:[#allocation5 + $0x210] sm:$0xff]  ;;  %v11296_v44 = vld [vmem:[#allocation5 + $0x208] sm:$0xff] }
  0x42   :  { %6751 = vmatpush.bf16.msrb.mxu3 %v11294_v41  ;;  %v11305_v41 = vld [vmem:[#allocation5 + $0x250] sm:$0xff] }
  0x43   :  { %6713 = vmatpush.bf16.msrb.mxu0 %v11269_v46  ;;  %v11312_v46 = vld [vmem:[#allocation5 + $0x288] sm:$0xff] }
  0x44   :  { %6726 = vmatpush.bf16.msrb.mxu1 %v11277_v47  ;;  %v11320_v47 = vld [vmem:[#allocation5 + $0x2c8] sm:$0xff] }
  0x45   :  { %6739 = vmatpush.bf16.msrb.mxu2 %v11285_v48  ;;  %v132_v48 = vld [vmem:[#allocation2 + $0x20] sm:$0xff] }
  0x46   :  { %6752 = vmatpush.bf16.msrb.mxu3 %v11293_v49  ;;  %v133_v49 = vld [vmem:[#allocation2 + $0x28] sm:$0xff] }
  0x47   :  { %6714 = vmatpush.bf16.msrb.mxu0 %v11268_v50  ;;  %v11295_v50 = vld [vmem:[#allocation5 + $0x200] sm:$0xff] }
  0x48   :  { %6727 = vmatpush.bf16.msrb.mxu1 %v11276_v51  ;;  %v11303_v51 = vld [vmem:[#allocation5 + $0x240] sm:$0xff] }
  0x49   :  { %6740 = vmatpush.bf16.msrb.mxu2 %v11284_v52  ;;  %v1772_v52 = vunpack.c.l.b16 %v132_v48 }
  0x4a   :  { %6753 = vmatpush.bf16.msrb.mxu3 %v11292_v53  ;;  %v1774_v53 = vunpack.c.l.b16 %v133_v49 }
  0x4b   :  { %6715 = vmatpush.bf16.msrb.mxu0 %v11267_v54  ;;  %v11311_v54 = vld [vmem:[#allocation5 + $0x280] sm:$0xff] }
  0x4c   :  { %6728 = vmatpush.bf16.msrb.mxu1 %v11275_v55  ;;  %v11319_v55 = vld [vmem:[#allocation5 + $0x2c0] sm:$0xff] }
  0x4d   :  { %6741 = vmatpush.bf16.msrb.mxu2 %v11283_v56  ;;  %v1773_v56 = vunpack.c.h.b16 %v132_v48  ;;  %v11364_v48 = vld [vmem:[#allocation5 + $0x428] sm:$0xff] }
  0x4e   :  { %6754 = vmatpush.bf16.msrb.mxu3 %v11291_v57  ;;  %v1775_v57 = vunpack.c.h.b16 %v133_v49  ;;  %v11372_v49 = vld [vmem:[#allocation5 + $0x468] sm:$0xff] }
  0x4f   :  { %6716 = vmatpush.bf16.msrb.mxu0 %v11266_v58  ;;  %v11334_v58 = vld [vmem:[#allocation5 + $0x338] sm:$0xff] }
  0x50   :  { %6729 = vmatpush.bf16.msrb.mxu1 %v11274_v59  ;;  %v11342_v59 = vld [vmem:[#allocation5 + $0x378] sm:$0xff] }
  0x51   :  { %6742 = vmatpush.bf16.msrb.mxu2 %v11282_v60  ;;  %v11350_v60 = vld [vmem:[#allocation5 + $0x3b8] sm:$0xff] }
  0x52   :  { %6755 = vmatpush.bf16.msrb.mxu3 %v11290_v61  ;;  %v11358_v61 = vld [vmem:[#allocation5 + $0x3f8] sm:$0xff] }
  0x53   :  { %6717 = vmatpush.bf16.msrb.mxu0 %v11265_v62  ;;  %v1868_v62 = vpack.c.b16 %v1772_v52, %v1772_v52  ;;  %v11363_v52 = vld [vmem:[#allocation5 + $0x420] sm:$0xff] }
  0x54   :  { %6730 = vmatpush.bf16.msrb.mxu1 %v11273_v63  ;;  %v1870_v63 = vpack.c.b16 %v1774_v53, %v1774_v53  ;;  %v11371_v53 = vld [vmem:[#allocation5 + $0x460] sm:$0xff] }
  0x55   :  { %6743 = vmatpush.bf16.msrb.mxu2 %v11281_v0  ;;  %v1869_v0 = vpack.c.b16 %v1773_v56, %v1773_v56  ;;  %v11362_v56 = vld [vmem:[#allocation5 + $0x418] sm:$0xff] }
  0x56   :  { %6756 = vmatpush.bf16.msrb.mxu3 %v11289_v1  ;;  %v1871_v1 = vpack.c.b16 %v1775_v57, %v1775_v57  ;;  %v11370_v57 = vld [vmem:[#allocation5 + $0x458] sm:$0xff] }
  0x57   :  { %6718 = vmatpush.bf16.msrb.mxu0 %v11264_v2  ;;  %v11333_v2 = vld [vmem:[#allocation5 + $0x330] sm:$0xff] }
  0x58   :  { %6731 = vmatpush.bf16.msrb.mxu1 %v11272_v3  ;;  %v11341_v3 = vld [vmem:[#allocation5 + $0x370] sm:$0xff] }
  0x59   :  { %6744 = vmatpush.bf16.msrb.mxu2 %v11280_v4  ;;  %v11349_v4 = vld [vmem:[#allocation5 + $0x3b0] sm:$0xff] }
  0x5a   :  { %6757 = vmatpush.bf16.msrb.mxu3 %v11288_v5  ;;  %v11357_v5 = vld [vmem:[#allocation5 + $0x3f0] sm:$0xff] }
  0x5b   :  { %6719 = vmatpush.bf16.msrb.mxu0 %v11263_v8  ;;  %v11348_v8 = vld [vmem:[#allocation5 + $0x3a8] sm:$0xff] }
  0x5c   :  { %6732 = vmatpush.bf16.msrb.mxu1 %v11271_v9  ;;  %v11356_v9 = vld [vmem:[#allocation5 + $0x3e8] sm:$0xff] }
  0x5d   :  { %6745 = vmatpush.bf16.msrb.mxu2 %v11279_v12  ;;  %v11347_v12 = vld [vmem:[#allocation5 + $0x3a0] sm:$0xff] }
  0x5e   :  { %6758 = vmatpush.bf16.msrb.mxu3 %v11287_v13  ;;  %6720 = vmatmul.bf16.vlgmr.msrb.gmra.mxu0 %v1864_v21  ;;  %v11355_v13 = vld [vmem:[#allocation5 + $0x3e0] sm:$0xff]  ;;  %v11353_v21 = vld [vmem:[#allocation5 + $0x3d0] sm:$0xff] }
  0x5f   :  { %6764 = vmatpush.bf16.msra.mxu0 %v11302_v16  ;;  %6733 = vmatmul.bf16.vlgmr.msrb.gmra.mxu1 %v1865_v23  ;;  %v11346_v16 = vld [vmem:[#allocation5 + $0x398] sm:$0xff]  ;;  %v11336_v23 = vld [vmem:[#allocation5 + $0x348] sm:$0xff] }
  0x60   :  { %6777 = vmatpush.bf16.msra.mxu1 %v11310_v17  ;;  %6746 = vmatmul.bf16.vlgmr.msrb.gmra.mxu2 %v1866_v20  ;;  %v11354_v17 = vld [vmem:[#allocation5 + $0x3d8] sm:$0xff]  ;;  %v11345_v20 = vld [vmem:[#allocation5 + $0x390] sm:$0xff] }
  0x61   :  { %6790 = vmatpush.bf16.msra.mxu2 %v11318_v18  ;;  %6759 = vmatmul.bf16.vlgmr.msrb.gmra.mxu3 %v1867_v22  ;;  %v11329_v18 = vld [vmem:[#allocation5 + $0x310] sm:$0xff]  ;;  %v11328_v22 = vld [vmem:[#allocation5 + $0x308] sm:$0xff] }
  0x62   :  { %6803 = vmatpush.bf16.msra.mxu3 %v11326_v19  ;;  %v11337_v19 = vld [vmem:[#allocation5 + $0x350] sm:$0xff] }
  0x63   :  { %6765 = vmatpush.bf16.msra.mxu0 %v11301_v24  ;;  %v11344_v24 = vld [vmem:[#allocation5 + $0x388] sm:$0xff] }
  0x64   :  { %6778 = vmatpush.bf16.msra.mxu1 %v11309_v25  ;;  %v11352_v25 = vld [vmem:[#allocation5 + $0x3c8] sm:$0xff] }
  0x65   :  { %6791 = vmatpush.bf16.msra.mxu2 %v11317_v26  ;;  %v134_v26 = vld [vmem:[#allocation2 + $0x30] sm:$0xff] }
  0x66   :  { %6804 = vmatpush.bf16.msra.mxu3 %v11325_v27  ;;  %v135_v27 = vld [vmem:[#allocation2 + $0x38] sm:$0xff] }
  0x67   :  { %6766 = vmatpush.bf16.msra.mxu0 %v11300_v28  ;;  %v11327_v28 = vld [vmem:[#allocation5 + $0x300] sm:$0xff] }
  0x68   :  { %6779 = vmatpush.bf16.msra.mxu1 %v11308_v29  ;;  %v11335_v29 = vld [vmem:[#allocation5 + $0x340] sm:$0xff] }
  0x69   :  { %6792 = vmatpush.bf16.msra.mxu2 %v11316_v30  ;;  %v1776_v30 = vunpack.c.l.b16 %v134_v26 }
  0x6a   :  { %6805 = vmatpush.bf16.msra.mxu3 %v11324_v31  ;;  %v1778_v31 = vunpack.c.l.b16 %v135_v27 }
  0x6b   :  { %6767 = vmatpush.bf16.msra.mxu0 %v11299_v32  ;;  %v11343_v32 = vld [vmem:[#allocation5 + $0x380] sm:$0xff] }
  0x6c   :  { %6780 = vmatpush.bf16.msra.mxu1 %v11307_v33  ;;  %v11351_v33 = vld [vmem:[#allocation5 + $0x3c0] sm:$0xff] }
  0x6d   :  { %6793 = vmatpush.bf16.msra.mxu2 %v11315_v34  ;;  %v1777_v34 = vunpack.c.h.b16 %v134_v26  ;;  %v11396_v26 = vld [vmem:[#allocation5 + $0x528] sm:$0xff] }
  0x6e   :  { %6806 = vmatpush.bf16.msra.mxu3 %v11323_v35  ;;  %v1779_v35 = vunpack.c.h.b16 %v135_v27  ;;  %v11404_v27 = vld [vmem:[#allocation5 + $0x568] sm:$0xff] }
  0x6f   :  { %6768 = vmatpush.bf16.msra.mxu0 %v11298_v36  ;;  %v11366_v36 = vld [vmem:[#allocation5 + $0x438] sm:$0xff] }
  0x70   :  { %6781 = vmatpush.bf16.msra.mxu1 %v11306_v37  ;;  %v11374_v37 = vld [vmem:[#allocation5 + $0x478] sm:$0xff] }
  0x71   :  { %6794 = vmatpush.bf16.msra.mxu2 %v11314_v38  ;;  %v11382_v38 = vld [vmem:[#allocation5 + $0x4b8] sm:$0xff] }
  0x72   :  { %6807 = vmatpush.bf16.msra.mxu3 %v11322_v39  ;;  %v11390_v39 = vld [vmem:[#allocation5 + $0x4f8] sm:$0xff] }
  0x73   :  { %6769 = vmatpush.bf16.msra.mxu0 %v11297_v40  ;;  %v1872_v40 = vpack.c.b16 %v1776_v30, %v1776_v30  ;;  %v11420_v30 = vld [vmem:[#allocation5 + $0x5e8] sm:$0xff] }
  0x74   :  { %6782 = vmatpush.bf16.msra.mxu1 %v11305_v41  ;;  %v1874_v41 = vpack.c.b16 %v1778_v31, %v1778_v31 }
  0x75   :  { %6795 = vmatpush.bf16.msra.mxu2 %v11313_v42  ;;  %v1873_v42 = vpack.c.b16 %v1777_v34, %v1777_v34 }
  0x76   :  { %6808 = vmatpush.bf16.msra.mxu3 %v11321_v43  ;;  %v1875_v43 = vpack.c.b16 %v1779_v35, %v1779_v35 }
  0x77   :  { %6770 = vmatpush.bf16.msra.mxu0 %v11296_v44  ;;  %v11365_v44 = vld [vmem:[#allocation5 + $0x430] sm:$0xff] }
  0x78   :  { %6783 = vmatpush.bf16.msra.mxu1 %v11304_v45  ;;  %v11373_v45 = vld [vmem:[#allocation5 + $0x470] sm:$0xff] }
  0x79   :  { %6796 = vmatpush.bf16.msra.mxu2 %v11312_v46  ;;  %v11381_v46 = vld [vmem:[#allocation5 + $0x4b0] sm:$0xff] }
  0x7a   :  { %6809 = vmatpush.bf16.msra.mxu3 %v11320_v47  ;;  %v11389_v47 = vld [vmem:[#allocation5 + $0x4f0] sm:$0xff] }
  0x7b   :  { %6771 = vmatpush.bf16.msra.mxu0 %v11295_v50  ;;  %v11380_v50 = vld [vmem:[#allocation5 + $0x4a8] sm:$0xff] }
  0x7c   :  { %6784 = vmatpush.bf16.msra.mxu1 %v11303_v51  ;;  %v11388_v51 = vld [vmem:[#allocation5 + $0x4e8] sm:$0xff] }
  0x7d   :  { %6797 = vmatpush.bf16.msra.mxu2 %v11311_v54  ;;  %v11379_v54 = vld [vmem:[#allocation5 + $0x4a0] sm:$0xff] }
  0x7e   :  { %6810 = vmatpush.bf16.msra.mxu3 %v11319_v55  ;;  %6772 = vmatmul.bf16.vlgmr.msra.gmra.mxu0 %v1868_v62  ;;  %v11387_v55 = vld [vmem:[#allocation5 + $0x4e0] sm:$0xff]  ;;  %v11377_v62 = vld [vmem:[#allocation5 + $0x490] sm:$0xff] }
  0x7f   :  { %6816 = vmatpush.bf16.msrb.mxu0 %v11334_v58  ;;  %6785 = vmatmul.bf16.vlgmr.msra.gmra.mxu1 %v1869_v0  ;;  %v11378_v58 = vld [vmem:[#allocation5 + $0x498] sm:$0xff]  ;;  %v11360_v0 = vld [vmem:[#allocation5 + $0x408] sm:$0xff] }
  0x80   :  { %6829 = vmatpush.bf16.msrb.mxu1 %v11342_v59  ;;  %6798 = vmatmul.bf16.vlgmr.msra.gmra.mxu2 %v1870_v63  ;;  %v11386_v59 = vld [vmem:[#allocation5 + $0x4d8] sm:$0xff]  ;;  %v11385_v63 = vld [vmem:[#allocation5 + $0x4d0] sm:$0xff] }
  0x81   :  { %6842 = vmatpush.bf16.msrb.mxu2 %v11350_v60  ;;  %6811 = vmatmul.bf16.vlgmr.msra.gmra.mxu3 %v1871_v1  ;;  %v11361_v60 = vld [vmem:[#allocation5 + $0x410] sm:$0xff]  ;;  %v11368_v1 = vld [vmem:[#allocation5 + $0x448] sm:$0xff] }
  0x82   :  { %6855 = vmatpush.bf16.msrb.mxu3 %v11358_v61  ;;  %v11369_v61 = vld [vmem:[#allocation5 + $0x450] sm:$0xff] }
  0x83   :  { %6817 = vmatpush.bf16.msrb.mxu0 %v11333_v2  ;;  %v11376_v2 = vld [vmem:[#allocation5 + $0x488] sm:$0xff] }
  0x84   :  { %6830 = vmatpush.bf16.msrb.mxu1 %v11341_v3  ;;  %v11384_v3 = vld [vmem:[#allocation5 + $0x4c8] sm:$0xff] }
  0x85   :  { %6843 = vmatpush.bf16.msrb.mxu2 %v11349_v4  ;;  %v136_v4 = vld [vmem:[#allocation2 + $0x40] sm:$0xff] }
  0x86   :  { %6856 = vmatpush.bf16.msrb.mxu3 %v11357_v5  ;;  %v137_v5 = vld [vmem:[#allocation2 + $0x48] sm:$0xff] }
  0x87   :  { %6818 = vmatpush.bf16.msrb.mxu0 %v11332_v6  ;;  %v11359_v6 = vld [vmem:[#allocation5 + $0x400] sm:$0xff] }
  0x88   :  { %6831 = vmatpush.bf16.msrb.mxu1 %v11340_v7  ;;  %v11367_v7 = vld [vmem:[#allocation5 + $0x440] sm:$0xff] }
  0x89   :  { %6844 = vmatpush.bf16.msrb.mxu2 %v11348_v8  ;;  %v1780_v8 = vunpack.c.l.b16 %v136_v4 }
  0x8a   :  { %6857 = vmatpush.bf16.msrb.mxu3 %v11356_v9  ;;  %v1782_v9 = vunpack.c.l.b16 %v137_v5 }
  0x8b   :  { %6819 = vmatpush.bf16.msrb.mxu0 %v11331_v10  ;;  %v11375_v10 = vld [vmem:[#allocation5 + $0x480] sm:$0xff] }
  0x8c   :  { %6832 = vmatpush.bf16.msrb.mxu1 %v11339_v11  ;;  %v11383_v11 = vld [vmem:[#allocation5 + $0x4c0] sm:$0xff] }
  0x8d   :  { %6845 = vmatpush.bf16.msrb.mxu2 %v11347_v12  ;;  %v1781_v12 = vunpack.c.h.b16 %v136_v4 }
  0x8e   :  { %6858 = vmatpush.bf16.msrb.mxu3 %v11355_v13  ;;  %v1783_v13 = vunpack.c.h.b16 %v137_v5  ;;  %v11430_v5 = vld [vmem:[#allocation5 + $0x638] sm:$0xff] }
  0x8f   :  { %6820 = vmatpush.bf16.msrb.mxu0 %v11330_v14  ;;  %v11398_v14 = vld [vmem:[#allocation5 + $0x538] sm:$0xff] }
  0x90   :  { %6833 = vmatpush.bf16.msrb.mxu1 %v11338_v15  ;;  %v11406_v15 = vld [vmem:[#allocation5 + $0x578] sm:$0xff] }
  0x91   :  { %6846 = vmatpush.bf16.msrb.mxu2 %v11346_v16  ;;  %v11414_v16 = vld [vmem:[#allocation5 + $0x5b8] sm:$0xff] }
  0x92   :  { %6859 = vmatpush.bf16.msrb.mxu3 %v11354_v17  ;;  %v11422_v17 = vld [vmem:[#allocation5 + $0x5f8] sm:$0xff] }
  0x93   :  { %6821 = vmatpush.bf16.msrb.mxu0 %v11329_v18  ;;  %v1876_v18 = vpack.c.b16 %v1780_v8, %v1780_v8  ;;  %v11454_v8 = vld [vmem:[#allocation5 + $0x6f8] sm:$0xff] }
  0x94   :  { %6834 = vmatpush.bf16.msrb.mxu1 %v11337_v19  ;;  %v1878_v19 = vpack.c.b16 %v1782_v9, %v1782_v9 }
  0x95   :  { %6847 = vmatpush.bf16.msrb.mxu2 %v11345_v20  ;;  %v1877_v20 = vpack.c.b16 %v1781_v12, %v1781_v12 }
  0x96   :  { %6860 = vmatpush.bf16.msrb.mxu3 %v11353_v21  ;;  %v1879_v21 = vpack.c.b16 %v1783_v13, %v1783_v13  ;;  %v11429_v13 = vld [vmem:[#allocation5 + $0x630] sm:$0xff] }
  0x97   :  { %6822 = vmatpush.bf16.msrb.mxu0 %v11328_v22  ;;  %v11397_v22 = vld [vmem:[#allocation5 + $0x530] sm:$0xff] }
  0x98   :  { %6835 = vmatpush.bf16.msrb.mxu1 %v11336_v23  ;;  %v11405_v23 = vld [vmem:[#allocation5 + $0x570] sm:$0xff] }
  0x99   :  { %6848 = vmatpush.bf16.msrb.mxu2 %v11344_v24  ;;  %v11413_v24 = vld [vmem:[#allocation5 + $0x5b0] sm:$0xff] }
  0x9a   :  { %6861 = vmatpush.bf16.msrb.mxu3 %v11352_v25  ;;  %v11421_v25 = vld [vmem:[#allocation5 + $0x5f0] sm:$0xff] }
  0x9b   :  { %6823 = vmatpush.bf16.msrb.mxu0 %v11327_v28  ;;  %v12025_v28 = vld [vmem:[#allocation7] ss:$0 sm:$0xff] }
  0x9c   :  { %6836 = vmatpush.bf16.msrb.mxu1 %v11335_v29  ;;  %v11412_v29 = vld [vmem:[#allocation5 + $0x5a8] sm:$0xff] }
  0x9d   :  { %6849 = vmatpush.bf16.msrb.mxu2 %v11343_v32  ;;  %v11395_v32 = vld [vmem:[#allocation5 + $0x520] sm:$0xff] }
  0x9e   :  { %6862 = vmatpush.bf16.msrb.mxu3 %v11351_v33  ;;  %6824 = vmatmul.bf16.vlgmr.msrb.gmra.mxu0 %v1872_v40  ;;  %v11403_v33 = vld [vmem:[#allocation5 + $0x560] sm:$0xff]  ;;  %v11402_v40 = vld [vmem:[#allocation5 + $0x558] sm:$0xff] }
  0x9f   :  { %6868 = vmatpush.bf16.msra.mxu0 %v11366_v36  ;;  %6837 = vmatmul.bf16.vlgmr.msrb.gmra.mxu1 %v1873_v42  ;;  %v11411_v36 = vld [vmem:[#allocation5 + $0x5a0] sm:$0xff]  ;;  %v11418_v42 = vld [vmem:[#allocation5 + $0x5d8] sm:$0xff] }
  0xa0   :  { %6881 = vmatpush.bf16.msra.mxu1 %v11374_v37  ;;  %6850 = vmatmul.bf16.vlgmr.msrb.gmra.mxu2 %v1874_v41  ;;  %v11419_v37 = vld [vmem:[#allocation5 + $0x5e0] sm:$0xff]  ;;  %v11410_v41 = vld [vmem:[#allocation5 + $0x598] sm:$0xff] }
  0xa1   :  { %6894 = vmatpush.bf16.msra.mxu2 %v11382_v38  ;;  %6863 = vmatmul.bf16.vlgmr.msrb.gmra.mxu3 %v1875_v43 }
  0xa2   :  { %6907 = vmatpush.bf16.msra.mxu3 %v11390_v39  ;;  %v11394_v39 = vld [vmem:[#allocation5 + $0x518] sm:$0xff] }
  0xa3   :  { %6869 = vmatpush.bf16.msra.mxu0 %v11365_v44 }
  0xa4   :  { %6882 = vmatpush.bf16.msra.mxu1 %v11373_v45 }
  0xa5   :  { %6895 = vmatpush.bf16.msra.mxu2 %v11381_v46 }
  0xa6   :  { %6908 = vmatpush.bf16.msra.mxu3 %v11389_v47  ;;  %v11393_v47 = vld [vmem:[#allocation5 + $0x510] sm:$0xff] }
  0xa7   :  { %6870 = vmatpush.bf16.msra.mxu0 %v11364_v48  ;;  %v11401_v48 = vld [vmem:[#allocation5 + $0x550] sm:$0xff] }
  0xa8   :  { %6883 = vmatpush.bf16.msra.mxu1 %v11372_v49 }
  0xa9   :  { %6896 = vmatpush.bf16.msra.mxu2 %v11380_v50 }
  0xaa   :  { %6909 = vmatpush.bf16.msra.mxu3 %v11388_v51  ;;  %v11409_v51 = vld [vmem:[#allocation5 + $0x590] sm:$0xff] }
  0xab   :  { %6871 = vmatpush.bf16.msra.mxu0 %v11363_v52  ;;  %v11417_v52 = vld [vmem:[#allocation5 + $0x5d0] sm:$0xff] }
  0xac   :  { %6884 = vmatpush.bf16.msra.mxu1 %v11371_v53  ;;  %v11392_v53 = vld [vmem:[#allocation5 + $0x508] sm:$0xff] }
  0xad   :  { %6897 = vmatpush.bf16.msra.mxu2 %v11379_v54  ;;  %v11400_v54 = vld [vmem:[#allocation5 + $0x548] sm:$0xff] }
  0xae   :  { %6910 = vmatpush.bf16.msra.mxu3 %v11387_v55  ;;  %v11408_v55 = vld [vmem:[#allocation5 + $0x588] sm:$0xff] }
  0xaf   :  { %6872 = vmatpush.bf16.msra.mxu0 %v11362_v56  ;;  %v11416_v56 = vld [vmem:[#allocation5 + $0x5c8] sm:$0xff] }
  0xb0   :  { %6885 = vmatpush.bf16.msra.mxu1 %v11370_v57  ;;  %v138_v57 = vld [vmem:[#allocation2 + $0x50] sm:$0xff] }
  0xb1   :  { %6898 = vmatpush.bf16.msra.mxu2 %v11378_v58  ;;  %v139_v58 = vld [vmem:[#allocation2 + $0x58] sm:$0xff] }
  0xb2   :  { %6911 = vmatpush.bf16.msra.mxu3 %v11386_v59  ;;  %v1787_v4 = vunpack.c.h.b16 %v139_v58 }
  0xb3   :  { %6873 = vmatpush.bf16.msra.mxu0 %v11361_v60 }
  0xb4   :  { %6886 = vmatpush.bf16.msra.mxu1 %v11369_v61  ;;  %v11391_v61 = vld [vmem:[#allocation5 + $0x500] sm:$0xff]  ;;  %v1883_v12 = vpack.c.b16 %v1787_v4, %v1787_v4  ;;  %v11469_v4 = vld [vmem:[#allocation5 + $0x770] sm:$0xff] }
  0xb5   :  { %6899 = vmatpush.bf16.msra.mxu2 %v11377_v62  ;;  %v11399_v62 = vld [vmem:[#allocation5 + $0x540] sm:$0xff] }
  0xb6   :  { %6912 = vmatpush.bf16.msra.mxu3 %v11385_v63  ;;  %v1784_v63 = vunpack.c.l.b16 %v138_v57 }
  0xb7   :  { %6874 = vmatpush.bf16.msra.mxu0 %v11360_v0  ;;  %v1786_v0 = vunpack.c.l.b16 %v139_v58 }
  0xb8   :  { %6887 = vmatpush.bf16.msra.mxu1 %v11368_v1  ;;  %v11407_v1 = vld [vmem:[#allocation5 + $0x580] sm:$0xff]  ;;  %v1880_v9 = vpack.c.b16 %v1784_v63, %v1784_v63 }
  0xb9   :  { %6900 = vmatpush.bf16.msra.mxu2 %v11376_v2  ;;  %v11415_v2 = vld [vmem:[#allocation5 + $0x5c0] sm:$0xff] }
  0xba   :  { %6913 = vmatpush.bf16.msra.mxu3 %v11384_v3  ;;  %v1785_v3 = vunpack.c.h.b16 %v138_v57 }
  0xbb   :  { %6875 = vmatpush.bf16.msra.mxu0 %v11359_v6  ;;  %v6669_v31 = vpop.f32.mrf.mxu0  ;;  %v11438_v6 = vld [vmem:[#allocation5 + $0x678] sm:$0xff] }
  0xbc   :  { %6888 = vmatpush.bf16.msra.mxu1 %v11367_v7  ;;  %v6670_v34 = vadd.f32 %v12025_v28, %v6669_v31  ;;  %v6682_v35 = vpop.f32.mrf.mxu1  ;;  %v11446_v7 = vld [vmem:[#allocation5 + $0x6b8] sm:$0xff] }
  0xbd   :  { %6901 = vmatpush.bf16.msra.mxu2 %v11375_v10  ;;  %v1882_v10 = vpack.c.b16 %v1786_v0, %v1786_v0  ;;  %v11442_v31 = vld [vmem:[#allocation5 + $0x698] sm:$0xff] }
  0xbe   :  { %6914 = vmatpush.bf16.msra.mxu3 %v11383_v11  ;;  %6876 = vmatmul.bf16.vlgmr.msra.gmra.mxu0 %v1876_v18  ;;  %v6683_v38 = vadd.f32 %v6682_v35, %v6670_v34  ;;  %v1881_v11 = vpack.c.b16 %v1785_v3, %v1785_v3  ;;  %v11436_v18 = vld [vmem:[#allocation5 + $0x668] sm:$0xff]  ;;  %v11461_v3 = vld [vmem:[#allocation5 + $0x730] sm:$0xff] }
  0xbf   :  { %6920 = vmatpush.bf16.msrb.mxu0 %v11398_v14  ;;  %6889 = vmatmul.bf16.vlgmr.msra.gmra.mxu1 %v1877_v20  ;;  %v11437_v14 = vld [vmem:[#allocation5 + $0x670] sm:$0xff]  ;;  %v11452_v20 = vld [vmem:[#allocation5 + $0x6e8] sm:$0xff] }
  0xc0   :  { %6933 = vmatpush.bf16.msrb.mxu1 %v11406_v15  ;;  %6902 = vmatmul.bf16.vlgmr.msra.gmra.mxu2 %v1878_v19  ;;  %v11445_v15 = vld [vmem:[#allocation5 + $0x6b0] sm:$0xff]  ;;  %v11444_v19 = vld [vmem:[#allocation5 + $0x6a8] sm:$0xff] }
  0xc1   :  { %6946 = vmatpush.bf16.msrb.mxu2 %v11414_v16  ;;  %6915 = vmatmul.bf16.vlgmr.msra.gmra.mxu3 %v1879_v21  ;;  %v11453_v16 = vld [vmem:[#allocation5 + $0x6f0] sm:$0xff] }
  0xc2   :  { %6959 = vmatpush.bf16.msrb.mxu3 %v11422_v17  ;;  %v11428_v17 = vld [vmem:[#allocation5 + $0x628] sm:$0xff] }
  0xc3   :  { %6921 = vmatpush.bf16.msrb.mxu0 %v11397_v22  ;;  %v6695_v43 = vpop.f32.mrf.mxu2  ;;  %v6671_v46 = vpop.f32.mrf.mxu0  ;;  %v11427_v22 = vld [vmem:[#allocation5 + $0x620] sm:$0xff] }
  0xc4   :  { %6934 = vmatpush.bf16.msrb.mxu1 %v11405_v23  ;;  %v6696_v44 = vadd.f32 %v6695_v43, %v6683_v38  ;;  %v6708_v45 = vpop.f32.mrf.mxu3  ;;  %v6684_v50 = vpop.f32.mrf.mxu1  ;;  %v11435_v23 = vld [vmem:[#allocation5 + $0x660] sm:$0xff]  ;;  %v11433_v38 = vld [vmem:[#allocation5 + $0x650] sm:$0xff]  ;;  %v11424_v43 = vld [vmem:[#allocation5 + $0x608] sm:$0xff] }
  0xc5   :  { %6947 = vmatpush.bf16.msrb.mxu2 %v11413_v24  ;;  %v11448_v46 = vld [vmem:[#allocation5 + $0x6c8] sm:$0xff] }
  0xc6   :  { %6960 = vmatpush.bf16.msrb.mxu3 %v11421_v25  ;;  %v12301_v49 = vadd.f32 %v6708_v45, %v6696_v44  ;;  %v11432_v44 = vld [vmem:[#allocation5 + $0x648] sm:$0xff] }
  0xc7   :  { %6922 = vmatpush.bf16.msrb.mxu0 %v11396_v26  ;;  %v11443_v26 = vld [vmem:[#allocation5 + $0x6a0] sm:$0xff]  ;;  %v11440_v45 = vld [vmem:[#allocation5 + $0x688] sm:$0xff] }
  0xc8   :  { %6935 = vmatpush.bf16.msrb.mxu1 %v11404_v27  ;;  %v11451_v27 = vld [vmem:[#allocation5 + $0x6e0] sm:$0xff] }
  0xc9   :  { %6948 = vmatpush.bf16.msrb.mxu2 %v11412_v29  ;;  %v11426_v29 = vld [vmem:[#allocation5 + $0x618] sm:$0xff] }
  0xca   :  { %6961 = vmatpush.bf16.msrb.mxu3 %v11420_v30  ;;  %v11434_v30 = vld [vmem:[#allocation5 + $0x658] sm:$0xff] }
  0xcb   :  { %6923 = vmatpush.bf16.msrb.mxu0 %v11395_v32  ;;  %v6697_v59 = vpop.f32.mrf.mxu2  ;;  %v11450_v32 = vld [vmem:[#allocation5 + $0x6d8] sm:$0xff] }
  0xcc   :  { %6936 = vmatpush.bf16.msrb.mxu1 %v11403_v33  ;;  %v6710_v60 = vpop.f32.mrf.mxu3  ;;  %v11462_v59 = vld [vmem:[#allocation5 + $0x738] sm:$0xff] }
  0xcd   :  { %6949 = vmatpush.bf16.msrb.mxu2 %v11411_v36  ;;  %v11470_v60 = vld [vmem:[#allocation5 + $0x778] sm:$0xff] }
  0xce   :  { %6962 = vmatpush.bf16.msrb.mxu3 %v11419_v37  ;;  %v11425_v37 = vld [vmem:[#allocation5 + $0x610] sm:$0xff] }
  0xcf   :  { %6924 = vmatpush.bf16.msrb.mxu0 %v11394_v39 }
  0xd0   :  { %6937 = vmatpush.bf16.msrb.mxu1 %v11402_v40 }
  0xd1   :  { %6950 = vmatpush.bf16.msrb.mxu2 %v11410_v41  ;;  %v11441_v41 = vld [vmem:[#allocation5 + $0x690] sm:$0xff] }
  0xd2   :  { %6963 = vmatpush.bf16.msrb.mxu3 %v11418_v42  ;;  %v11449_v42 = vld [vmem:[#allocation5 + $0x6d0] sm:$0xff] }
  0xd3   :  { %6925 = vmatpush.bf16.msrb.mxu0 %v11393_v47  ;;  %v140_v47 = vld [vmem:[#allocation2 + $0x60] sm:$0xff] }
  0xd4   :  { %6938 = vmatpush.bf16.msrb.mxu1 %v11401_v48  ;;  %v141_v48 = vld [vmem:[#allocation2 + $0x68] sm:$0xff]  ;;  %v1789_v57 = vunpack.c.h.b16 %v140_v47 }
  0xd5   :  { %6951 = vmatpush.bf16.msrb.mxu2 %v11409_v51  ;;  %v11423_v51 = vld [vmem:[#allocation5 + $0x600] sm:$0xff]  ;;  %v1791_v58 = vunpack.c.h.b16 %v141_v48 }
  0xd6   :  { %6964 = vmatpush.bf16.msrb.mxu3 %v11417_v52  ;;  %v11431_v52 = vld [vmem:[#allocation5 + $0x640] sm:$0xff] }
  0xd7   :  { %6926 = vmatpush.bf16.msrb.mxu0 %v11392_v53  ;;  %v1788_v53 = vunpack.c.l.b16 %v140_v47 }
  0xd8   :  { %6939 = vmatpush.bf16.msrb.mxu1 %v11400_v54  ;;  %v1790_v54 = vunpack.c.l.b16 %v141_v48 }
  0xd9   :  { %6952 = vmatpush.bf16.msrb.mxu2 %v11408_v55  ;;  %v11439_v55 = vld [vmem:[#allocation5 + $0x680] sm:$0xff]  ;;  %v1884_v63 = vpack.c.b16 %v1788_v53, %v1788_v53 }
  0xda   :  { %6965 = vmatpush.bf16.msrb.mxu3 %v11416_v56  ;;  %v11447_v56 = vld [vmem:[#allocation5 + $0x6c0] sm:$0xff]  ;;  %v1886_v0 = vpack.c.b16 %v1790_v54, %v1790_v54 }
  0xdb   :  { %6927 = vmatpush.bf16.msrb.mxu0 %v11391_v61  ;;  %v6721_v21 = vpop.f32.mrf.mxu0  ;;  %v11478_v61 = vld [vmem:[#allocation5 + $0x7b8] sm:$0xff] }
  0xdc   :  { %6940 = vmatpush.bf16.msrb.mxu1 %v11399_v62  ;;  %v6722_v24 = vadd.f32 %v6721_v21, %v12301_v49  ;;  %v6734_v25 = vpop.f32.mrf.mxu1  ;;  %v11486_v62 = vld [vmem:[#allocation5 + $0x7f8] sm:$0xff] }
  0xdd   :  { %6953 = vmatpush.bf16.msrb.mxu2 %v11407_v1  ;;  %v1885_v1 = vpack.c.b16 %v1789_v57, %v1789_v57  ;;  %v11474_v21 = vld [vmem:[#allocation5 + $0x798] sm:$0xff]  ;;  %v11493_v57 = vld [vmem:[#allocation5 + $0x830] sm:$0xff] }
  0xde   :  { %6966 = vmatpush.bf16.msrb.mxu3 %v11415_v2  ;;  %6928 = vmatmul.bf16.vlgmr.msrb.gmra.mxu0 %v1880_v9  ;;  %v6735_v28 = vadd.f32 %v6734_v25, %v6722_v24  ;;  %v1887_v2 = vpack.c.b16 %v1791_v58, %v1791_v58  ;;  %v11476_v9 = vld [vmem:[#allocation5 + $0x7a8] sm:$0xff]  ;;  %v11501_v58 = vld [vmem:[#allocation5 + $0x870] sm:$0xff] }
  0xdf   :  { %6972 = vmatpush.bf16.msra.mxu0 %v11430_v5  ;;  %6941 = vmatmul.bf16.vlgmr.msrb.gmra.mxu1 %v1881_v11  ;;  %v11477_v5 = vld [vmem:[#allocation5 + $0x7b0] sm:$0xff] }
  0xe0   :  { %6985 = vmatpush.bf16.msra.mxu1 %v11438_v6  ;;  %6954 = vmatmul.bf16.vlgmr.msrb.gmra.mxu2 %v1882_v10  ;;  %v11485_v6 = vld [vmem:[#allocation5 + $0x7f0] sm:$0xff]  ;;  %v11484_v10 = vld [vmem:[#allocation5 + $0x7e8] sm:$0xff] }
  0xe1   :  { %6998 = vmatpush.bf16.msra.mxu2 %v11446_v7  ;;  %6967 = vmatmul.bf16.vlgmr.msrb.gmra.mxu3 %v1883_v12  ;;  %v11460_v7 = vld [vmem:[#allocation5 + $0x728] sm:$0xff] }
  0xe2   :  { %7011 = vmatpush.bf16.msra.mxu3 %v11454_v8  ;;  %v11468_v8 = vld [vmem:[#allocation5 + $0x768] sm:$0xff] }
  0xe3   :  { %6973 = vmatpush.bf16.msra.mxu0 %v11429_v13  ;;  %v6747_v33 = vpop.f32.mrf.mxu2  ;;  %v6723_v36 = vpop.f32.mrf.mxu0  ;;  %v11459_v13 = vld [vmem:[#allocation5 + $0x720] sm:$0xff] }
  0xe4   :  { %6986 = vmatpush.bf16.msra.mxu1 %v11437_v14  ;;  %v6748_v34 = vadd.f32 %v6747_v33, %v6735_v28  ;;  %v6760_v35 = vpop.f32.mrf.mxu3  ;;  %v6736_v40 = vpop.f32.mrf.mxu1  ;;  %v11467_v14 = vld [vmem:[#allocation5 + $0x760] sm:$0xff]  ;;  %v11457_v28 = vld [vmem:[#allocation5 + $0x710] sm:$0xff]  ;;  %v11456_v33 = vld [vmem:[#allocation5 + $0x708] sm:$0xff] }
  0xe5   :  { %6999 = vmatpush.bf16.msra.mxu2 %v11445_v15  ;;  %v11480_v36 = vld [vmem:[#allocation5 + $0x7c8] sm:$0xff] }
  0xe6   :  { %7012 = vmatpush.bf16.msra.mxu3 %v11453_v16  ;;  %v12304_v39 = vadd.f32 %v6760_v35, %v6748_v34  ;;  %v11475_v16 = vld [vmem:[#allocation5 + $0x7a0] sm:$0xff]  ;;  %v11464_v34 = vld [vmem:[#allocation5 + $0x748] sm:$0xff] }
  0xe7   :  { %6974 = vmatpush.bf16.msra.mxu0 %v11428_v17  ;;  %v11483_v17 = vld [vmem:[#allocation5 + $0x7e0] sm:$0xff]  ;;  %v11472_v35 = vld [vmem:[#allocation5 + $0x788] sm:$0xff] }
  0xe8   :  { %6987 = vmatpush.bf16.msra.mxu1 %v11436_v18 }
  0xe9   :  { %7000 = vmatpush.bf16.msra.mxu2 %v11444_v19  ;;  %v11458_v19 = vld [vmem:[#allocation5 + $0x718] sm:$0xff] }
  0xea   :  { %7013 = vmatpush.bf16.msra.mxu3 %v11452_v20  ;;  %v11466_v20 = vld [vmem:[#allocation5 + $0x758] sm:$0xff] }
  0xeb   :  { %6975 = vmatpush.bf16.msra.mxu0 %v11427_v22  ;;  %v6749_v49 = vpop.f32.mrf.mxu2  ;;  %v11482_v22 = vld [vmem:[#allocation5 + $0x7d8] sm:$0xff] }
  0xec   :  { %6988 = vmatpush.bf16.msra.mxu1 %v11435_v23  ;;  %v6762_v50 = vpop.f32.mrf.mxu3  ;;  %v11494_v49 = vld [vmem:[#allocation5 + $0x838] sm:$0xff] }
  0xed   :  { %7001 = vmatpush.bf16.msra.mxu2 %v11443_v26  ;;  %v11502_v50 = vld [vmem:[#allocation5 + $0x878] sm:$0xff] }
  0xee   :  { %7014 = vmatpush.bf16.msra.mxu3 %v11451_v27 }
  0xef   :  { %6976 = vmatpush.bf16.msra.mxu0 %v11426_v29  ;;  %v11465_v29 = vld [vmem:[#allocation5 + $0x750] sm:$0xff] }
  0xf0   :  { %6989 = vmatpush.bf16.msra.mxu1 %v11434_v30 }
  0xf1   :  { %7002 = vmatpush.bf16.msra.mxu2 %v11442_v31  ;;  %v11473_v31 = vld [vmem:[#allocation5 + $0x790] sm:$0xff] }
  0xf2   :  { %7015 = vmatpush.bf16.msra.mxu3 %v11450_v32  ;;  %v11481_v32 = vld [vmem:[#allocation5 + $0x7d0] sm:$0xff] }
  0xf3   :  { %6977 = vmatpush.bf16.msra.mxu0 %v11425_v37  ;;  %v142_v37 = vld [vmem:[#allocation2 + $0x70] sm:$0xff] }
  0xf4   :  { %6990 = vmatpush.bf16.msra.mxu1 %v11433_v38  ;;  %v143_v38 = vld [vmem:[#allocation2 + $0x78] sm:$0xff]  ;;  %v1793_v47 = vunpack.c.h.b16 %v142_v37 }
  0xf5   :  { %7003 = vmatpush.bf16.msra.mxu2 %v11441_v41  ;;  %v11455_v41 = vld [vmem:[#allocation5 + $0x700] sm:$0xff]  ;;  %v1795_v48 = vunpack.c.h.b16 %v143_v38 }
  0xf6   :  { %7016 = vmatpush.bf16.msra.mxu3 %v11449_v42  ;;  %v11463_v42 = vld [vmem:[#allocation5 + $0x740] sm:$0xff] }
  0xf7   :  { %6978 = vmatpush.bf16.msra.mxu0 %v11424_v43  ;;  %v1792_v43 = vunpack.c.l.b16 %v142_v37 }
  0xf8   :  { %6991 = vmatpush.bf16.msra.mxu1 %v11432_v44  ;;  %v1794_v44 = vunpack.c.l.b16 %v143_v38 }
  0xf9   :  { %7004 = vmatpush.bf16.msra.mxu2 %v11440_v45  ;;  %v11471_v45 = vld [vmem:[#allocation5 + $0x780] sm:$0xff]  ;;  %v1888_v53 = vpack.c.b16 %v1792_v43, %v1792_v43 }
  0xfa   :  { %7017 = vmatpush.bf16.msra.mxu3 %v11448_v46  ;;  %v11479_v46 = vld [vmem:[#allocation5 + $0x7c0] sm:$0xff]  ;;  %v1890_v54 = vpack.c.b16 %v1794_v44, %v1794_v44 }
  0xfb   :  { %6979 = vmatpush.bf16.msra.mxu0 %v11423_v51  ;;  %v6773_v11 = vpop.f32.mrf.mxu0  ;;  %v11510_v51 = vld [vmem:[#allocation5 + $0x8b8] sm:$0xff] }
  0xfc   :  { %6992 = vmatpush.bf16.msra.mxu1 %v11431_v52  ;;  %v6774_v12 = vadd.f32 %v6773_v11, %v12304_v39  ;;  %v6786_v15 = vpop.f32.mrf.mxu1  ;;  %v11518_v52 = vld [vmem:[#allocation5 + $0x8f8] sm:$0xff] }
  0xfd   :  { %7005 = vmatpush.bf16.msra.mxu2 %v11439_v55  ;;  %v1889_v55 = vpack.c.b16 %v1793_v47, %v1793_v47  ;;  %v11506_v11 = vld [vmem:[#allocation5 + $0x898] sm:$0xff]  ;;  %v11525_v47 = vld [vmem:[#allocation5 + $0x930] sm:$0xff] }
  0xfe   :  { %7018 = vmatpush.bf16.msra.mxu3 %v11447_v56  ;;  %6980 = vmatmul.bf16.vlgmr.msra.gmra.mxu0 %v1884_v63  ;;  %v6787_v18 = vadd.f32 %v6786_v15, %v6774_v12  ;;  %v1891_v56 = vpack.c.b16 %v1795_v48, %v1795_v48  ;;  %v11508_v63 = vld [vmem:[#allocation5 + $0x8a8] sm:$0xff]  ;;  %v11514_v12 = vld [vmem:[#allocation5 + $0x8d8] sm:$0xff]  ;;  %v11533_v48 = vld [vmem:[#allocation5 + $0x970] sm:$0xff] }
  0xff   :  { %7024 = vmatpush.bf16.msrb.mxu0 %v11462_v59  ;;  %6993 = vmatmul.bf16.vlgmr.msra.gmra.mxu1 %v1885_v1  ;;  %v11509_v59 = vld [vmem:[#allocation5 + $0x8b0] sm:$0xff] }
 0x100   :  { %7037 = vmatpush.bf16.msrb.mxu1 %v11470_v60  ;;  %7006 = vmatmul.bf16.vlgmr.msra.gmra.mxu2 %v1886_v0  ;;  %v11517_v60 = vld [vmem:[#allocation5 + $0x8f0] sm:$0xff]  ;;  %v11516_v0 = vld [vmem:[#allocation5 + $0x8e8] sm:$0xff] }
 0x101   :  { %7050 = vmatpush.bf16.msrb.mxu2 %v11478_v61  ;;  %7019 = vmatmul.bf16.vlgmr.msra.gmra.mxu3 %v1887_v2  ;;  %v11492_v61 = vld [vmem:[#allocation5 + $0x828] sm:$0xff] }
 0x102   :  { %7063 = vmatpush.bf16.msrb.mxu3 %v11486_v62  ;;  %v11500_v62 = vld [vmem:[#allocation5 + $0x868] sm:$0xff] }
 0x103   :  { %7025 = vmatpush.bf16.msrb.mxu0 %v11461_v3  ;;  %v6799_v23 = vpop.f32.mrf.mxu2  ;;  %v6775_v26 = vpop.f32.mrf.mxu0  ;;  %v11491_v3 = vld [vmem:[#allocation5 + $0x820] sm:$0xff] }
 0x104   :  { %7038 = vmatpush.bf16.msrb.mxu1 %v11469_v4  ;;  %v6800_v24 = vadd.f32 %v6799_v23, %v6787_v18  ;;  %v6812_v25 = vpop.f32.mrf.mxu3  ;;  %v6788_v30 = vpop.f32.mrf.mxu1  ;;  %v11499_v4 = vld [vmem:[#allocation5 + $0x860] sm:$0xff]  ;;  %v11489_v18 = vld [vmem:[#allocation5 + $0x810] sm:$0xff]  ;;  %v11488_v23 = vld [vmem:[#allocation5 + $0x808] sm:$0xff] }
 0x105   :  { %7051 = vmatpush.bf16.msrb.mxu2 %v11477_v5  ;;  %v11512_v26 = vld [vmem:[#allocation5 + $0x8c8] sm:$0xff] }
 0x106   :  { %7064 = vmatpush.bf16.msrb.mxu3 %v11485_v6  ;;  %v12307_v27 = vadd.f32 %v6812_v25, %v6800_v24  ;;  %v11507_v6 = vld [vmem:[#allocation5 + $0x8a0] sm:$0xff]  ;;  %v11496_v24 = vld [vmem:[#allocation5 + $0x848] sm:$0xff] }
 0x107   :  { %7026 = vmatpush.bf16.msrb.mxu0 %v11460_v7  ;;  %v11515_v7 = vld [vmem:[#allocation5 + $0x8e0] sm:$0xff]  ;;  %v11504_v25 = vld [vmem:[#allocation5 + $0x888] sm:$0xff] }
 0x108   :  { %7039 = vmatpush.bf16.msrb.mxu1 %v11468_v8 }
 0x109   :  { %7052 = vmatpush.bf16.msrb.mxu2 %v11476_v9  ;;  %v11490_v9 = vld [vmem:[#allocation5 + $0x818] sm:$0xff] }
 0x10a   :  { %7065 = vmatpush.bf16.msrb.mxu3 %v11484_v10  ;;  %v11498_v10 = vld [vmem:[#allocation5 + $0x858] sm:$0xff] }
 0x10b   :  { %7027 = vmatpush.bf16.msrb.mxu0 %v11459_v13  ;;  %v6801_v39 = vpop.f32.mrf.mxu2 }
 0x10c   :  { %7040 = vmatpush.bf16.msrb.mxu1 %v11467_v14  ;;  %v6814_v40 = vpop.f32.mrf.mxu3  ;;  %v11526_v39 = vld [vmem:[#allocation5 + $0x938] sm:$0xff] }
 0x10d   :  { %7053 = vmatpush.bf16.msrb.mxu2 %v11475_v16  ;;  %v11534_v40 = vld [vmem:[#allocation5 + $0x978] sm:$0xff] }
 0x10e   :  { %7066 = vmatpush.bf16.msrb.mxu3 %v11483_v17 }
 0x10f   :  { %7028 = vmatpush.bf16.msrb.mxu0 %v11458_v19  ;;  %v11497_v19 = vld [vmem:[#allocation5 + $0x850] sm:$0xff] }
 0x110   :  { %7041 = vmatpush.bf16.msrb.mxu1 %v11466_v20 }
 0x111   :  { %7054 = vmatpush.bf16.msrb.mxu2 %v11474_v21  ;;  %v11505_v21 = vld [vmem:[#allocation5 + $0x890] sm:$0xff] }
 0x112   :  { %7067 = vmatpush.bf16.msrb.mxu3 %v11482_v22  ;;  %v11513_v22 = vld [vmem:[#allocation5 + $0x8d0] sm:$0xff] }
 0x113   :  { %7029 = vmatpush.bf16.msrb.mxu0 %v11457_v28  ;;  %v145_v28 = vld [vmem:[#allocation2 + $0x88] sm:$0xff] }
 0x114   :  { %7042 = vmatpush.bf16.msrb.mxu1 %v11465_v29  ;;  %v1799_v38 = vunpack.c.h.b16 %v145_v28 }
 0x115   :  { %7055 = vmatpush.bf16.msrb.mxu2 %v11473_v31  ;;  %v11487_v31 = vld [vmem:[#allocation5 + $0x800] sm:$0xff] }
 0x116   :  { %7068 = vmatpush.bf16.msrb.mxu3 %v11481_v32  ;;  %v11495_v32 = vld [vmem:[#allocation5 + $0x840] sm:$0xff] }
 0x117   :  { %7030 = vmatpush.bf16.msrb.mxu0 %v11456_v33 }
 0x118   :  { %7043 = vmatpush.bf16.msrb.mxu1 %v11464_v34  ;;  %v1798_v34 = vunpack.c.l.b16 %v145_v28 }
 0x119   :  { %7056 = vmatpush.bf16.msrb.mxu2 %v11472_v35  ;;  %v11503_v35 = vld [vmem:[#allocation5 + $0x880] sm:$0xff] }
 0x11a   :  { %7069 = vmatpush.bf16.msrb.mxu3 %v11480_v36  ;;  %v11511_v36 = vld [vmem:[#allocation5 + $0x8c0] sm:$0xff]  ;;  %v1894_v44 = vpack.c.b16 %v1798_v34, %v1798_v34 }
 0x11b   :  { %7031 = vmatpush.bf16.msrb.mxu0 %v11455_v41  ;;  %v6825_v1 = vpop.f32.mrf.mxu0  ;;  %v11542_v41 = vld [vmem:[#allocation5 + $0x9b8] sm:$0xff] }
 0x11c   :  { %7044 = vmatpush.bf16.msrb.mxu1 %v11463_v42  ;;  %v6826_v2 = vadd.f32 %v6825_v1, %v12307_v27  ;;  %v6838_v5 = vpop.f32.mrf.mxu1  ;;  %v144_v27 = vld [vmem:[#allocation2 + $0x80] sm:$0xff]  ;;  %v11550_v42 = vld [vmem:[#allocation5 + $0x9f8] sm:$0xff] }
 0x11d   :  { %7057 = vmatpush.bf16.msrb.mxu2 %v11471_v45  ;;  %v1796_v33 = vunpack.c.l.b16 %v144_v27  ;;  %v1797_v37 = vunpack.c.h.b16 %v144_v27  ;;  %v11538_v1 = vld [vmem:[#allocation5 + $0x998] sm:$0xff] }
 0x11e   :  { %7070 = vmatpush.bf16.msrb.mxu3 %v11479_v46  ;;  %7032 = vmatmul.bf16.vlgmr.msrb.gmra.mxu0 %v1888_v53  ;;  %v6839_v8 = vadd.f32 %v6838_v5, %v6826_v2  ;;  %v1895_v46 = vpack.c.b16 %v1799_v38, %v1799_v38  ;;  %v11540_v53 = vld [vmem:[#allocation5 + $0x9a8] sm:$0xff]  ;;  %v11546_v2 = vld [vmem:[#allocation5 + $0x9d8] sm:$0xff]  ;;  %v11565_v38 = vld [vmem:[#allocation5 + $0xa70] sm:$0xff] }
 0x11f   :  { %7076 = vmatpush.bf16.msra.mxu0 %v11494_v49  ;;  %7045 = vmatmul.bf16.vlgmr.msrb.gmra.mxu1 %v1889_v55  ;;  %v1892_v43 = vpack.c.b16 %v1796_v33, %v1796_v33  ;;  %v1893_v45 = vpack.c.b16 %v1797_v37, %v1797_v37  ;;  %v11541_v49 = vld [vmem:[#allocation5 + $0x9b0] sm:$0xff] }
 0x120   :  { %7089 = vmatpush.bf16.msra.mxu1 %v11502_v50  ;;  %7058 = vmatmul.bf16.vlgmr.msrb.gmra.mxu2 %v1890_v54  ;;  %v11549_v50 = vld [vmem:[#allocation5 + $0x9f0] sm:$0xff]  ;;  %v11548_v54 = vld [vmem:[#allocation5 + $0x9e8] sm:$0xff] }
 0x121   :  { %7102 = vmatpush.bf16.msra.mxu2 %v11510_v51  ;;  %7071 = vmatmul.bf16.vlgmr.msrb.gmra.mxu3 %v1891_v56  ;;  %v11524_v51 = vld [vmem:[#allocation5 + $0x928] sm:$0xff]  ;;  %v11557_v37 = vld [vmem:[#allocation5 + $0xa30] sm:$0xff] }
 0x122   :  { %7115 = vmatpush.bf16.msra.mxu3 %v11518_v52  ;;  %v11532_v52 = vld [vmem:[#allocation5 + $0x968] sm:$0xff] }
 0x123   :  { %7077 = vmatpush.bf16.msra.mxu0 %v11493_v57  ;;  %v6851_v13 = vpop.f32.mrf.mxu2  ;;  %v6827_v16 = vpop.f32.mrf.mxu0  ;;  %v11523_v57 = vld [vmem:[#allocation5 + $0x920] sm:$0xff] }
 0x124   :  { %7090 = vmatpush.bf16.msra.mxu1 %v11501_v58  ;;  %v6852_v14 = vadd.f32 %v6851_v13, %v6839_v8  ;;  %v6864_v15 = vpop.f32.mrf.mxu3  ;;  %v6840_v20 = vpop.f32.mrf.mxu1  ;;  %v11531_v58 = vld [vmem:[#allocation5 + $0x960] sm:$0xff]  ;;  %v11521_v8 = vld [vmem:[#allocation5 + $0x910] sm:$0xff]  ;;  %v11520_v13 = vld [vmem:[#allocation5 + $0x908] sm:$0xff] }
 0x125   :  { %7103 = vmatpush.bf16.msra.mxu2 %v11509_v59  ;;  %v11544_v16 = vld [vmem:[#allocation5 + $0x9c8] sm:$0xff] }
 0x126   :  { %7116 = vmatpush.bf16.msra.mxu3 %v11517_v60  ;;  %v12310_v17 = vadd.f32 %v6864_v15, %v6852_v14  ;;  %v11539_v60 = vld [vmem:[#allocation5 + $0x9a0] sm:$0xff]  ;;  %v11528_v14 = vld [vmem:[#allocation5 + $0x948] sm:$0xff] }
 0x127   :  { %7078 = vmatpush.bf16.msra.mxu0 %v11492_v61  ;;  %v11547_v61 = vld [vmem:[#allocation5 + $0x9e0] sm:$0xff]  ;;  %v11536_v15 = vld [vmem:[#allocation5 + $0x988] sm:$0xff] }
 0x128   :  { %7091 = vmatpush.bf16.msra.mxu1 %v11500_v62 }
 0x129   :  { %7104 = vmatpush.bf16.msra.mxu2 %v11508_v63  ;;  %v11522_v63 = vld [vmem:[#allocation5 + $0x918] sm:$0xff] }
 0x12a   :  { %7117 = vmatpush.bf16.msra.mxu3 %v11516_v0  ;;  %v11530_v0 = vld [vmem:[#allocation5 + $0x958] sm:$0xff] }
 0x12b   :  { %7079 = vmatpush.bf16.msra.mxu0 %v11491_v3  ;;  %v6853_v29 = vpop.f32.mrf.mxu2 }
 0x12c   :  { %7092 = vmatpush.bf16.msra.mxu1 %v11499_v4  ;;  %v6866_v30 = vpop.f32.mrf.mxu3  ;;  %v11558_v29 = vld [vmem:[#allocation5 + $0xa38] sm:$0xff] }
 0x12d   :  { %7105 = vmatpush.bf16.msra.mxu2 %v11507_v6  ;;  %v11566_v30 = vld [vmem:[#allocation5 + $0xa78] sm:$0xff] }
 0x12e   :  { %7118 = vmatpush.bf16.msra.mxu3 %v11515_v7 }
 0x12f   :  { %7080 = vmatpush.bf16.msra.mxu0 %v11490_v9  ;;  %v11529_v9 = vld [vmem:[#allocation5 + $0x950] sm:$0xff] }
 0x130   :  { %7093 = vmatpush.bf16.msra.mxu1 %v11498_v10 }
 0x131   :  { %7106 = vmatpush.bf16.msra.mxu2 %v11506_v11  ;;  %v11537_v11 = vld [vmem:[#allocation5 + $0x990] sm:$0xff] }
 0x132   :  { %7119 = vmatpush.bf16.msra.mxu3 %v11514_v12  ;;  %v11545_v12 = vld [vmem:[#allocation5 + $0x9d0] sm:$0xff] }
 0x133   :  { %7081 = vmatpush.bf16.msra.mxu0 %v11489_v18  ;;  %v147_v18 = vld [vmem:[#allocation2 + $0x98] sm:$0xff] }
 0x134   :  { %7094 = vmatpush.bf16.msra.mxu1 %v11497_v19  ;;  %v1803_v28 = vunpack.c.h.b16 %v147_v18 }
 0x135   :  { %7107 = vmatpush.bf16.msra.mxu2 %v11505_v21  ;;  %v11519_v21 = vld [vmem:[#allocation5 + $0x900] sm:$0xff] }
 0x136   :  { %7120 = vmatpush.bf16.msra.mxu3 %v11513_v22  ;;  %v11527_v22 = vld [vmem:[#allocation5 + $0x940] sm:$0xff] }
 0x137   :  { %7082 = vmatpush.bf16.msra.mxu0 %v11488_v23 }
 0x138   :  { %7095 = vmatpush.bf16.msra.mxu1 %v11496_v24  ;;  %v1802_v24 = vunpack.c.l.b16 %v147_v18 }
 0x139   :  { %7108 = vmatpush.bf16.msra.mxu2 %v11504_v25  ;;  %v11535_v25 = vld [vmem:[#allocation5 + $0x980] sm:$0xff] }
 0x13a   :  { %7121 = vmatpush.bf16.msra.mxu3 %v11512_v26  ;;  %v11543_v26 = vld [vmem:[#allocation5 + $0x9c0] sm:$0xff]  ;;  %v1898_v34 = vpack.c.b16 %v1802_v24, %v1802_v24 }
 0x13b   :  { %7083 = vmatpush.bf16.msra.mxu0 %v11487_v31  ;;  %v6877_v55 = vpop.f32.mrf.mxu0  ;;  %v11574_v31 = vld [vmem:[#allocation5 + $0xab8] sm:$0xff] }
 0x13c   :  { %7096 = vmatpush.bf16.msra.mxu1 %v11495_v32  ;;  %v6878_v56 = vadd.f32 %v6877_v55, %v12310_v17  ;;  %v6890_v59 = vpop.f32.mrf.mxu1  ;;  %v146_v17 = vld [vmem:[#allocation2 + $0x90] sm:$0xff]  ;;  %v11582_v32 = vld [vmem:[#allocation5 + $0xaf8] sm:$0xff] }
 0x13d   :  { %7109 = vmatpush.bf16.msra.mxu2 %v11503_v35  ;;  %v1800_v23 = vunpack.c.l.b16 %v146_v17  ;;  %v1801_v27 = vunpack.c.h.b16 %v146_v17  ;;  %v11570_v55 = vld [vmem:[#allocation5 + $0xa98] sm:$0xff] }
 0x13e   :  { %7122 = vmatpush.bf16.msra.mxu3 %v11511_v36  ;;  %7084 = vmatmul.bf16.vlgmr.msra.gmra.mxu0 %v1892_v43  ;;  %v6891_v62 = vadd.f32 %v6890_v59, %v6878_v56  ;;  %v1899_v36 = vpack.c.b16 %v1803_v28, %v1803_v28  ;;  %v11572_v43 = vld [vmem:[#allocation5 + $0xaa8] sm:$0xff]  ;;  %v11578_v56 = vld [vmem:[#allocation5 + $0xad8] sm:$0xff]  ;;  %v11597_v28 = vld [vmem:[#allocation5 + $0xb70] sm:$0xff] }
 0x13f   :  { %7128 = vmatpush.bf16.msrb.mxu0 %v11526_v39  ;;  %7097 = vmatmul.bf16.vlgmr.msra.gmra.mxu1 %v1893_v45  ;;  %v1896_v33 = vpack.c.b16 %v1800_v23, %v1800_v23  ;;  %v1897_v35 = vpack.c.b16 %v1801_v27, %v1801_v27  ;;  %v11573_v39 = vld [vmem:[#allocation5 + $0xab0] sm:$0xff] }
 0x140   :  { %7141 = vmatpush.bf16.msrb.mxu1 %v11534_v40  ;;  %7110 = vmatmul.bf16.vlgmr.msra.gmra.mxu2 %v1894_v44  ;;  %v11581_v40 = vld [vmem:[#allocation5 + $0xaf0] sm:$0xff]  ;;  %v11580_v44 = vld [vmem:[#allocation5 + $0xae8] sm:$0xff] }
 0x141   :  { %7154 = vmatpush.bf16.msrb.mxu2 %v11542_v41  ;;  %7123 = vmatmul.bf16.vlgmr.msra.gmra.mxu3 %v1895_v46  ;;  %v11556_v41 = vld [vmem:[#allocation5 + $0xa28] sm:$0xff]  ;;  %v11589_v27 = vld [vmem:[#allocation5 + $0xb30] sm:$0xff] }
 0x142   :  { %7167 = vmatpush.bf16.msrb.mxu3 %v11550_v42  ;;  %v11564_v42 = vld [vmem:[#allocation5 + $0xa68] sm:$0xff] }
 0x143   :  { %7129 = vmatpush.bf16.msrb.mxu0 %v11525_v47  ;;  %v6903_v3 = vpop.f32.mrf.mxu2  ;;  %v6879_v6 = vpop.f32.mrf.mxu0  ;;  %v11555_v47 = vld [vmem:[#allocation5 + $0xa20] sm:$0xff] }
 0x144   :  { %7142 = vmatpush.bf16.msrb.mxu1 %v11533_v48  ;;  %v6904_v4 = vadd.f32 %v6903_v3, %v6891_v62  ;;  %v6916_v5 = vpop.f32.mrf.mxu3  ;;  %v6892_v10 = vpop.f32.mrf.mxu1  ;;  %v11563_v48 = vld [vmem:[#allocation5 + $0xa60] sm:$0xff]  ;;  %v11553_v62 = vld [vmem:[#allocation5 + $0xa10] sm:$0xff]  ;;  %v11552_v3 = vld [vmem:[#allocation5 + $0xa08] sm:$0xff] }
 0x145   :  { %7155 = vmatpush.bf16.msrb.mxu2 %v11541_v49  ;;  %v11576_v6 = vld [vmem:[#allocation5 + $0xac8] sm:$0xff] }
 0x146   :  { %7168 = vmatpush.bf16.msrb.mxu3 %v11549_v50  ;;  %v12313_v7 = vadd.f32 %v6916_v5, %v6904_v4  ;;  %v11571_v50 = vld [vmem:[#allocation5 + $0xaa0] sm:$0xff]  ;;  %v11560_v4 = vld [vmem:[#allocation5 + $0xa48] sm:$0xff] }
 0x147   :  { %7130 = vmatpush.bf16.msrb.mxu0 %v11524_v51  ;;  %v11579_v51 = vld [vmem:[#allocation5 + $0xae0] sm:$0xff]  ;;  %v11568_v5 = vld [vmem:[#allocation5 + $0xa88] sm:$0xff] }
 0x148   :  { %7143 = vmatpush.bf16.msrb.mxu1 %v11532_v52 }
 0x149   :  { %7156 = vmatpush.bf16.msrb.mxu2 %v11540_v53  ;;  %v11554_v53 = vld [vmem:[#allocation5 + $0xa18] sm:$0xff] }
 0x14a   :  { %7169 = vmatpush.bf16.msrb.mxu3 %v11548_v54  ;;  %v11562_v54 = vld [vmem:[#allocation5 + $0xa58] sm:$0xff] }
 0x14b   :  { %7131 = vmatpush.bf16.msrb.mxu0 %v11523_v57  ;;  %v6905_v19 = vpop.f32.mrf.mxu2 }
 0x14c   :  { %7144 = vmatpush.bf16.msrb.mxu1 %v11531_v58  ;;  %v6918_v20 = vpop.f32.mrf.mxu3  ;;  %v11590_v19 = vld [vmem:[#allocation5 + $0xb38] sm:$0xff] }
 0x14d   :  { %7157 = vmatpush.bf16.msrb.mxu2 %v11539_v60  ;;  %v11598_v20 = vld [vmem:[#allocation5 + $0xb78] sm:$0xff] }
 0x14e   :  { %7170 = vmatpush.bf16.msrb.mxu3 %v11547_v61 }
 0x14f   :  { %7132 = vmatpush.bf16.msrb.mxu0 %v11522_v63  ;;  %v11561_v63 = vld [vmem:[#allocation5 + $0xa50] sm:$0xff] }
 0x150   :  { %7145 = vmatpush.bf16.msrb.mxu1 %v11530_v0 }
 0x151   :  { %7158 = vmatpush.bf16.msrb.mxu2 %v11538_v1  ;;  %v11569_v1 = vld [vmem:[#allocation5 + $0xa90] sm:$0xff] }
 0x152   :  { %7171 = vmatpush.bf16.msrb.mxu3 %v11546_v2  ;;  %v11577_v2 = vld [vmem:[#allocation5 + $0xad0] sm:$0xff] }
 0x153   :  { %7133 = vmatpush.bf16.msrb.mxu0 %v11521_v8  ;;  %v149_v8 = vld [vmem:[#allocation2 + $0xa8] sm:$0xff] }
 0x154   :  { %7146 = vmatpush.bf16.msrb.mxu1 %v11529_v9  ;;  %v1807_v18 = vunpack.c.h.b16 %v149_v8 }
 0x155   :  { %7159 = vmatpush.bf16.msrb.mxu2 %v11537_v11  ;;  %v11551_v11 = vld [vmem:[#allocation5 + $0xa00] sm:$0xff] }
 0x156   :  { %7172 = vmatpush.bf16.msrb.mxu3 %v11545_v12  ;;  %v11559_v12 = vld [vmem:[#allocation5 + $0xa40] sm:$0xff] }
 0x157   :  { %7134 = vmatpush.bf16.msrb.mxu0 %v11520_v13 }
 0x158   :  { %7147 = vmatpush.bf16.msrb.mxu1 %v11528_v14  ;;  %v1806_v14 = vunpack.c.l.b16 %v149_v8 }
 0x159   :  { %7160 = vmatpush.bf16.msrb.mxu2 %v11536_v15  ;;  %v11567_v15 = vld [vmem:[#allocation5 + $0xa80] sm:$0xff] }
 0x15a   :  { %7173 = vmatpush.bf16.msrb.mxu3 %v11544_v16  ;;  %v11575_v16 = vld [vmem:[#allocation5 + $0xac0] sm:$0xff]  ;;  %v1902_v24 = vpack.c.b16 %v1806_v14, %v1806_v14 }
 0x15b   :  { %7135 = vmatpush.bf16.msrb.mxu0 %v11519_v21  ;;  %v6929_v45 = vpop.f32.mrf.mxu0  ;;  %v11606_v21 = vld [vmem:[#allocation5 + $0xbb8] sm:$0xff] }
 0x15c   :  { %7148 = vmatpush.bf16.msrb.mxu1 %v11527_v22  ;;  %v6930_v46 = vadd.f32 %v6929_v45, %v12313_v7  ;;  %v6942_v49 = vpop.f32.mrf.mxu1  ;;  %v148_v7 = vld [vmem:[#allocation2 + $0xa0] sm:$0xff]  ;;  %v11614_v22 = vld [vmem:[#allocation5 + $0xbf8] sm:$0xff] }
 0x15d   :  { %7161 = vmatpush.bf16.msrb.mxu2 %v11535_v25  ;;  %v1804_v13 = vunpack.c.l.b16 %v148_v7  ;;  %v1805_v17 = vunpack.c.h.b16 %v148_v7  ;;  %v11602_v45 = vld [vmem:[#allocation5 + $0xb98] sm:$0xff] }
 0x15e   :  { %7174 = vmatpush.bf16.msrb.mxu3 %v11543_v26  ;;  %7136 = vmatmul.bf16.vlgmr.msrb.gmra.mxu0 %v1896_v33  ;;  %v6943_v52 = vadd.f32 %v6942_v49, %v6930_v46  ;;  %v1903_v26 = vpack.c.b16 %v1807_v18, %v1807_v18  ;;  %v11604_v33 = vld [vmem:[#allocation5 + $0xba8] sm:$0xff]  ;;  %v11610_v46 = vld [vmem:[#allocation5 + $0xbd8] sm:$0xff]  ;;  %v11629_v18 = vld [vmem:[#allocation5 + $0xc70] sm:$0xff] }
 0x15f   :  { %7180 = vmatpush.bf16.msra.mxu0 %v11558_v29  ;;  %7149 = vmatmul.bf16.vlgmr.msrb.gmra.mxu1 %v1897_v35  ;;  %v1900_v23 = vpack.c.b16 %v1804_v13, %v1804_v13  ;;  %v1901_v25 = vpack.c.b16 %v1805_v17, %v1805_v17  ;;  %v11605_v29 = vld [vmem:[#allocation5 + $0xbb0] sm:$0xff] }
 0x160   :  { %7193 = vmatpush.bf16.msra.mxu1 %v11566_v30  ;;  %7162 = vmatmul.bf16.vlgmr.msrb.gmra.mxu2 %v1898_v34  ;;  %v11613_v30 = vld [vmem:[#allocation5 + $0xbf0] sm:$0xff]  ;;  %v11612_v34 = vld [vmem:[#allocation5 + $0xbe8] sm:$0xff] }
 0x161   :  { %7206 = vmatpush.bf16.msra.mxu2 %v11574_v31  ;;  %7175 = vmatmul.bf16.vlgmr.msrb.gmra.mxu3 %v1899_v36  ;;  %v11588_v31 = vld [vmem:[#allocation5 + $0xb28] sm:$0xff]  ;;  %v11621_v17 = vld [vmem:[#allocation5 + $0xc30] sm:$0xff] }
 0x162   :  { %7219 = vmatpush.bf16.msra.mxu3 %v11582_v32  ;;  %v11596_v32 = vld [vmem:[#allocation5 + $0xb68] sm:$0xff] }
 0x163   :  { %7181 = vmatpush.bf16.msra.mxu0 %v11557_v37  ;;  %v6955_v57 = vpop.f32.mrf.mxu2  ;;  %v6931_v60 = vpop.f32.mrf.mxu0  ;;  %v11587_v37 = vld [vmem:[#allocation5 + $0xb20] sm:$0xff] }
 0x164   :  { %7194 = vmatpush.bf16.msra.mxu1 %v11565_v38  ;;  %v6956_v58 = vadd.f32 %v6955_v57, %v6943_v52  ;;  %v6968_v59 = vpop.f32.mrf.mxu3  ;;  %v6944_v0 = vpop.f32.mrf.mxu1  ;;  %v11595_v38 = vld [vmem:[#allocation5 + $0xb60] sm:$0xff]  ;;  %v11585_v52 = vld [vmem:[#allocation5 + $0xb10] sm:$0xff]  ;;  %v11584_v57 = vld [vmem:[#allocation5 + $0xb08] sm:$0xff] }
 0x165   :  { %7207 = vmatpush.bf16.msra.mxu2 %v11573_v39  ;;  %v11608_v60 = vld [vmem:[#allocation5 + $0xbc8] sm:$0xff] }
 0x166   :  { %7220 = vmatpush.bf16.msra.mxu3 %v11581_v40  ;;  %v12316_v61 = vadd.f32 %v6968_v59, %v6956_v58  ;;  %v11603_v40 = vld [vmem:[#allocation5 + $0xba0] sm:$0xff]  ;;  %v11592_v58 = vld [vmem:[#allocation5 + $0xb48] sm:$0xff] }
 0x167   :  { %7182 = vmatpush.bf16.msra.mxu0 %v11556_v41  ;;  %v11611_v41 = vld [vmem:[#allocation5 + $0xbe0] sm:$0xff]  ;;  %v11600_v59 = vld [vmem:[#allocation5 + $0xb88] sm:$0xff] }
 0x168   :  { %7195 = vmatpush.bf16.msra.mxu1 %v11564_v42 }
 0x169   :  { %7208 = vmatpush.bf16.msra.mxu2 %v11572_v43  ;;  %v11586_v43 = vld [vmem:[#allocation5 + $0xb18] sm:$0xff] }
 0x16a   :  { %7221 = vmatpush.bf16.msra.mxu3 %v11580_v44  ;;  %v11594_v44 = vld [vmem:[#allocation5 + $0xb58] sm:$0xff] }
 0x16b   :  { %7183 = vmatpush.bf16.msra.mxu0 %v11555_v47  ;;  %v6957_v9 = vpop.f32.mrf.mxu2 }
 0x16c   :  { %7196 = vmatpush.bf16.msra.mxu1 %v11563_v48  ;;  %v6970_v10 = vpop.f32.mrf.mxu3  ;;  %v11622_v9 = vld [vmem:[#allocation5 + $0xc38] sm:$0xff] }
 0x16d   :  { %7209 = vmatpush.bf16.msra.mxu2 %v11571_v50  ;;  %v11630_v10 = vld [vmem:[#allocation5 + $0xc78] sm:$0xff] }
 0x16e   :  { %7222 = vmatpush.bf16.msra.mxu3 %v11579_v51 }
 0x16f   :  { %7184 = vmatpush.bf16.msra.mxu0 %v11554_v53  ;;  %v11593_v53 = vld [vmem:[#allocation5 + $0xb50] sm:$0xff] }
 0x170   :  { %7197 = vmatpush.bf16.msra.mxu1 %v11562_v54 }
 0x171   :  { %7210 = vmatpush.bf16.msra.mxu2 %v11570_v55  ;;  %v11601_v55 = vld [vmem:[#allocation5 + $0xb90] sm:$0xff] }
 0x172   :  { %7223 = vmatpush.bf16.msra.mxu3 %v11578_v56  ;;  %v11609_v56 = vld [vmem:[#allocation5 + $0xbd0] sm:$0xff] }
 0x173   :  { %7185 = vmatpush.bf16.msra.mxu0 %v11553_v62  ;;  %v151_v62 = vld [vmem:[#allocation2 + $0xb8] sm:$0xff] }
 0x174   :  { %7198 = vmatpush.bf16.msra.mxu1 %v11561_v63  ;;  %v1811_v8 = vunpack.c.h.b16 %v151_v62 }
 0x175   :  { %7211 = vmatpush.bf16.msra.mxu2 %v11569_v1  ;;  %v11583_v1 = vld [vmem:[#allocation5 + $0xb00] sm:$0xff] }
 0x176   :  { %7224 = vmatpush.bf16.msra.mxu3 %v11577_v2  ;;  %v11591_v2 = vld [vmem:[#allocation5 + $0xb40] sm:$0xff] }
 0x177   :  { %7186 = vmatpush.bf16.msra.mxu0 %v11552_v3 }
 0x178   :  { %7199 = vmatpush.bf16.msra.mxu1 %v11560_v4  ;;  %v1810_v4 = vunpack.c.l.b16 %v151_v62 }
 0x179   :  { %7212 = vmatpush.bf16.msra.mxu2 %v11568_v5  ;;  %v11599_v5 = vld [vmem:[#allocation5 + $0xb80] sm:$0xff] }
 0x17a   :  { %7225 = vmatpush.bf16.msra.mxu3 %v11576_v6  ;;  %v11607_v6 = vld [vmem:[#allocation5 + $0xbc0] sm:$0xff]  ;;  %v1906_v14 = vpack.c.b16 %v1810_v4, %v1810_v4 }
 0x17b   :  { %7187 = vmatpush.bf16.msra.mxu0 %v11551_v11  ;;  %v6981_v35 = vpop.f32.mrf.mxu0  ;;  %v11638_v11 = vld [vmem:[#allocation5 + $0xcb8] sm:$0xff] }
 0x17c   :  { %7200 = vmatpush.bf16.msra.mxu1 %v11559_v12  ;;  %v6982_v36 = vadd.f32 %v6981_v35, %v12316_v61  ;;  %v6994_v39 = vpop.f32.mrf.mxu1  ;;  %v150_v61 = vld [vmem:[#allocation2 + $0xb0] sm:$0xff]  ;;  %v11646_v12 = vld [vmem:[#allocation5 + $0xcf8] sm:$0xff] }
 0x17d   :  { %7213 = vmatpush.bf16.msra.mxu2 %v11567_v15  ;;  %v1808_v3 = vunpack.c.l.b16 %v150_v61  ;;  %v1809_v7 = vunpack.c.h.b16 %v150_v61  ;;  %v11634_v35 = vld [vmem:[#allocation5 + $0xc98] sm:$0xff] }
 0x17e   :  { %7226 = vmatpush.bf16.msra.mxu3 %v11575_v16  ;;  %7188 = vmatmul.bf16.vlgmr.msra.gmra.mxu0 %v1900_v23  ;;  %v6995_v42 = vadd.f32 %v6994_v39, %v6982_v36  ;;  %v1907_v16 = vpack.c.b16 %v1811_v8, %v1811_v8  ;;  %v11636_v23 = vld [vmem:[#allocation5 + $0xca8] sm:$0xff]  ;;  %v11642_v36 = vld [vmem:[#allocation5 + $0xcd8] sm:$0xff]  ;;  %v11661_v8 = vld [vmem:[#allocation5 + $0xd70] sm:$0xff] }
 0x17f   :  { %7232 = vmatpush.bf16.msrb.mxu0 %v11590_v19  ;;  %7201 = vmatmul.bf16.vlgmr.msra.gmra.mxu1 %v1901_v25  ;;  %v1904_v13 = vpack.c.b16 %v1808_v3, %v1808_v3  ;;  %v1905_v15 = vpack.c.b16 %v1809_v7, %v1809_v7  ;;  %v11637_v19 = vld [vmem:[#allocation5 + $0xcb0] sm:$0xff] }
 0x180   :  { %7245 = vmatpush.bf16.msrb.mxu1 %v11598_v20  ;;  %7214 = vmatmul.bf16.vlgmr.msra.gmra.mxu2 %v1902_v24  ;;  %v11645_v20 = vld [vmem:[#allocation5 + $0xcf0] sm:$0xff]  ;;  %v11644_v24 = vld [vmem:[#allocation5 + $0xce8] sm:$0xff] }
 0x181   :  { %7258 = vmatpush.bf16.msrb.mxu2 %v11606_v21  ;;  %7227 = vmatmul.bf16.vlgmr.msra.gmra.mxu3 %v1903_v26  ;;  %v11620_v21 = vld [vmem:[#allocation5 + $0xc28] sm:$0xff]  ;;  %v11653_v7 = vld [vmem:[#allocation5 + $0xd30] sm:$0xff] }
 0x182   :  { %7271 = vmatpush.bf16.msrb.mxu3 %v11614_v22  ;;  %v11628_v22 = vld [vmem:[#allocation5 + $0xc68] sm:$0xff] }
 0x183   :  { %7233 = vmatpush.bf16.msrb.mxu0 %v11589_v27  ;;  %v7007_v47 = vpop.f32.mrf.mxu2  ;;  %v6983_v50 = vpop.f32.mrf.mxu0  ;;  %v11619_v27 = vld [vmem:[#allocation5 + $0xc20] sm:$0xff] }
 0x184   :  { %7246 = vmatpush.bf16.msrb.mxu1 %v11597_v28  ;;  %v7008_v48 = vadd.f32 %v7007_v47, %v6995_v42  ;;  %v7020_v49 = vpop.f32.mrf.mxu3  ;;  %v6996_v54 = vpop.f32.mrf.mxu1  ;;  %v11627_v28 = vld [vmem:[#allocation5 + $0xc60] sm:$0xff]  ;;  %v11617_v42 = vld [vmem:[#allocation5 + $0xc10] sm:$0xff]  ;;  %v11616_v47 = vld [vmem:[#allocation5 + $0xc08] sm:$0xff] }
 0x185   :  { %7259 = vmatpush.bf16.msrb.mxu2 %v11605_v29  ;;  %v11640_v50 = vld [vmem:[#allocation5 + $0xcc8] sm:$0xff] }
 0x186   :  { %7272 = vmatpush.bf16.msrb.mxu3 %v11613_v30  ;;  %v12319_v51 = vadd.f32 %v7020_v49, %v7008_v48  ;;  %v11635_v30 = vld [vmem:[#allocation5 + $0xca0] sm:$0xff]  ;;  %v11624_v48 = vld [vmem:[#allocation5 + $0xc48] sm:$0xff] }
 0x187   :  { %7234 = vmatpush.bf16.msrb.mxu0 %v11588_v31  ;;  %v11643_v31 = vld [vmem:[#allocation5 + $0xce0] sm:$0xff]  ;;  %v11632_v49 = vld [vmem:[#allocation5 + $0xc88] sm:$0xff] }
 0x188   :  { %7247 = vmatpush.bf16.msrb.mxu1 %v11596_v32 }
 0x189   :  { %7260 = vmatpush.bf16.msrb.mxu2 %v11604_v33  ;;  %v11618_v33 = vld [vmem:[#allocation5 + $0xc18] sm:$0xff] }
 0x18a   :  { %7273 = vmatpush.bf16.msrb.mxu3 %v11612_v34  ;;  %v11626_v34 = vld [vmem:[#allocation5 + $0xc58] sm:$0xff] }
 0x18b   :  { %7235 = vmatpush.bf16.msrb.mxu0 %v11587_v37  ;;  %v7009_v63 = vpop.f32.mrf.mxu2 }
 0x18c   :  { %7248 = vmatpush.bf16.msrb.mxu1 %v11595_v38  ;;  %v7022_v0 = vpop.f32.mrf.mxu3  ;;  %v11654_v63 = vld [vmem:[#allocation5 + $0xd38] sm:$0xff] }
 0x18d   :  { %7261 = vmatpush.bf16.msrb.mxu2 %v11603_v40  ;;  %v11662_v0 = vld [vmem:[#allocation5 + $0xd78] sm:$0xff] }
 0x18e   :  { %7274 = vmatpush.bf16.msrb.mxu3 %v11611_v41 }
 0x18f   :  { %7236 = vmatpush.bf16.msrb.mxu0 %v11586_v43  ;;  %v11625_v43 = vld [vmem:[#allocation5 + $0xc50] sm:$0xff] }
 0x190   :  { %7249 = vmatpush.bf16.msrb.mxu1 %v11594_v44 }
 0x191   :  { %7262 = vmatpush.bf16.msrb.mxu2 %v11602_v45  ;;  %v11633_v45 = vld [vmem:[#allocation5 + $0xc90] sm:$0xff] }
 0x192   :  { %7275 = vmatpush.bf16.msrb.mxu3 %v11610_v46  ;;  %v11641_v46 = vld [vmem:[#allocation5 + $0xcd0] sm:$0xff] }
 0x193   :  { %7237 = vmatpush.bf16.msrb.mxu0 %v11585_v52  ;;  %v153_v52 = vld [vmem:[#allocation2 + $0xc8] sm:$0xff] }
 0x194   :  { %7250 = vmatpush.bf16.msrb.mxu1 %v11593_v53  ;;  %v1815_v62 = vunpack.c.h.b16 %v153_v52 }
 0x195   :  { %7263 = vmatpush.bf16.msrb.mxu2 %v11601_v55  ;;  %v11615_v55 = vld [vmem:[#allocation5 + $0xc00] sm:$0xff] }
 0x196   :  { %7276 = vmatpush.bf16.msrb.mxu3 %v11609_v56  ;;  %v11623_v56 = vld [vmem:[#allocation5 + $0xc40] sm:$0xff] }
 0x197   :  { %7238 = vmatpush.bf16.msrb.mxu0 %v11584_v57 }
 0x198   :  { %7251 = vmatpush.bf16.msrb.mxu1 %v11592_v58  ;;  %v1814_v58 = vunpack.c.l.b16 %v153_v52 }
 0x199   :  { %7264 = vmatpush.bf16.msrb.mxu2 %v11600_v59  ;;  %v11631_v59 = vld [vmem:[#allocation5 + $0xc80] sm:$0xff] }
 0x19a   :  { %7277 = vmatpush.bf16.msrb.mxu3 %v11608_v60  ;;  %v11639_v60 = vld [vmem:[#allocation5 + $0xcc0] sm:$0xff]  ;;  %v1910_v4 = vpack.c.b16 %v1814_v58, %v1814_v58 }
 0x19b   :  { %7239 = vmatpush.bf16.msrb.mxu0 %v11583_v1  ;;  %v7033_v25 = vpop.f32.mrf.mxu0  ;;  %v11670_v1 = vld [vmem:[#allocation5 + $0xdb8] sm:$0xff] }
 0x19c   :  { %7252 = vmatpush.bf16.msrb.mxu1 %v11591_v2  ;;  %v7034_v26 = vadd.f32 %v7033_v25, %v12319_v51  ;;  %v7046_v29 = vpop.f32.mrf.mxu1  ;;  %v152_v51 = vld [vmem:[#allocation2 + $0xc0] sm:$0xff]  ;;  %v11678_v2 = vld [vmem:[#allocation5 + $0xdf8] sm:$0xff] }
 0x19d   :  { %7265 = vmatpush.bf16.msrb.mxu2 %v11599_v5  ;;  %v1812_v57 = vunpack.c.l.b16 %v152_v51  ;;  %v1813_v61 = vunpack.c.h.b16 %v152_v51  ;;  %v11666_v25 = vld [vmem:[#allocation5 + $0xd98] sm:$0xff] }
 0x19e   :  { %7278 = vmatpush.bf16.msrb.mxu3 %v11607_v6  ;;  %7240 = vmatmul.bf16.vlgmr.msrb.gmra.mxu0 %v1904_v13  ;;  %v7047_v32 = vadd.f32 %v7046_v29, %v7034_v26  ;;  %v1911_v6 = vpack.c.b16 %v1815_v62, %v1815_v62  ;;  %v11668_v13 = vld [vmem:[#allocation5 + $0xda8] sm:$0xff]  ;;  %v11674_v26 = vld [vmem:[#allocation5 + $0xdd8] sm:$0xff]  ;;  %v11693_v62 = vld [vmem:[#allocation5 + $0xe70] sm:$0xff] }
 0x19f   :  { %7284 = vmatpush.bf16.msra.mxu0 %v11622_v9  ;;  %7253 = vmatmul.bf16.vlgmr.msrb.gmra.mxu1 %v1905_v15  ;;  %v1908_v3 = vpack.c.b16 %v1812_v57, %v1812_v57  ;;  %v1909_v5 = vpack.c.b16 %v1813_v61, %v1813_v61  ;;  %v11669_v9 = vld [vmem:[#allocation5 + $0xdb0] sm:$0xff] }
 0x1a0   :  { %7297 = vmatpush.bf16.msra.mxu1 %v11630_v10  ;;  %7266 = vmatmul.bf16.vlgmr.msrb.gmra.mxu2 %v1906_v14  ;;  %v11677_v10 = vld [vmem:[#allocation5 + $0xdf0] sm:$0xff]  ;;  %v11676_v14 = vld [vmem:[#allocation5 + $0xde8] sm:$0xff] }
 0x1a1   :  { %7310 = vmatpush.bf16.msra.mxu2 %v11638_v11  ;;  %7279 = vmatmul.bf16.vlgmr.msrb.gmra.mxu3 %v1907_v16  ;;  %v11652_v11 = vld [vmem:[#allocation5 + $0xd28] sm:$0xff]  ;;  %v11685_v61 = vld [vmem:[#allocation5 + $0xe30] sm:$0xff] }
 0x1a2   :  { %7323 = vmatpush.bf16.msra.mxu3 %v11646_v12  ;;  %v11660_v12 = vld [vmem:[#allocation5 + $0xd68] sm:$0xff] }
 0x1a3   :  { %7285 = vmatpush.bf16.msra.mxu0 %v11621_v17  ;;  %v7059_v37 = vpop.f32.mrf.mxu2  ;;  %v7035_v40 = vpop.f32.mrf.mxu0  ;;  %v11651_v17 = vld [vmem:[#allocation5 + $0xd20] sm:$0xff] }
 0x1a4   :  { %7298 = vmatpush.bf16.msra.mxu1 %v11629_v18  ;;  %v7060_v38 = vadd.f32 %v7059_v37, %v7047_v32  ;;  %v7072_v39 = vpop.f32.mrf.mxu3  ;;  %v7048_v44 = vpop.f32.mrf.mxu1  ;;  %v11659_v18 = vld [vmem:[#allocation5 + $0xd60] sm:$0xff]  ;;  %v11649_v32 = vld [vmem:[#allocation5 + $0xd10] sm:$0xff]  ;;  %v11648_v37 = vld [vmem:[#allocation5 + $0xd08] sm:$0xff] }
 0x1a5   :  { %7311 = vmatpush.bf16.msra.mxu2 %v11637_v19  ;;  %v11672_v40 = vld [vmem:[#allocation5 + $0xdc8] sm:$0xff] }
 0x1a6   :  { %7324 = vmatpush.bf16.msra.mxu3 %v11645_v20  ;;  %v12322_v41 = vadd.f32 %v7072_v39, %v7060_v38  ;;  %v11667_v20 = vld [vmem:[#allocation5 + $0xda0] sm:$0xff]  ;;  %v11656_v38 = vld [vmem:[#allocation5 + $0xd48] sm:$0xff] }
 0x1a7   :  { %7286 = vmatpush.bf16.msra.mxu0 %v11620_v21  ;;  %v11675_v21 = vld [vmem:[#allocation5 + $0xde0] sm:$0xff]  ;;  %v11664_v39 = vld [vmem:[#allocation5 + $0xd88] sm:$0xff] }
 0x1a8   :  { %7299 = vmatpush.bf16.msra.mxu1 %v11628_v22 }
 0x1a9   :  { %7312 = vmatpush.bf16.msra.mxu2 %v11636_v23  ;;  %v11650_v23 = vld [vmem:[#allocation5 + $0xd18] sm:$0xff] }
 0x1aa   :  { %7325 = vmatpush.bf16.msra.mxu3 %v11644_v24  ;;  %v11658_v24 = vld [vmem:[#allocation5 + $0xd58] sm:$0xff] }
 0x1ab   :  { %7287 = vmatpush.bf16.msra.mxu0 %v11619_v27  ;;  %v7061_v53 = vpop.f32.mrf.mxu2 }
 0x1ac   :  { %7300 = vmatpush.bf16.msra.mxu1 %v11627_v28  ;;  %v7074_v54 = vpop.f32.mrf.mxu3  ;;  %v11686_v53 = vld [vmem:[#allocation5 + $0xe38] sm:$0xff] }
 0x1ad   :  { %7313 = vmatpush.bf16.msra.mxu2 %v11635_v30  ;;  %v11694_v54 = vld [vmem:[#allocation5 + $0xe78] sm:$0xff] }
 0x1ae   :  { %7326 = vmatpush.bf16.msra.mxu3 %v11643_v31 }
 0x1af   :  { %7288 = vmatpush.bf16.msra.mxu0 %v11618_v33  ;;  %v11657_v33 = vld [vmem:[#allocation5 + $0xd50] sm:$0xff] }
 0x1b0   :  { %7301 = vmatpush.bf16.msra.mxu1 %v11626_v34 }
 0x1b1   :  { %7314 = vmatpush.bf16.msra.mxu2 %v11634_v35  ;;  %v11665_v35 = vld [vmem:[#allocation5 + $0xd90] sm:$0xff] }
 0x1b2   :  { %7327 = vmatpush.bf16.msra.mxu3 %v11642_v36  ;;  %v11673_v36 = vld [vmem:[#allocation5 + $0xdd0] sm:$0xff] }
 0x1b3   :  { %7289 = vmatpush.bf16.msra.mxu0 %v11617_v42  ;;  %v155_v42 = vld [vmem:[#allocation2 + $0xd8] sm:$0xff] }
 0x1b4   :  { %7302 = vmatpush.bf16.msra.mxu1 %v11625_v43  ;;  %v1819_v52 = vunpack.c.h.b16 %v155_v42 }
 0x1b5   :  { %7315 = vmatpush.bf16.msra.mxu2 %v11633_v45  ;;  %v11647_v45 = vld [vmem:[#allocation5 + $0xd00] sm:$0xff] }
 0x1b6   :  { %7328 = vmatpush.bf16.msra.mxu3 %v11641_v46  ;;  %v11655_v46 = vld [vmem:[#allocation5 + $0xd40] sm:$0xff] }
 0x1b7   :  { %7290 = vmatpush.bf16.msra.mxu0 %v11616_v47 }
 0x1b8   :  { %7303 = vmatpush.bf16.msra.mxu1 %v11624_v48  ;;  %v1818_v48 = vunpack.c.l.b16 %v155_v42 }
 0x1b9   :  { %7316 = vmatpush.bf16.msra.mxu2 %v11632_v49  ;;  %v11663_v49 = vld [vmem:[#allocation5 + $0xd80] sm:$0xff] }
 0x1ba   :  { %7329 = vmatpush.bf16.msra.mxu3 %v11640_v50  ;;  %v11671_v50 = vld [vmem:[#allocation5 + $0xdc0] sm:$0xff]  ;;  %v1914_v58 = vpack.c.b16 %v1818_v48, %v1818_v48 }
 0x1bb   :  { %7291 = vmatpush.bf16.msra.mxu0 %v11615_v55  ;;  %v7085_v15 = vpop.f32.mrf.mxu0  ;;  %v11702_v55 = vld [vmem:[#allocation5 + $0xeb8] sm:$0xff] }
 0x1bc   :  { %7304 = vmatpush.bf16.msra.mxu1 %v11623_v56  ;;  %v7086_v16 = vadd.f32 %v7085_v15, %v12322_v41  ;;  %v7098_v19 = vpop.f32.mrf.mxu1  ;;  %v154_v41 = vld [vmem:[#allocation2 + $0xd0] sm:$0xff]  ;;  %v11710_v56 = vld [vmem:[#allocation5 + $0xef8] sm:$0xff] }
 0x1bd   :  { %7317 = vmatpush.bf16.msra.mxu2 %v11631_v59  ;;  %v1816_v47 = vunpack.c.l.b16 %v154_v41  ;;  %v1817_v51 = vunpack.c.h.b16 %v154_v41  ;;  %v11698_v15 = vld [vmem:[#allocation5 + $0xe98] sm:$0xff] }
 0x1be   :  { %7330 = vmatpush.bf16.msra.mxu3 %v11639_v60  ;;  %7292 = vmatmul.bf16.vlgmr.msra.gmra.mxu0 %v1908_v3  ;;  %v7099_v22 = vadd.f32 %v7098_v19, %v7086_v16  ;;  %v1915_v60 = vpack.c.b16 %v1819_v52, %v1819_v52  ;;  %v11700_v3 = vld [vmem:[#allocation5 + $0xea8] sm:$0xff]  ;;  %v11706_v16 = vld [vmem:[#allocation5 + $0xed8] sm:$0xff]  ;;  %v11725_v52 = vld [vmem:[#allocation5 + $0xf70] sm:$0xff] }
 0x1bf   :  { %7336 = vmatpush.bf16.msrb.mxu0 %v11654_v63  ;;  %7305 = vmatmul.bf16.vlgmr.msra.gmra.mxu1 %v1909_v5  ;;  %v1912_v57 = vpack.c.b16 %v1816_v47, %v1816_v47  ;;  %v1913_v59 = vpack.c.b16 %v1817_v51, %v1817_v51  ;;  %v11701_v63 = vld [vmem:[#allocation5 + $0xeb0] sm:$0xff] }
 0x1c0   :  { %7349 = vmatpush.bf16.msrb.mxu1 %v11662_v0  ;;  %7318 = vmatmul.bf16.vlgmr.msra.gmra.mxu2 %v1910_v4  ;;  %v11709_v0 = vld [vmem:[#allocation5 + $0xef0] sm:$0xff]  ;;  %v11708_v4 = vld [vmem:[#allocation5 + $0xee8] sm:$0xff] }
 0x1c1   :  { %7362 = vmatpush.bf16.msrb.mxu2 %v11670_v1  ;;  %7331 = vmatmul.bf16.vlgmr.msra.gmra.mxu3 %v1911_v6  ;;  %v11684_v1 = vld [vmem:[#allocation5 + $0xe28] sm:$0xff]  ;;  %v11717_v51 = vld [vmem:[#allocation5 + $0xf30] sm:$0xff] }
 0x1c2   :  { %7375 = vmatpush.bf16.msrb.mxu3 %v11678_v2  ;;  %v11692_v2 = vld [vmem:[#allocation5 + $0xe68] sm:$0xff] }
 0x1c3   :  { %7337 = vmatpush.bf16.msrb.mxu0 %v11653_v7  ;;  %v7111_v27 = vpop.f32.mrf.mxu2  ;;  %v7087_v30 = vpop.f32.mrf.mxu0  ;;  %v11683_v7 = vld [vmem:[#allocation5 + $0xe20] sm:$0xff] }
 0x1c4   :  { %7350 = vmatpush.bf16.msrb.mxu1 %v11661_v8  ;;  %v7112_v28 = vadd.f32 %v7111_v27, %v7099_v22  ;;  %v7124_v29 = vpop.f32.mrf.mxu3  ;;  %v7100_v34 = vpop.f32.mrf.mxu1  ;;  %v11691_v8 = vld [vmem:[#allocation5 + $0xe60] sm:$0xff]  ;;  %v11681_v22 = vld [vmem:[#allocation5 + $0xe10] sm:$0xff]  ;;  %v11680_v27 = vld [vmem:[#allocation5 + $0xe08] sm:$0xff] }
 0x1c5   :  { %7363 = vmatpush.bf16.msrb.mxu2 %v11669_v9  ;;  %v11704_v30 = vld [vmem:[#allocation5 + $0xec8] sm:$0xff] }
 0x1c6   :  { %7376 = vmatpush.bf16.msrb.mxu3 %v11677_v10  ;;  %v12325_v31 = vadd.f32 %v7124_v29, %v7112_v28  ;;  %v11699_v10 = vld [vmem:[#allocation5 + $0xea0] sm:$0xff]  ;;  %v11688_v28 = vld [vmem:[#allocation5 + $0xe48] sm:$0xff] }
 0x1c7   :  { %7338 = vmatpush.bf16.msrb.mxu0 %v11652_v11  ;;  %v11707_v11 = vld [vmem:[#allocation5 + $0xee0] sm:$0xff]  ;;  %v11696_v29 = vld [vmem:[#allocation5 + $0xe88] sm:$0xff] }
 0x1c8   :  { %7351 = vmatpush.bf16.msrb.mxu1 %v11660_v12 }
 0x1c9   :  { %7364 = vmatpush.bf16.msrb.mxu2 %v11668_v13  ;;  %v11682_v13 = vld [vmem:[#allocation5 + $0xe18] sm:$0xff] }
 0x1ca   :  { %7377 = vmatpush.bf16.msrb.mxu3 %v11676_v14  ;;  %v11690_v14 = vld [vmem:[#allocation5 + $0xe58] sm:$0xff] }
 0x1cb   :  { %7339 = vmatpush.bf16.msrb.mxu0 %v11651_v17  ;;  %v7113_v43 = vpop.f32.mrf.mxu2 }
 0x1cc   :  { %7352 = vmatpush.bf16.msrb.mxu1 %v11659_v18  ;;  %v7126_v44 = vpop.f32.mrf.mxu3  ;;  %v11718_v43 = vld [vmem:[#allocation5 + $0xf38] sm:$0xff] }
 0x1cd   :  { %7365 = vmatpush.bf16.msrb.mxu2 %v11667_v20  ;;  %v11726_v44 = vld [vmem:[#allocation5 + $0xf78] sm:$0xff] }
 0x1ce   :  { %7378 = vmatpush.bf16.msrb.mxu3 %v11675_v21 }
 0x1cf   :  { %7340 = vmatpush.bf16.msrb.mxu0 %v11650_v23  ;;  %v11689_v23 = vld [vmem:[#allocation5 + $0xe50] sm:$0xff] }
 0x1d0   :  { %7353 = vmatpush.bf16.msrb.mxu1 %v11658_v24 }
 0x1d1   :  { %7366 = vmatpush.bf16.msrb.mxu2 %v11666_v25  ;;  %v11697_v25 = vld [vmem:[#allocation5 + $0xe90] sm:$0xff] }
 0x1d2   :  { %7379 = vmatpush.bf16.msrb.mxu3 %v11674_v26  ;;  %v11705_v26 = vld [vmem:[#allocation5 + $0xed0] sm:$0xff] }
 0x1d3   :  { %7341 = vmatpush.bf16.msrb.mxu0 %v11649_v32  ;;  %v157_v32 = vld [vmem:[#allocation2 + $0xe8] sm:$0xff] }
 0x1d4   :  { %7354 = vmatpush.bf16.msrb.mxu1 %v11657_v33  ;;  %v1823_v42 = vunpack.c.h.b16 %v157_v32 }
 0x1d5   :  { %7367 = vmatpush.bf16.msrb.mxu2 %v11665_v35  ;;  %v11679_v35 = vld [vmem:[#allocation5 + $0xe00] sm:$0xff] }
 0x1d6   :  { %7380 = vmatpush.bf16.msrb.mxu3 %v11673_v36  ;;  %v11687_v36 = vld [vmem:[#allocation5 + $0xe40] sm:$0xff] }
 0x1d7   :  { %7342 = vmatpush.bf16.msrb.mxu0 %v11648_v37 }
 0x1d8   :  { %7355 = vmatpush.bf16.msrb.mxu1 %v11656_v38  ;;  %v1822_v38 = vunpack.c.l.b16 %v157_v32 }
 0x1d9   :  { %7368 = vmatpush.bf16.msrb.mxu2 %v11664_v39  ;;  %v11695_v39 = vld [vmem:[#allocation5 + $0xe80] sm:$0xff] }
 0x1da   :  { %7381 = vmatpush.bf16.msrb.mxu3 %v11672_v40  ;;  %v11703_v40 = vld [vmem:[#allocation5 + $0xec0] sm:$0xff]  ;;  %v1918_v48 = vpack.c.b16 %v1822_v38, %v1822_v38 }
 0x1db   :  { %7343 = vmatpush.bf16.msrb.mxu0 %v11647_v45  ;;  %v7137_v5 = vpop.f32.mrf.mxu0  ;;  %v11734_v45 = vld [vmem:[#allocation5 + $0xfb8] sm:$0xff] }
 0x1dc   :  { %7356 = vmatpush.bf16.msrb.mxu1 %v11655_v46  ;;  %v7138_v6 = vadd.f32 %v7137_v5, %v12325_v31  ;;  %v7150_v9 = vpop.f32.mrf.mxu1  ;;  %v156_v31 = vld [vmem:[#allocation2 + $0xe0] sm:$0xff]  ;;  %v11742_v46 = vld [vmem:[#allocation5 + $0xff8] sm:$0xff] }
 0x1dd   :  { %7369 = vmatpush.bf16.msrb.mxu2 %v11663_v49  ;;  %v1820_v37 = vunpack.c.l.b16 %v156_v31  ;;  %v1821_v41 = vunpack.c.h.b16 %v156_v31  ;;  %v11730_v5 = vld [vmem:[#allocation5 + $0xf98] sm:$0xff] }
 0x1de   :  { %7382 = vmatpush.bf16.msrb.mxu3 %v11671_v50  ;;  %7344 = vmatmul.bf16.vlgmr.msrb.gmra.mxu0 %v1912_v57  ;;  %v7151_v12 = vadd.f32 %v7150_v9, %v7138_v6  ;;  %v1919_v50 = vpack.c.b16 %v1823_v42, %v1823_v42  ;;  %v11732_v57 = vld [vmem:[#allocation5 + $0xfa8] sm:$0xff]  ;;  %v11738_v6 = vld [vmem:[#allocation5 + $0xfd8] sm:$0xff]  ;;  %v11757_v42 = vld [vmem:[#allocation5 + $0x1070] sm:$0xff] }
 0x1df   :  { %7388 = vmatpush.bf16.msra.mxu0 %v11686_v53  ;;  %7357 = vmatmul.bf16.vlgmr.msrb.gmra.mxu1 %v1913_v59  ;;  %v1916_v47 = vpack.c.b16 %v1820_v37, %v1820_v37  ;;  %v1917_v49 = vpack.c.b16 %v1821_v41, %v1821_v41  ;;  %v11733_v53 = vld [vmem:[#allocation5 + $0xfb0] sm:$0xff] }
 0x1e0   :  { %7401 = vmatpush.bf16.msra.mxu1 %v11694_v54  ;;  %7370 = vmatmul.bf16.vlgmr.msrb.gmra.mxu2 %v1914_v58  ;;  %v11741_v54 = vld [vmem:[#allocation5 + $0xff0] sm:$0xff]  ;;  %v11740_v58 = vld [vmem:[#allocation5 + $0xfe8] sm:$0xff] }
 0x1e1   :  { %7414 = vmatpush.bf16.msra.mxu2 %v11702_v55  ;;  %7383 = vmatmul.bf16.vlgmr.msrb.gmra.mxu3 %v1915_v60  ;;  %v11716_v55 = vld [vmem:[#allocation5 + $0xf28] sm:$0xff]  ;;  %v11749_v41 = vld [vmem:[#allocation5 + $0x1030] sm:$0xff] }
 0x1e2   :  { %7427 = vmatpush.bf16.msra.mxu3 %v11710_v56  ;;  %v11724_v56 = vld [vmem:[#allocation5 + $0xf68] sm:$0xff] }
 0x1e3   :  { %7389 = vmatpush.bf16.msra.mxu0 %v11685_v61  ;;  %v7163_v17 = vpop.f32.mrf.mxu2  ;;  %v7139_v20 = vpop.f32.mrf.mxu0  ;;  %v11715_v61 = vld [vmem:[#allocation5 + $0xf20] sm:$0xff] }
 0x1e4   :  { %7402 = vmatpush.bf16.msra.mxu1 %v11693_v62  ;;  %v7164_v18 = vadd.f32 %v7163_v17, %v7151_v12  ;;  %v7176_v19 = vpop.f32.mrf.mxu3  ;;  %v7152_v24 = vpop.f32.mrf.mxu1  ;;  %v11723_v62 = vld [vmem:[#allocation5 + $0xf60] sm:$0xff]  ;;  %v11713_v12 = vld [vmem:[#allocation5 + $0xf10] sm:$0xff]  ;;  %v11712_v17 = vld [vmem:[#allocation5 + $0xf08] sm:$0xff] }
 0x1e5   :  { %7415 = vmatpush.bf16.msra.mxu2 %v11701_v63  ;;  %v11736_v20 = vld [vmem:[#allocation5 + $0xfc8] sm:$0xff] }
 0x1e6   :  { %7428 = vmatpush.bf16.msra.mxu3 %v11709_v0  ;;  %v12328_v21 = vadd.f32 %v7176_v19, %v7164_v18  ;;  %v11731_v0 = vld [vmem:[#allocation5 + $0xfa0] sm:$0xff]  ;;  %v11720_v18 = vld [vmem:[#allocation5 + $0xf48] sm:$0xff] }
 0x1e7   :  { %7390 = vmatpush.bf16.msra.mxu0 %v11684_v1  ;;  %v11739_v1 = vld [vmem:[#allocation5 + $0xfe0] sm:$0xff]  ;;  %v11728_v19 = vld [vmem:[#allocation5 + $0xf88] sm:$0xff] }
 0x1e8   :  { %7403 = vmatpush.bf16.msra.mxu1 %v11692_v2 }
 0x1e9   :  { %7416 = vmatpush.bf16.msra.mxu2 %v11700_v3  ;;  %v11714_v3 = vld [vmem:[#allocation5 + $0xf18] sm:$0xff] }
 0x1ea   :  { %7429 = vmatpush.bf16.msra.mxu3 %v11708_v4  ;;  %v11722_v4 = vld [vmem:[#allocation5 + $0xf58] sm:$0xff] }
 0x1eb   :  { %7391 = vmatpush.bf16.msra.mxu0 %v11683_v7  ;;  %v7165_v33 = vpop.f32.mrf.mxu2 }
 0x1ec   :  { %7404 = vmatpush.bf16.msra.mxu1 %v11691_v8  ;;  %v7178_v34 = vpop.f32.mrf.mxu3  ;;  %v11750_v33 = vld [vmem:[#allocation5 + $0x1038] sm:$0xff] }
 0x1ed   :  { %7417 = vmatpush.bf16.msra.mxu2 %v11699_v10  ;;  %v11758_v34 = vld [vmem:[#allocation5 + $0x1078] sm:$0xff] }
 0x1ee   :  { %7430 = vmatpush.bf16.msra.mxu3 %v11707_v11 }
 0x1ef   :  { %7392 = vmatpush.bf16.msra.mxu0 %v11682_v13  ;;  %v11721_v13 = vld [vmem:[#allocation5 + $0xf50] sm:$0xff] }
 0x1f0   :  { %7405 = vmatpush.bf16.msra.mxu1 %v11690_v14 }
 0x1f1   :  { %7418 = vmatpush.bf16.msra.mxu2 %v11698_v15  ;;  %v11729_v15 = vld [vmem:[#allocation5 + $0xf90] sm:$0xff] }
 0x1f2   :  { %7431 = vmatpush.bf16.msra.mxu3 %v11706_v16  ;;  %v11737_v16 = vld [vmem:[#allocation5 + $0xfd0] sm:$0xff] }
 0x1f3   :  { %7393 = vmatpush.bf16.msra.mxu0 %v11681_v22  ;;  %v159_v22 = vld [vmem:[#allocation2 + $0xf8] sm:$0xff] }
 0x1f4   :  { %7406 = vmatpush.bf16.msra.mxu1 %v11689_v23  ;;  %v1827_v32 = vunpack.c.h.b16 %v159_v22 }
 0x1f5   :  { %7419 = vmatpush.bf16.msra.mxu2 %v11697_v25  ;;  %v11711_v25 = vld [vmem:[#allocation5 + $0xf00] sm:$0xff] }
 0x1f6   :  { %7432 = vmatpush.bf16.msra.mxu3 %v11705_v26  ;;  %v11719_v26 = vld [vmem:[#allocation5 + $0xf40] sm:$0xff] }
 0x1f7   :  { %7394 = vmatpush.bf16.msra.mxu0 %v11680_v27 }
 0x1f8   :  { %7407 = vmatpush.bf16.msra.mxu1 %v11688_v28  ;;  %v1826_v28 = vunpack.c.l.b16 %v159_v22 }
 0x1f9   :  { %7420 = vmatpush.bf16.msra.mxu2 %v11696_v29  ;;  %v11727_v29 = vld [vmem:[#allocation5 + $0xf80] sm:$0xff] }
 0x1fa   :  { %7433 = vmatpush.bf16.msra.mxu3 %v11704_v30  ;;  %v11735_v30 = vld [vmem:[#allocation5 + $0xfc0] sm:$0xff]  ;;  %v1922_v38 = vpack.c.b16 %v1826_v28, %v1826_v28 }
 0x1fb   :  { %7395 = vmatpush.bf16.msra.mxu0 %v11679_v35  ;;  %v7189_v59 = vpop.f32.mrf.mxu0  ;;  %v11766_v35 = vld [vmem:[#allocation5 + $0x10b8] sm:$0xff] }
 0x1fc   :  { %7408 = vmatpush.bf16.msra.mxu1 %v11687_v36  ;;  %v7190_v60 = vadd.f32 %v7189_v59, %v12328_v21  ;;  %v7202_v63 = vpop.f32.mrf.mxu1  ;;  %v158_v21 = vld [vmem:[#allocation2 + $0xf0] sm:$0xff]  ;;  %v11774_v36 = vld [vmem:[#allocation5 + $0x10f8] sm:$0xff] }
 0x1fd   :  { %7421 = vmatpush.bf16.msra.mxu2 %v11695_v39  ;;  %v1824_v27 = vunpack.c.l.b16 %v158_v21  ;;  %v1825_v31 = vunpack.c.h.b16 %v158_v21  ;;  %v11762_v59 = vld [vmem:[#allocation5 + $0x1098] sm:$0xff] }
 0x1fe   :  { %7434 = vmatpush.bf16.msra.mxu3 %v11703_v40  ;;  %7396 = vmatmul.bf16.vlgmr.msra.gmra.mxu0 %v1916_v47  ;;  %v7203_v2 = vadd.f32 %v7202_v63, %v7190_v60  ;;  %v1923_v40 = vpack.c.b16 %v1827_v32, %v1827_v32  ;;  %v11764_v47 = vld [vmem:[#allocation5 + $0x10a8] sm:$0xff]  ;;  %v11770_v60 = vld [vmem:[#allocation5 + $0x10d8] sm:$0xff]  ;;  %v11789_v32 = vld [vmem:[#allocation5 + $0x1170] sm:$0xff] }
 0x1ff   :  { %7440 = vmatpush.bf16.msrb.mxu0 %v11718_v43  ;;  %7409 = vmatmul.bf16.vlgmr.msra.gmra.mxu1 %v1917_v49  ;;  %v1920_v37 = vpack.c.b16 %v1824_v27, %v1824_v27  ;;  %v1921_v39 = vpack.c.b16 %v1825_v31, %v1825_v31  ;;  %v11765_v43 = vld [vmem:[#allocation5 + $0x10b0] sm:$0xff] }
 0x200   :  { %7453 = vmatpush.bf16.msrb.mxu1 %v11726_v44  ;;  %7422 = vmatmul.bf16.vlgmr.msra.gmra.mxu2 %v1918_v48  ;;  %v11773_v44 = vld [vmem:[#allocation5 + $0x10f0] sm:$0xff]  ;;  %v11772_v48 = vld [vmem:[#allocation5 + $0x10e8] sm:$0xff] }
 0x201   :  { %7466 = vmatpush.bf16.msrb.mxu2 %v11734_v45  ;;  %7435 = vmatmul.bf16.vlgmr.msra.gmra.mxu3 %v1919_v50  ;;  %v11748_v45 = vld [vmem:[#allocation5 + $0x1028] sm:$0xff]  ;;  %v11781_v31 = vld [vmem:[#allocation5 + $0x1130] sm:$0xff] }
 0x202   :  { %7479 = vmatpush.bf16.msrb.mxu3 %v11742_v46  ;;  %v11756_v46 = vld [vmem:[#allocation5 + $0x1068] sm:$0xff] }
 0x203   :  { %7441 = vmatpush.bf16.msrb.mxu0 %v11717_v51  ;;  %v7215_v7 = vpop.f32.mrf.mxu2  ;;  %v7191_v10 = vpop.f32.mrf.mxu0  ;;  %v11747_v51 = vld [vmem:[#allocation5 + $0x1020] sm:$0xff] }
 0x204   :  { %7454 = vmatpush.bf16.msrb.mxu1 %v11725_v52  ;;  %v7216_v8 = vadd.f32 %v7215_v7, %v7203_v2  ;;  %v7228_v9 = vpop.f32.mrf.mxu3  ;;  %v7204_v14 = vpop.f32.mrf.mxu1  ;;  %v11755_v52 = vld [vmem:[#allocation5 + $0x1060] sm:$0xff]  ;;  %v11745_v2 = vld [vmem:[#allocation5 + $0x1010] sm:$0xff]  ;;  %v11744_v7 = vld [vmem:[#allocation5 + $0x1008] sm:$0xff] }
 0x205   :  { %7467 = vmatpush.bf16.msrb.mxu2 %v11733_v53  ;;  %v11768_v10 = vld [vmem:[#allocation5 + $0x10c8] sm:$0xff] }
 0x206   :  { %7480 = vmatpush.bf16.msrb.mxu3 %v11741_v54  ;;  %v12331_v11 = vadd.f32 %v7228_v9, %v7216_v8  ;;  %v11763_v54 = vld [vmem:[#allocation5 + $0x10a0] sm:$0xff]  ;;  %v11752_v8 = vld [vmem:[#allocation5 + $0x1048] sm:$0xff] }
 0x207   :  { %7442 = vmatpush.bf16.msrb.mxu0 %v11716_v55  ;;  %v11771_v55 = vld [vmem:[#allocation5 + $0x10e0] sm:$0xff]  ;;  %v11760_v9 = vld [vmem:[#allocation5 + $0x1088] sm:$0xff] }
 0x208   :  { %7455 = vmatpush.bf16.msrb.mxu1 %v11724_v56 }
 0x209   :  { %7468 = vmatpush.bf16.msrb.mxu2 %v11732_v57  ;;  %v11746_v57 = vld [vmem:[#allocation5 + $0x1018] sm:$0xff] }
 0x20a   :  { %7481 = vmatpush.bf16.msrb.mxu3 %v11740_v58  ;;  %v11754_v58 = vld [vmem:[#allocation5 + $0x1058] sm:$0xff] }
 0x20b   :  { %7443 = vmatpush.bf16.msrb.mxu0 %v11715_v61  ;;  %v7217_v23 = vpop.f32.mrf.mxu2 }
 0x20c   :  { %7456 = vmatpush.bf16.msrb.mxu1 %v11723_v62  ;;  %v7230_v24 = vpop.f32.mrf.mxu3  ;;  %v11782_v23 = vld [vmem:[#allocation5 + $0x1138] sm:$0xff] }
 0x20d   :  { %7469 = vmatpush.bf16.msrb.mxu2 %v11731_v0  ;;  %v11790_v24 = vld [vmem:[#allocation5 + $0x1178] sm:$0xff] }
 0x20e   :  { %7482 = vmatpush.bf16.msrb.mxu3 %v11739_v1 }
 0x20f   :  { %7444 = vmatpush.bf16.msrb.mxu0 %v11714_v3  ;;  %v11753_v3 = vld [vmem:[#allocation5 + $0x1050] sm:$0xff] }
 0x210   :  { %7457 = vmatpush.bf16.msrb.mxu1 %v11722_v4 }
 0x211   :  { %7470 = vmatpush.bf16.msrb.mxu2 %v11730_v5  ;;  %v11761_v5 = vld [vmem:[#allocation5 + $0x1090] sm:$0xff] }
 0x212   :  { %7483 = vmatpush.bf16.msrb.mxu3 %v11738_v6  ;;  %v11769_v6 = vld [vmem:[#allocation5 + $0x10d0] sm:$0xff] }
 0x213   :  { %7445 = vmatpush.bf16.msrb.mxu0 %v11713_v12  ;;  %v161_v12 = vld [vmem:[#allocation2 + $0x108] sm:$0xff] }
 0x214   :  { %7458 = vmatpush.bf16.msrb.mxu1 %v11721_v13  ;;  %v1831_v22 = vunpack.c.h.b16 %v161_v12 }
 0x215   :  { %7471 = vmatpush.bf16.msrb.mxu2 %v11729_v15  ;;  %v11743_v15 = vld [vmem:[#allocation5 + $0x1000] sm:$0xff] }
 0x216   :  { %7484 = vmatpush.bf16.msrb.mxu3 %v11737_v16  ;;  %v11751_v16 = vld [vmem:[#allocation5 + $0x1040] sm:$0xff] }
 0x217   :  { %7446 = vmatpush.bf16.msrb.mxu0 %v11712_v17 }
 0x218   :  { %7459 = vmatpush.bf16.msrb.mxu1 %v11720_v18  ;;  %v1830_v18 = vunpack.c.l.b16 %v161_v12 }
 0x219   :  { %7472 = vmatpush.bf16.msrb.mxu2 %v11728_v19  ;;  %v11759_v19 = vld [vmem:[#allocation5 + $0x1080] sm:$0xff] }
 0x21a   :  { %7485 = vmatpush.bf16.msrb.mxu3 %v11736_v20  ;;  %v11767_v20 = vld [vmem:[#allocation5 + $0x10c0] sm:$0xff]  ;;  %v1926_v28 = vpack.c.b16 %v1830_v18, %v1830_v18 }
 0x21b   :  { %7447 = vmatpush.bf16.msrb.mxu0 %v11711_v25  ;;  %v7241_v49 = vpop.f32.mrf.mxu0  ;;  %v11798_v25 = vld [vmem:[#allocation5 + $0x11b8] sm:$0xff] }
 0x21c   :  { %7460 = vmatpush.bf16.msrb.mxu1 %v11719_v26  ;;  %v7242_v50 = vadd.f32 %v7241_v49, %v12331_v11  ;;  %v7254_v53 = vpop.f32.mrf.mxu1  ;;  %v160_v11 = vld [vmem:[#allocation2 + $0x100] sm:$0xff]  ;;  %v11806_v26 = vld [vmem:[#allocation5 + $0x11f8] sm:$0xff] }
 0x21d   :  { %7473 = vmatpush.bf16.msrb.mxu2 %v11727_v29  ;;  %v1828_v17 = vunpack.c.l.b16 %v160_v11  ;;  %v1829_v21 = vunpack.c.h.b16 %v160_v11  ;;  %v11794_v49 = vld [vmem:[#allocation5 + $0x1198] sm:$0xff] }
 0x21e   :  { %7486 = vmatpush.bf16.msrb.mxu3 %v11735_v30  ;;  %7448 = vmatmul.bf16.vlgmr.msrb.gmra.mxu0 %v1920_v37  ;;  %v7255_v56 = vadd.f32 %v7254_v53, %v7242_v50  ;;  %v1927_v30 = vpack.c.b16 %v1831_v22, %v1831_v22  ;;  %v11796_v37 = vld [vmem:[#allocation5 + $0x11a8] sm:$0xff]  ;;  %v11802_v50 = vld [vmem:[#allocation5 + $0x11d8] sm:$0xff]  ;;  %v11821_v22 = vld [vmem:[#allocation5 + $0x1270] sm:$0xff] }
 0x21f   :  { %7492 = vmatpush.bf16.msra.mxu0 %v11750_v33  ;;  %7461 = vmatmul.bf16.vlgmr.msrb.gmra.mxu1 %v1921_v39  ;;  %v1924_v27 = vpack.c.b16 %v1828_v17, %v1828_v17  ;;  %v1925_v29 = vpack.c.b16 %v1829_v21, %v1829_v21  ;;  %v11797_v33 = vld [vmem:[#allocation5 + $0x11b0] sm:$0xff] }
 0x220   :  { %7505 = vmatpush.bf16.msra.mxu1 %v11758_v34  ;;  %7474 = vmatmul.bf16.vlgmr.msrb.gmra.mxu2 %v1922_v38  ;;  %v11805_v34 = vld [vmem:[#allocation5 + $0x11f0] sm:$0xff]  ;;  %v11804_v38 = vld [vmem:[#allocation5 + $0x11e8] sm:$0xff] }
 0x221   :  { %7518 = vmatpush.bf16.msra.mxu2 %v11766_v35  ;;  %7487 = vmatmul.bf16.vlgmr.msrb.gmra.mxu3 %v1923_v40  ;;  %v11780_v35 = vld [vmem:[#allocation5 + $0x1128] sm:$0xff]  ;;  %v11813_v21 = vld [vmem:[#allocation5 + $0x1230] sm:$0xff] }
 0x222   :  { %7531 = vmatpush.bf16.msra.mxu3 %v11774_v36  ;;  %v11788_v36 = vld [vmem:[#allocation5 + $0x1168] sm:$0xff] }
 0x223   :  { %7493 = vmatpush.bf16.msra.mxu0 %v11749_v41  ;;  %v7267_v61 = vpop.f32.mrf.mxu2  ;;  %v7243_v0 = vpop.f32.mrf.mxu0  ;;  %v11779_v41 = vld [vmem:[#allocation5 + $0x1120] sm:$0xff] }
 0x224   :  { %7506 = vmatpush.bf16.msra.mxu1 %v11757_v42  ;;  %v7268_v62 = vadd.f32 %v7267_v61, %v7255_v56  ;;  %v7280_v63 = vpop.f32.mrf.mxu3  ;;  %v7256_v4 = vpop.f32.mrf.mxu1  ;;  %v11787_v42 = vld [vmem:[#allocation5 + $0x1160] sm:$0xff]  ;;  %v11777_v56 = vld [vmem:[#allocation5 + $0x1110] sm:$0xff]  ;;  %v11776_v61 = vld [vmem:[#allocation5 + $0x1108] sm:$0xff] }
 0x225   :  { %7519 = vmatpush.bf16.msra.mxu2 %v11765_v43  ;;  %v11800_v0 = vld [vmem:[#allocation5 + $0x11c8] sm:$0xff] }
 0x226   :  { %7532 = vmatpush.bf16.msra.mxu3 %v11773_v44  ;;  %v12334_v1 = vadd.f32 %v7280_v63, %v7268_v62  ;;  %v11795_v44 = vld [vmem:[#allocation5 + $0x11a0] sm:$0xff]  ;;  %v11784_v62 = vld [vmem:[#allocation5 + $0x1148] sm:$0xff] }
 0x227   :  { %7494 = vmatpush.bf16.msra.mxu0 %v11748_v45  ;;  %v11803_v45 = vld [vmem:[#allocation5 + $0x11e0] sm:$0xff]  ;;  %v11792_v63 = vld [vmem:[#allocation5 + $0x1188] sm:$0xff] }
 0x228   :  { %7507 = vmatpush.bf16.msra.mxu1 %v11756_v46 }
 0x229   :  { %7520 = vmatpush.bf16.msra.mxu2 %v11764_v47  ;;  %v11778_v47 = vld [vmem:[#allocation5 + $0x1118] sm:$0xff] }
 0x22a   :  { %7533 = vmatpush.bf16.msra.mxu3 %v11772_v48  ;;  %v11786_v48 = vld [vmem:[#allocation5 + $0x1158] sm:$0xff] }
 0x22b   :  { %7495 = vmatpush.bf16.msra.mxu0 %v11747_v51  ;;  %v7269_v13 = vpop.f32.mrf.mxu2 }
 0x22c   :  { %7508 = vmatpush.bf16.msra.mxu1 %v11755_v52  ;;  %v7282_v14 = vpop.f32.mrf.mxu3  ;;  %v11814_v13 = vld [vmem:[#allocation5 + $0x1238] sm:$0xff] }
 0x22d   :  { %7521 = vmatpush.bf16.msra.mxu2 %v11763_v54  ;;  %v11822_v14 = vld [vmem:[#allocation5 + $0x1278] sm:$0xff] }
 0x22e   :  { %7534 = vmatpush.bf16.msra.mxu3 %v11771_v55 }
 0x22f   :  { %7496 = vmatpush.bf16.msra.mxu0 %v11746_v57  ;;  %v11785_v57 = vld [vmem:[#allocation5 + $0x1150] sm:$0xff] }
 0x230   :  { %7509 = vmatpush.bf16.msra.mxu1 %v11754_v58 }
 0x231   :  { %7522 = vmatpush.bf16.msra.mxu2 %v11762_v59  ;;  %v11793_v59 = vld [vmem:[#allocation5 + $0x1190] sm:$0xff] }
 0x232   :  { %7535 = vmatpush.bf16.msra.mxu3 %v11770_v60  ;;  %v11801_v60 = vld [vmem:[#allocation5 + $0x11d0] sm:$0xff] }
 0x233   :  { %7497 = vmatpush.bf16.msra.mxu0 %v11745_v2  ;;  %v163_v2 = vld [vmem:[#allocation2 + $0x118] sm:$0xff] }
 0x234   :  { %7510 = vmatpush.bf16.msra.mxu1 %v11753_v3  ;;  %v1835_v12 = vunpack.c.h.b16 %v163_v2 }
 0x235   :  { %7523 = vmatpush.bf16.msra.mxu2 %v11761_v5  ;;  %v11775_v5 = vld [vmem:[#allocation5 + $0x1100] sm:$0xff] }
 0x236   :  { %7536 = vmatpush.bf16.msra.mxu3 %v11769_v6  ;;  %v11783_v6 = vld [vmem:[#allocation5 + $0x1140] sm:$0xff] }
 0x237   :  { %7498 = vmatpush.bf16.msra.mxu0 %v11744_v7 }
 0x238   :  { %7511 = vmatpush.bf16.msra.mxu1 %v11752_v8  ;;  %v1834_v8 = vunpack.c.l.b16 %v163_v2 }
 0x239   :  { %7524 = vmatpush.bf16.msra.mxu2 %v11760_v9  ;;  %v11791_v9 = vld [vmem:[#allocation5 + $0x1180] sm:$0xff] }
 0x23a   :  { %7537 = vmatpush.bf16.msra.mxu3 %v11768_v10  ;;  %v11799_v10 = vld [vmem:[#allocation5 + $0x11c0] sm:$0xff]  ;;  %v1930_v18 = vpack.c.b16 %v1834_v8, %v1834_v8 }
 0x23b   :  { %7499 = vmatpush.bf16.msra.mxu0 %v11743_v15  ;;  %v7293_v39 = vpop.f32.mrf.mxu0  ;;  %v11830_v15 = vld [vmem:[#allocation5 + $0x12b8] sm:$0xff] }
 0x23c   :  { %7512 = vmatpush.bf16.msra.mxu1 %v11751_v16  ;;  %v7294_v40 = vadd.f32 %v7293_v39, %v12334_v1  ;;  %v7306_v43 = vpop.f32.mrf.mxu1  ;;  %v162_v1 = vld [vmem:[#allocation2 + $0x110] sm:$0xff]  ;;  %v11838_v16 = vld [vmem:[#allocation5 + $0x12f8] sm:$0xff] }
 0x23d   :  { %7525 = vmatpush.bf16.msra.mxu2 %v11759_v19  ;;  %v1832_v7 = vunpack.c.l.b16 %v162_v1  ;;  %v1833_v11 = vunpack.c.h.b16 %v162_v1  ;;  %v11826_v39 = vld [vmem:[#allocation5 + $0x1298] sm:$0xff] }
 0x23e   :  { %7538 = vmatpush.bf16.msra.mxu3 %v11767_v20  ;;  %7500 = vmatmul.bf16.vlgmr.msra.gmra.mxu0 %v1924_v27  ;;  %v7307_v46 = vadd.f32 %v7306_v43, %v7294_v40  ;;  %v1931_v20 = vpack.c.b16 %v1835_v12, %v1835_v12  ;;  %v11828_v27 = vld [vmem:[#allocation5 + $0x12a8] sm:$0xff]  ;;  %v11834_v40 = vld [vmem:[#allocation5 + $0x12d8] sm:$0xff]  ;;  %v11853_v12 = vld [vmem:[#allocation5 + $0x1370] sm:$0xff] }
 0x23f   :  { %7544 = vmatpush.bf16.msrb.mxu0 %v11782_v23  ;;  %7513 = vmatmul.bf16.vlgmr.msra.gmra.mxu1 %v1925_v29  ;;  %v1928_v17 = vpack.c.b16 %v1832_v7, %v1832_v7  ;;  %v1929_v19 = vpack.c.b16 %v1833_v11, %v1833_v11  ;;  %v11829_v23 = vld [vmem:[#allocation5 + $0x12b0] sm:$0xff] }
 0x240   :  { %7557 = vmatpush.bf16.msrb.mxu1 %v11790_v24  ;;  %7526 = vmatmul.bf16.vlgmr.msra.gmra.mxu2 %v1926_v28  ;;  %v11837_v24 = vld [vmem:[#allocation5 + $0x12f0] sm:$0xff]  ;;  %v11836_v28 = vld [vmem:[#allocation5 + $0x12e8] sm:$0xff] }
 0x241   :  { %7570 = vmatpush.bf16.msrb.mxu2 %v11798_v25  ;;  %7539 = vmatmul.bf16.vlgmr.msra.gmra.mxu3 %v1927_v30  ;;  %v11812_v25 = vld [vmem:[#allocation5 + $0x1228] sm:$0xff]  ;;  %v11845_v11 = vld [vmem:[#allocation5 + $0x1330] sm:$0xff] }
 0x242   :  { %7583 = vmatpush.bf16.msrb.mxu3 %v11806_v26  ;;  %v11820_v26 = vld [vmem:[#allocation5 + $0x1268] sm:$0xff] }
 0x243   :  { %7545 = vmatpush.bf16.msrb.mxu0 %v11781_v31  ;;  %v7319_v51 = vpop.f32.mrf.mxu2  ;;  %v7295_v54 = vpop.f32.mrf.mxu0  ;;  %v11811_v31 = vld [vmem:[#allocation5 + $0x1220] sm:$0xff] }
 0x244   :  { %7558 = vmatpush.bf16.msrb.mxu1 %v11789_v32  ;;  %v7320_v52 = vadd.f32 %v7319_v51, %v7307_v46  ;;  %v7332_v53 = vpop.f32.mrf.mxu3  ;;  %v7308_v58 = vpop.f32.mrf.mxu1  ;;  %v11819_v32 = vld [vmem:[#allocation5 + $0x1260] sm:$0xff]  ;;  %v11809_v46 = vld [vmem:[#allocation5 + $0x1210] sm:$0xff]  ;;  %v11808_v51 = vld [vmem:[#allocation5 + $0x1208] sm:$0xff] }
 0x245   :  { %7571 = vmatpush.bf16.msrb.mxu2 %v11797_v33  ;;  %v11832_v54 = vld [vmem:[#allocation5 + $0x12c8] sm:$0xff] }
 0x246   :  { %7584 = vmatpush.bf16.msrb.mxu3 %v11805_v34  ;;  %v12337_v55 = vadd.f32 %v7332_v53, %v7320_v52  ;;  %v11827_v34 = vld [vmem:[#allocation5 + $0x12a0] sm:$0xff]  ;;  %v11816_v52 = vld [vmem:[#allocation5 + $0x1248] sm:$0xff] }
 0x247   :  { %7546 = vmatpush.bf16.msrb.mxu0 %v11780_v35  ;;  %v11835_v35 = vld [vmem:[#allocation5 + $0x12e0] sm:$0xff]  ;;  %v11824_v53 = vld [vmem:[#allocation5 + $0x1288] sm:$0xff] }
 0x248   :  { %7559 = vmatpush.bf16.msrb.mxu1 %v11788_v36 }
 0x249   :  { %7572 = vmatpush.bf16.msrb.mxu2 %v11796_v37  ;;  %v11810_v37 = vld [vmem:[#allocation5 + $0x1218] sm:$0xff] }
 0x24a   :  { %7585 = vmatpush.bf16.msrb.mxu3 %v11804_v38  ;;  %v11818_v38 = vld [vmem:[#allocation5 + $0x1258] sm:$0xff] }
 0x24b   :  { %7547 = vmatpush.bf16.msrb.mxu0 %v11779_v41  ;;  %v7321_v3 = vpop.f32.mrf.mxu2 }
 0x24c   :  { %7560 = vmatpush.bf16.msrb.mxu1 %v11787_v42  ;;  %v7334_v4 = vpop.f32.mrf.mxu3  ;;  %v11846_v3 = vld [vmem:[#allocation5 + $0x1338] sm:$0xff] }
 0x24d   :  { %7573 = vmatpush.bf16.msrb.mxu2 %v11795_v44  ;;  %v11854_v4 = vld [vmem:[#allocation5 + $0x1378] sm:$0xff] }
 0x24e   :  { %7586 = vmatpush.bf16.msrb.mxu3 %v11803_v45 }
 0x24f   :  { %7548 = vmatpush.bf16.msrb.mxu0 %v11778_v47  ;;  %v11817_v47 = vld [vmem:[#allocation5 + $0x1250] sm:$0xff] }
 0x250   :  { %7561 = vmatpush.bf16.msrb.mxu1 %v11786_v48 }
 0x251   :  { %7574 = vmatpush.bf16.msrb.mxu2 %v11794_v49  ;;  %v11825_v49 = vld [vmem:[#allocation5 + $0x1290] sm:$0xff] }
 0x252   :  { %7587 = vmatpush.bf16.msrb.mxu3 %v11802_v50  ;;  %v11833_v50 = vld [vmem:[#allocation5 + $0x12d0] sm:$0xff] }
 0x253   :  { %7549 = vmatpush.bf16.msrb.mxu0 %v11777_v56  ;;  %v165_v56 = vld [vmem:[#allocation2 + $0x128] sm:$0xff] }
 0x254   :  { %7562 = vmatpush.bf16.msrb.mxu1 %v11785_v57  ;;  %v1839_v2 = vunpack.c.h.b16 %v165_v56 }
 0x255   :  { %7575 = vmatpush.bf16.msrb.mxu2 %v11793_v59  ;;  %v11807_v59 = vld [vmem:[#allocation5 + $0x1200] sm:$0xff] }
 0x256   :  { %7588 = vmatpush.bf16.msrb.mxu3 %v11801_v60  ;;  %v11815_v60 = vld [vmem:[#allocation5 + $0x1240] sm:$0xff] }
 0x257   :  { %7550 = vmatpush.bf16.msrb.mxu0 %v11776_v61 }
 0x258   :  { %7563 = vmatpush.bf16.msrb.mxu1 %v11784_v62  ;;  %v1838_v62 = vunpack.c.l.b16 %v165_v56 }
 0x259   :  { %7576 = vmatpush.bf16.msrb.mxu2 %v11792_v63  ;;  %v11823_v63 = vld [vmem:[#allocation5 + $0x1280] sm:$0xff] }
 0x25a   :  { %7589 = vmatpush.bf16.msrb.mxu3 %v11800_v0  ;;  %v11831_v0 = vld [vmem:[#allocation5 + $0x12c0] sm:$0xff]  ;;  %v1934_v8 = vpack.c.b16 %v1838_v62, %v1838_v62 }
 0x25b   :  { %7551 = vmatpush.bf16.msrb.mxu0 %v11775_v5  ;;  %v7345_v29 = vpop.f32.mrf.mxu0  ;;  %v11862_v5 = vld [vmem:[#allocation5 + $0x13b8] sm:$0xff] }
 0x25c   :  { %7564 = vmatpush.bf16.msrb.mxu1 %v11783_v6  ;;  %v7346_v30 = vadd.f32 %v7345_v29, %v12337_v55  ;;  %v7358_v33 = vpop.f32.mrf.mxu1  ;;  %v164_v55 = vld [vmem:[#allocation2 + $0x120] sm:$0xff]  ;;  %v11870_v6 = vld [vmem:[#allocation5 + $0x13f8] sm:$0xff] }
 0x25d   :  { %7577 = vmatpush.bf16.msrb.mxu2 %v11791_v9  ;;  %v1836_v61 = vunpack.c.l.b16 %v164_v55  ;;  %v1837_v1 = vunpack.c.h.b16 %v164_v55  ;;  %v11858_v29 = vld [vmem:[#allocation5 + $0x1398] sm:$0xff] }
 0x25e   :  { %7590 = vmatpush.bf16.msrb.mxu3 %v11799_v10  ;;  %7552 = vmatmul.bf16.vlgmr.msrb.gmra.mxu0 %v1928_v17  ;;  %v7359_v36 = vadd.f32 %v7358_v33, %v7346_v30  ;;  %v1935_v10 = vpack.c.b16 %v1839_v2, %v1839_v2  ;;  %v11860_v17 = vld [vmem:[#allocation5 + $0x13a8] sm:$0xff]  ;;  %v11866_v30 = vld [vmem:[#allocation5 + $0x13d8] sm:$0xff]  ;;  %v11885_v2 = vld [vmem:[#allocation5 + $0x1470] sm:$0xff] }
 0x25f   :  { %7596 = vmatpush.bf16.msra.mxu0 %v11814_v13  ;;  %7565 = vmatmul.bf16.vlgmr.msrb.gmra.mxu1 %v1929_v19  ;;  %v1932_v7 = vpack.c.b16 %v1836_v61, %v1836_v61  ;;  %v1933_v9 = vpack.c.b16 %v1837_v1, %v1837_v1  ;;  %v11861_v13 = vld [vmem:[#allocation5 + $0x13b0] sm:$0xff] }
 0x260   :  { %7609 = vmatpush.bf16.msra.mxu1 %v11822_v14  ;;  %7578 = vmatmul.bf16.vlgmr.msrb.gmra.mxu2 %v1930_v18  ;;  %v11869_v14 = vld [vmem:[#allocation5 + $0x13f0] sm:$0xff]  ;;  %v11868_v18 = vld [vmem:[#allocation5 + $0x13e8] sm:$0xff] }
 0x261   :  { %7622 = vmatpush.bf16.msra.mxu2 %v11830_v15  ;;  %7591 = vmatmul.bf16.vlgmr.msrb.gmra.mxu3 %v1931_v20  ;;  %v11844_v15 = vld [vmem:[#allocation5 + $0x1328] sm:$0xff]  ;;  %v11877_v1 = vld [vmem:[#allocation5 + $0x1430] sm:$0xff] }
 0x262   :  { %7635 = vmatpush.bf16.msra.mxu3 %v11838_v16  ;;  %v11852_v16 = vld [vmem:[#allocation5 + $0x1368] sm:$0xff] }
 0x263   :  { %7597 = vmatpush.bf16.msra.mxu0 %v11813_v21  ;;  %v7371_v41 = vpop.f32.mrf.mxu2  ;;  %v7347_v44 = vpop.f32.mrf.mxu0  ;;  %v11843_v21 = vld [vmem:[#allocation5 + $0x1320] sm:$0xff] }
 0x264   :  { %7610 = vmatpush.bf16.msra.mxu1 %v11821_v22  ;;  %v7372_v42 = vadd.f32 %v7371_v41, %v7359_v36  ;;  %v7384_v43 = vpop.f32.mrf.mxu3  ;;  %v7360_v48 = vpop.f32.mrf.mxu1  ;;  %v11851_v22 = vld [vmem:[#allocation5 + $0x1360] sm:$0xff]  ;;  %v11841_v36 = vld [vmem:[#allocation5 + $0x1310] sm:$0xff]  ;;  %v11840_v41 = vld [vmem:[#allocation5 + $0x1308] sm:$0xff] }
 0x265   :  { %7623 = vmatpush.bf16.msra.mxu2 %v11829_v23  ;;  %v11864_v44 = vld [vmem:[#allocation5 + $0x13c8] sm:$0xff] }
 0x266   :  { %7636 = vmatpush.bf16.msra.mxu3 %v11837_v24  ;;  %v12340_v45 = vadd.f32 %v7384_v43, %v7372_v42  ;;  %v11859_v24 = vld [vmem:[#allocation5 + $0x13a0] sm:$0xff]  ;;  %v11848_v42 = vld [vmem:[#allocation5 + $0x1348] sm:$0xff] }
 0x267   :  { %7598 = vmatpush.bf16.msra.mxu0 %v11812_v25  ;;  %v11867_v25 = vld [vmem:[#allocation5 + $0x13e0] sm:$0xff]  ;;  %v11856_v43 = vld [vmem:[#allocation5 + $0x1388] sm:$0xff] }
 0x268   :  { %7611 = vmatpush.bf16.msra.mxu1 %v11820_v26 }
 0x269   :  { %7624 = vmatpush.bf16.msra.mxu2 %v11828_v27  ;;  %v11842_v27 = vld [vmem:[#allocation5 + $0x1318] sm:$0xff] }
 0x26a   :  { %7637 = vmatpush.bf16.msra.mxu3 %v11836_v28  ;;  %v11850_v28 = vld [vmem:[#allocation5 + $0x1358] sm:$0xff] }
 0x26b   :  { %7599 = vmatpush.bf16.msra.mxu0 %v11811_v31  ;;  %v7373_v57 = vpop.f32.mrf.mxu2 }
 0x26c   :  { %7612 = vmatpush.bf16.msra.mxu1 %v11819_v32  ;;  %v7386_v58 = vpop.f32.mrf.mxu3  ;;  %v11878_v57 = vld [vmem:[#allocation5 + $0x1438] sm:$0xff] }
 0x26d   :  { %7625 = vmatpush.bf16.msra.mxu2 %v11827_v34  ;;  %v11886_v58 = vld [vmem:[#allocation5 + $0x1478] sm:$0xff] }
 0x26e   :  { %7638 = vmatpush.bf16.msra.mxu3 %v11835_v35 }
 0x26f   :  { %7600 = vmatpush.bf16.msra.mxu0 %v11810_v37  ;;  %v11849_v37 = vld [vmem:[#allocation5 + $0x1350] sm:$0xff] }
 0x270   :  { %7613 = vmatpush.bf16.msra.mxu1 %v11818_v38 }
 0x271   :  { %7626 = vmatpush.bf16.msra.mxu2 %v11826_v39  ;;  %v11857_v39 = vld [vmem:[#allocation5 + $0x1390] sm:$0xff] }
 0x272   :  { %7639 = vmatpush.bf16.msra.mxu3 %v11834_v40  ;;  %v11865_v40 = vld [vmem:[#allocation5 + $0x13d0] sm:$0xff] }
 0x273   :  { %7601 = vmatpush.bf16.msra.mxu0 %v11809_v46  ;;  %v167_v46 = vld [vmem:[#allocation2 + $0x138] sm:$0xff] }
 0x274   :  { %7614 = vmatpush.bf16.msra.mxu1 %v11817_v47  ;;  %v1843_v56 = vunpack.c.h.b16 %v167_v46 }
 0x275   :  { %7627 = vmatpush.bf16.msra.mxu2 %v11825_v49  ;;  %v11839_v49 = vld [vmem:[#allocation5 + $0x1300] sm:$0xff] }
 0x276   :  { %7640 = vmatpush.bf16.msra.mxu3 %v11833_v50  ;;  %v11847_v50 = vld [vmem:[#allocation5 + $0x1340] sm:$0xff] }
 0x277   :  { %7602 = vmatpush.bf16.msra.mxu0 %v11808_v51 }
 0x278   :  { %7615 = vmatpush.bf16.msra.mxu1 %v11816_v52  ;;  %v1842_v52 = vunpack.c.l.b16 %v167_v46 }
 0x279   :  { %7628 = vmatpush.bf16.msra.mxu2 %v11824_v53  ;;  %v11855_v53 = vld [vmem:[#allocation5 + $0x1380] sm:$0xff] }
 0x27a   :  { %7641 = vmatpush.bf16.msra.mxu3 %v11832_v54  ;;  %v11863_v54 = vld [vmem:[#allocation5 + $0x13c0] sm:$0xff]  ;;  %v1938_v62 = vpack.c.b16 %v1842_v52, %v1842_v52 }
 0x27b   :  { %7603 = vmatpush.bf16.msra.mxu0 %v11807_v59  ;;  %v7397_v19 = vpop.f32.mrf.mxu0  ;;  %v11894_v59 = vld [vmem:[#allocation5 + $0x14b8] sm:$0xff] }
 0x27c   :  { %7616 = vmatpush.bf16.msra.mxu1 %v11815_v60  ;;  %v7398_v20 = vadd.f32 %v7397_v19, %v12340_v45  ;;  %v7410_v23 = vpop.f32.mrf.mxu1  ;;  %v166_v45 = vld [vmem:[#allocation2 + $0x130] sm:$0xff]  ;;  %v11902_v60 = vld [vmem:[#allocation5 + $0x14f8] sm:$0xff] }
 0x27d   :  { %7629 = vmatpush.bf16.msra.mxu2 %v11823_v63  ;;  %v1840_v51 = vunpack.c.l.b16 %v166_v45  ;;  %v1841_v55 = vunpack.c.h.b16 %v166_v45  ;;  %v11890_v19 = vld [vmem:[#allocation5 + $0x1498] sm:$0xff] }
 0x27e   :  { %7642 = vmatpush.bf16.msra.mxu3 %v11831_v0  ;;  %7604 = vmatmul.bf16.vlgmr.msra.gmra.mxu0 %v1932_v7  ;;  %v7411_v26 = vadd.f32 %v7410_v23, %v7398_v20  ;;  %v1939_v0 = vpack.c.b16 %v1843_v56, %v1843_v56  ;;  %v11892_v7 = vld [vmem:[#allocation5 + $0x14a8] sm:$0xff]  ;;  %v11898_v20 = vld [vmem:[#allocation5 + $0x14d8] sm:$0xff]  ;;  %v11917_v56 = vld [vmem:[#allocation5 + $0x1570] sm:$0xff] }
 0x27f   :  { %7648 = vmatpush.bf16.msrb.mxu0 %v11846_v3  ;;  %7617 = vmatmul.bf16.vlgmr.msra.gmra.mxu1 %v1933_v9  ;;  %v1936_v61 = vpack.c.b16 %v1840_v51, %v1840_v51  ;;  %v1937_v63 = vpack.c.b16 %v1841_v55, %v1841_v55  ;;  %v11893_v3 = vld [vmem:[#allocation5 + $0x14b0] sm:$0xff] }
 0x280   :  { %7661 = vmatpush.bf16.msrb.mxu1 %v11854_v4  ;;  %7630 = vmatmul.bf16.vlgmr.msra.gmra.mxu2 %v1934_v8  ;;  %v11901_v4 = vld [vmem:[#allocation5 + $0x14f0] sm:$0xff]  ;;  %v11900_v8 = vld [vmem:[#allocation5 + $0x14e8] sm:$0xff] }
 0x281   :  { %7674 = vmatpush.bf16.msrb.mxu2 %v11862_v5  ;;  %7643 = vmatmul.bf16.vlgmr.msra.gmra.mxu3 %v1935_v10  ;;  %v11876_v5 = vld [vmem:[#allocation5 + $0x1428] sm:$0xff]  ;;  %v11909_v55 = vld [vmem:[#allocation5 + $0x1530] sm:$0xff] }
 0x282   :  { %7687 = vmatpush.bf16.msrb.mxu3 %v11870_v6  ;;  %v11884_v6 = vld [vmem:[#allocation5 + $0x1468] sm:$0xff] }
 0x283   :  { %7649 = vmatpush.bf16.msrb.mxu0 %v11845_v11  ;;  %v7423_v31 = vpop.f32.mrf.mxu2  ;;  %v7399_v34 = vpop.f32.mrf.mxu0  ;;  %v11875_v11 = vld [vmem:[#allocation5 + $0x1420] sm:$0xff] }
 0x284   :  { %7662 = vmatpush.bf16.msrb.mxu1 %v11853_v12  ;;  %v7424_v32 = vadd.f32 %v7423_v31, %v7411_v26  ;;  %v7436_v33 = vpop.f32.mrf.mxu3  ;;  %v7412_v38 = vpop.f32.mrf.mxu1  ;;  %v11883_v12 = vld [vmem:[#allocation5 + $0x1460] sm:$0xff]  ;;  %v11873_v26 = vld [vmem:[#allocation5 + $0x1410] sm:$0xff]  ;;  %v11872_v31 = vld [vmem:[#allocation5 + $0x1408] sm:$0xff] }
 0x285   :  { %7675 = vmatpush.bf16.msrb.mxu2 %v11861_v13  ;;  %v11896_v34 = vld [vmem:[#allocation5 + $0x14c8] sm:$0xff] }
 0x286   :  { %7688 = vmatpush.bf16.msrb.mxu3 %v11869_v14  ;;  %v12343_v35 = vadd.f32 %v7436_v33, %v7424_v32  ;;  %v11891_v14 = vld [vmem:[#allocation5 + $0x14a0] sm:$0xff]  ;;  %v11880_v32 = vld [vmem:[#allocation5 + $0x1448] sm:$0xff] }
 0x287   :  { %7650 = vmatpush.bf16.msrb.mxu0 %v11844_v15  ;;  %v11899_v15 = vld [vmem:[#allocation5 + $0x14e0] sm:$0xff]  ;;  %v11888_v33 = vld [vmem:[#allocation5 + $0x1488] sm:$0xff] }
 0x288   :  { %7663 = vmatpush.bf16.msrb.mxu1 %v11852_v16 }
 0x289   :  { %7676 = vmatpush.bf16.msrb.mxu2 %v11860_v17  ;;  %v11874_v17 = vld [vmem:[#allocation5 + $0x1418] sm:$0xff] }
 0x28a   :  { %7689 = vmatpush.bf16.msrb.mxu3 %v11868_v18  ;;  %v11882_v18 = vld [vmem:[#allocation5 + $0x1458] sm:$0xff] }
 0x28b   :  { %7651 = vmatpush.bf16.msrb.mxu0 %v11843_v21  ;;  %v7425_v47 = vpop.f32.mrf.mxu2 }
 0x28c   :  { %7664 = vmatpush.bf16.msrb.mxu1 %v11851_v22  ;;  %v7438_v48 = vpop.f32.mrf.mxu3  ;;  %v11910_v47 = vld [vmem:[#allocation5 + $0x1538] sm:$0xff] }
 0x28d   :  { %7677 = vmatpush.bf16.msrb.mxu2 %v11859_v24  ;;  %v11918_v48 = vld [vmem:[#allocation5 + $0x1578] sm:$0xff] }
 0x28e   :  { %7690 = vmatpush.bf16.msrb.mxu3 %v11867_v25 }
 0x28f   :  { %7652 = vmatpush.bf16.msrb.mxu0 %v11842_v27  ;;  %v11881_v27 = vld [vmem:[#allocation5 + $0x1450] sm:$0xff] }
 0x290   :  { %7665 = vmatpush.bf16.msrb.mxu1 %v11850_v28 }
 0x291   :  { %7678 = vmatpush.bf16.msrb.mxu2 %v11858_v29  ;;  %v11889_v29 = vld [vmem:[#allocation5 + $0x1490] sm:$0xff] }
 0x292   :  { %7691 = vmatpush.bf16.msrb.mxu3 %v11866_v30  ;;  %v11897_v30 = vld [vmem:[#allocation5 + $0x14d0] sm:$0xff] }
 0x293   :  { %7653 = vmatpush.bf16.msrb.mxu0 %v11841_v36  ;;  %v169_v36 = vld [vmem:[#allocation2 + $0x148] sm:$0xff] }
 0x294   :  { %7666 = vmatpush.bf16.msrb.mxu1 %v11849_v37  ;;  %v1847_v46 = vunpack.c.h.b16 %v169_v36 }
 0x295   :  { %7679 = vmatpush.bf16.msrb.mxu2 %v11857_v39  ;;  %v11871_v39 = vld [vmem:[#allocation5 + $0x1400] sm:$0xff] }
 0x296   :  { %7692 = vmatpush.bf16.msrb.mxu3 %v11865_v40  ;;  %v11879_v40 = vld [vmem:[#allocation5 + $0x1440] sm:$0xff] }
 0x297   :  { %7654 = vmatpush.bf16.msrb.mxu0 %v11840_v41 }
 0x298   :  { %7667 = vmatpush.bf16.msrb.mxu1 %v11848_v42  ;;  %v1846_v42 = vunpack.c.l.b16 %v169_v36 }
 0x299   :  { %7680 = vmatpush.bf16.msrb.mxu2 %v11856_v43  ;;  %v11887_v43 = vld [vmem:[#allocation5 + $0x1480] sm:$0xff] }
 0x29a   :  { %7693 = vmatpush.bf16.msrb.mxu3 %v11864_v44  ;;  %v11895_v44 = vld [vmem:[#allocation5 + $0x14c0] sm:$0xff]  ;;  %v1942_v52 = vpack.c.b16 %v1846_v42, %v1846_v42 }
 0x29b   :  { %7655 = vmatpush.bf16.msrb.mxu0 %v11839_v49  ;;  %v7449_v9 = vpop.f32.mrf.mxu0  ;;  %v11926_v49 = vld [vmem:[#allocation5 + $0x15b8] sm:$0xff] }
 0x29c   :  { %7668 = vmatpush.bf16.msrb.mxu1 %v11847_v50  ;;  %v7450_v10 = vadd.f32 %v7449_v9, %v12343_v35  ;;  %v7462_v13 = vpop.f32.mrf.mxu1  ;;  %v168_v35 = vld [vmem:[#allocation2 + $0x140] sm:$0xff]  ;;  %v11934_v50 = vld [vmem:[#allocation5 + $0x15f8] sm:$0xff] }
 0x29d   :  { %7681 = vmatpush.bf16.msrb.mxu2 %v11855_v53  ;;  %v1844_v41 = vunpack.c.l.b16 %v168_v35  ;;  %v1845_v45 = vunpack.c.h.b16 %v168_v35  ;;  %v11922_v9 = vld [vmem:[#allocation5 + $0x1598] sm:$0xff] }
 0x29e   :  { %7694 = vmatpush.bf16.msrb.mxu3 %v11863_v54  ;;  %7656 = vmatmul.bf16.vlgmr.msrb.gmra.mxu0 %v1936_v61  ;;  %v7463_v16 = vadd.f32 %v7462_v13, %v7450_v10  ;;  %v1943_v54 = vpack.c.b16 %v1847_v46, %v1847_v46  ;;  %v11924_v61 = vld [vmem:[#allocation5 + $0x15a8] sm:$0xff]  ;;  %v11930_v10 = vld [vmem:[#allocation5 + $0x15d8] sm:$0xff]  ;;  %v11949_v46 = vld [vmem:[#allocation5 + $0x1670] sm:$0xff] }
 0x29f   :  { %7700 = vmatpush.bf16.msra.mxu0 %v11878_v57  ;;  %7669 = vmatmul.bf16.vlgmr.msrb.gmra.mxu1 %v1937_v63  ;;  %v1940_v51 = vpack.c.b16 %v1844_v41, %v1844_v41  ;;  %v1941_v53 = vpack.c.b16 %v1845_v45, %v1845_v45  ;;  %v11925_v57 = vld [vmem:[#allocation5 + $0x15b0] sm:$0xff] }
 0x2a0   :  { %7713 = vmatpush.bf16.msra.mxu1 %v11886_v58  ;;  %7682 = vmatmul.bf16.vlgmr.msrb.gmra.mxu2 %v1938_v62  ;;  %v11933_v58 = vld [vmem:[#allocation5 + $0x15f0] sm:$0xff]  ;;  %v11932_v62 = vld [vmem:[#allocation5 + $0x15e8] sm:$0xff] }
 0x2a1   :  { %7726 = vmatpush.bf16.msra.mxu2 %v11894_v59  ;;  %7695 = vmatmul.bf16.vlgmr.msrb.gmra.mxu3 %v1939_v0  ;;  %v11908_v59 = vld [vmem:[#allocation5 + $0x1528] sm:$0xff]  ;;  %v11941_v45 = vld [vmem:[#allocation5 + $0x1630] sm:$0xff] }
 0x2a2   :  { %7739 = vmatpush.bf16.msra.mxu3 %v11902_v60  ;;  %v11916_v60 = vld [vmem:[#allocation5 + $0x1568] sm:$0xff] }
 0x2a3   :  { %7701 = vmatpush.bf16.msra.mxu0 %v11877_v1  ;;  %v7475_v21 = vpop.f32.mrf.mxu2  ;;  %v7451_v24 = vpop.f32.mrf.mxu0  ;;  %v11907_v1 = vld [vmem:[#allocation5 + $0x1520] sm:$0xff] }
 0x2a4   :  { %7714 = vmatpush.bf16.msra.mxu1 %v11885_v2  ;;  %v7476_v22 = vadd.f32 %v7475_v21, %v7463_v16  ;;  %v7488_v23 = vpop.f32.mrf.mxu3  ;;  %v7464_v28 = vpop.f32.mrf.mxu1  ;;  %v11915_v2 = vld [vmem:[#allocation5 + $0x1560] sm:$0xff]  ;;  %v11905_v16 = vld [vmem:[#allocation5 + $0x1510] sm:$0xff]  ;;  %v11904_v21 = vld [vmem:[#allocation5 + $0x1508] sm:$0xff] }
 0x2a5   :  { %7727 = vmatpush.bf16.msra.mxu2 %v11893_v3  ;;  %v11928_v24 = vld [vmem:[#allocation5 + $0x15c8] sm:$0xff] }
 0x2a6   :  { %7740 = vmatpush.bf16.msra.mxu3 %v11901_v4  ;;  %v12346_v25 = vadd.f32 %v7488_v23, %v7476_v22  ;;  %v11923_v4 = vld [vmem:[#allocation5 + $0x15a0] sm:$0xff]  ;;  %v11912_v22 = vld [vmem:[#allocation5 + $0x1548] sm:$0xff] }
 0x2a7   :  { %7702 = vmatpush.bf16.msra.mxu0 %v11876_v5  ;;  %v11931_v5 = vld [vmem:[#allocation5 + $0x15e0] sm:$0xff]  ;;  %v11920_v23 = vld [vmem:[#allocation5 + $0x1588] sm:$0xff] }
 0x2a8   :  { %7715 = vmatpush.bf16.msra.mxu1 %v11884_v6 }
 0x2a9   :  { %7728 = vmatpush.bf16.msra.mxu2 %v11892_v7  ;;  %v11906_v7 = vld [vmem:[#allocation5 + $0x1518] sm:$0xff] }
 0x2aa   :  { %7741 = vmatpush.bf16.msra.mxu3 %v11900_v8  ;;  %v11914_v8 = vld [vmem:[#allocation5 + $0x1558] sm:$0xff] }
 0x2ab   :  { %7703 = vmatpush.bf16.msra.mxu0 %v11875_v11  ;;  %v7477_v37 = vpop.f32.mrf.mxu2 }
 0x2ac   :  { %7716 = vmatpush.bf16.msra.mxu1 %v11883_v12  ;;  %v7490_v38 = vpop.f32.mrf.mxu3  ;;  %v11942_v37 = vld [vmem:[#allocation5 + $0x1638] sm:$0xff] }
 0x2ad   :  { %7729 = vmatpush.bf16.msra.mxu2 %v11891_v14  ;;  %v11950_v38 = vld [vmem:[#allocation5 + $0x1678] sm:$0xff] }
 0x2ae   :  { %7742 = vmatpush.bf16.msra.mxu3 %v11899_v15 }
 0x2af   :  { %7704 = vmatpush.bf16.msra.mxu0 %v11874_v17  ;;  %v11913_v17 = vld [vmem:[#allocation5 + $0x1550] sm:$0xff] }
 0x2b0   :  { %7717 = vmatpush.bf16.msra.mxu1 %v11882_v18 }
 0x2b1   :  { %7730 = vmatpush.bf16.msra.mxu2 %v11890_v19  ;;  %v11921_v19 = vld [vmem:[#allocation5 + $0x1590] sm:$0xff] }
 0x2b2   :  { %7743 = vmatpush.bf16.msra.mxu3 %v11898_v20  ;;  %v11929_v20 = vld [vmem:[#allocation5 + $0x15d0] sm:$0xff] }
 0x2b3   :  { %7705 = vmatpush.bf16.msra.mxu0 %v11873_v26  ;;  %v171_v26 = vld [vmem:[#allocation2 + $0x158] sm:$0xff] }
 0x2b4   :  { %7718 = vmatpush.bf16.msra.mxu1 %v11881_v27  ;;  %v1851_v36 = vunpack.c.h.b16 %v171_v26 }
 0x2b5   :  { %7731 = vmatpush.bf16.msra.mxu2 %v11889_v29  ;;  %v11903_v29 = vld [vmem:[#allocation5 + $0x1500] sm:$0xff] }
 0x2b6   :  { %7744 = vmatpush.bf16.msra.mxu3 %v11897_v30  ;;  %v11911_v30 = vld [vmem:[#allocation5 + $0x1540] sm:$0xff] }
 0x2b7   :  { %7706 = vmatpush.bf16.msra.mxu0 %v11872_v31 }
 0x2b8   :  { %7719 = vmatpush.bf16.msra.mxu1 %v11880_v32  ;;  %v1850_v32 = vunpack.c.l.b16 %v171_v26 }
 0x2b9   :  { %7732 = vmatpush.bf16.msra.mxu2 %v11888_v33  ;;  %v11919_v33 = vld [vmem:[#allocation5 + $0x1580] sm:$0xff] }
 0x2ba   :  { %7745 = vmatpush.bf16.msra.mxu3 %v11896_v34  ;;  %v11927_v34 = vld [vmem:[#allocation5 + $0x15c0] sm:$0xff]  ;;  %v1946_v42 = vpack.c.b16 %v1850_v32, %v1850_v32 }
 0x2bb   :  { %7707 = vmatpush.bf16.msra.mxu0 %v11871_v39  ;;  %v7501_v63 = vpop.f32.mrf.mxu0  ;;  %v11958_v39 = vld [vmem:[#allocation5 + $0x16b8] sm:$0xff] }
 0x2bc   :  { %7720 = vmatpush.bf16.msra.mxu1 %v11879_v40  ;;  %v7502_v0 = vadd.f32 %v7501_v63, %v12346_v25  ;;  %v7514_v3 = vpop.f32.mrf.mxu1  ;;  %v170_v25 = vld [vmem:[#allocation2 + $0x150] sm:$0xff]  ;;  %v11966_v40 = vld [vmem:[#allocation5 + $0x16f8] sm:$0xff] }
 0x2bd   :  { %7733 = vmatpush.bf16.msra.mxu2 %v11887_v43  ;;  %v1848_v31 = vunpack.c.l.b16 %v170_v25  ;;  %v1849_v35 = vunpack.c.h.b16 %v170_v25  ;;  %v11954_v63 = vld [vmem:[#allocation5 + $0x1698] sm:$0xff] }
 0x2be   :  { %7746 = vmatpush.bf16.msra.mxu3 %v11895_v44  ;;  %7708 = vmatmul.bf16.vlgmr.msra.gmra.mxu0 %v1940_v51  ;;  %v7515_v6 = vadd.f32 %v7514_v3, %v7502_v0  ;;  %v1947_v44 = vpack.c.b16 %v1851_v36, %v1851_v36  ;;  %v11956_v51 = vld [vmem:[#allocation5 + $0x16a8] sm:$0xff]  ;;  %v11962_v0 = vld [vmem:[#allocation5 + $0x16d8] sm:$0xff]  ;;  %v11981_v36 = vld [vmem:[#allocation5 + $0x1770] sm:$0xff] }
 0x2bf   :  { %7752 = vmatpush.bf16.msrb.mxu0 %v11910_v47  ;;  %7721 = vmatmul.bf16.vlgmr.msra.gmra.mxu1 %v1941_v53  ;;  %v1944_v41 = vpack.c.b16 %v1848_v31, %v1848_v31  ;;  %v1945_v43 = vpack.c.b16 %v1849_v35, %v1849_v35  ;;  %v11957_v47 = vld [vmem:[#allocation5 + $0x16b0] sm:$0xff] }
 0x2c0   :  { %7765 = vmatpush.bf16.msrb.mxu1 %v11918_v48  ;;  %7734 = vmatmul.bf16.vlgmr.msra.gmra.mxu2 %v1942_v52  ;;  %v11965_v48 = vld [vmem:[#allocation5 + $0x16f0] sm:$0xff]  ;;  %v11964_v52 = vld [vmem:[#allocation5 + $0x16e8] sm:$0xff] }
 0x2c1   :  { %7778 = vmatpush.bf16.msrb.mxu2 %v11926_v49  ;;  %7747 = vmatmul.bf16.vlgmr.msra.gmra.mxu3 %v1943_v54  ;;  %v11940_v49 = vld [vmem:[#allocation5 + $0x1628] sm:$0xff]  ;;  %v11973_v35 = vld [vmem:[#allocation5 + $0x1730] sm:$0xff] }
 0x2c2   :  { %7791 = vmatpush.bf16.msrb.mxu3 %v11934_v50  ;;  %v11948_v50 = vld [vmem:[#allocation5 + $0x1668] sm:$0xff] }
 0x2c3   :  { %7753 = vmatpush.bf16.msrb.mxu0 %v11909_v55  ;;  %v7527_v11 = vpop.f32.mrf.mxu2  ;;  %v7503_v14 = vpop.f32.mrf.mxu0  ;;  %v11939_v55 = vld [vmem:[#allocation5 + $0x1620] sm:$0xff] }
 0x2c4   :  { %7766 = vmatpush.bf16.msrb.mxu1 %v11917_v56  ;;  %v7528_v12 = vadd.f32 %v7527_v11, %v7515_v6  ;;  %v7540_v13 = vpop.f32.mrf.mxu3  ;;  %v7516_v18 = vpop.f32.mrf.mxu1  ;;  %v11947_v56 = vld [vmem:[#allocation5 + $0x1660] sm:$0xff]  ;;  %v11937_v6 = vld [vmem:[#allocation5 + $0x1610] sm:$0xff]  ;;  %v11936_v11 = vld [vmem:[#allocation5 + $0x1608] sm:$0xff] }
 0x2c5   :  { %7779 = vmatpush.bf16.msrb.mxu2 %v11925_v57  ;;  %v11960_v14 = vld [vmem:[#allocation5 + $0x16c8] sm:$0xff] }
 0x2c6   :  { %7792 = vmatpush.bf16.msrb.mxu3 %v11933_v58  ;;  %v12349_v15 = vadd.f32 %v7540_v13, %v7528_v12  ;;  %v11955_v58 = vld [vmem:[#allocation5 + $0x16a0] sm:$0xff]  ;;  %v11944_v12 = vld [vmem:[#allocation5 + $0x1648] sm:$0xff] }
 0x2c7   :  { %7754 = vmatpush.bf16.msrb.mxu0 %v11908_v59  ;;  %v11963_v59 = vld [vmem:[#allocation5 + $0x16e0] sm:$0xff]  ;;  %v11952_v13 = vld [vmem:[#allocation5 + $0x1688] sm:$0xff] }
 0x2c8   :  { %7767 = vmatpush.bf16.msrb.mxu1 %v11916_v60 }
 0x2c9   :  { %7780 = vmatpush.bf16.msrb.mxu2 %v11924_v61  ;;  %v11938_v61 = vld [vmem:[#allocation5 + $0x1618] sm:$0xff] }
 0x2ca   :  { %7793 = vmatpush.bf16.msrb.mxu3 %v11932_v62  ;;  %v11946_v62 = vld [vmem:[#allocation5 + $0x1658] sm:$0xff] }
 0x2cb   :  { %7755 = vmatpush.bf16.msrb.mxu0 %v11907_v1  ;;  %v7529_v27 = vpop.f32.mrf.mxu2 }
 0x2cc   :  { %7768 = vmatpush.bf16.msrb.mxu1 %v11915_v2  ;;  %v7542_v28 = vpop.f32.mrf.mxu3  ;;  %v11974_v27 = vld [vmem:[#allocation5 + $0x1738] sm:$0xff] }
 0x2cd   :  { %7781 = vmatpush.bf16.msrb.mxu2 %v11923_v4  ;;  %v11982_v28 = vld [vmem:[#allocation5 + $0x1778] sm:$0xff] }
 0x2ce   :  { %7794 = vmatpush.bf16.msrb.mxu3 %v11931_v5 }
 0x2cf   :  { %7756 = vmatpush.bf16.msrb.mxu0 %v11906_v7  ;;  %v11945_v7 = vld [vmem:[#allocation5 + $0x1650] sm:$0xff] }
 0x2d0   :  { %7769 = vmatpush.bf16.msrb.mxu1 %v11914_v8 }
 0x2d1   :  { %7782 = vmatpush.bf16.msrb.mxu2 %v11922_v9  ;;  %v11953_v9 = vld [vmem:[#allocation5 + $0x1690] sm:$0xff] }
 0x2d2   :  { %7795 = vmatpush.bf16.msrb.mxu3 %v11930_v10  ;;  %v11961_v10 = vld [vmem:[#allocation5 + $0x16d0] sm:$0xff] }
 0x2d3   :  { %7757 = vmatpush.bf16.msrb.mxu0 %v11905_v16  ;;  %v173_v16 = vld [vmem:[#allocation2 + $0x168] sm:$0xff] }
 0x2d4   :  { %7770 = vmatpush.bf16.msrb.mxu1 %v11913_v17  ;;  %v1855_v26 = vunpack.c.h.b16 %v173_v16 }
 0x2d5   :  { %7783 = vmatpush.bf16.msrb.mxu2 %v11921_v19  ;;  %v11935_v19 = vld [vmem:[#allocation5 + $0x1600] sm:$0xff] }
 0x2d6   :  { %7796 = vmatpush.bf16.msrb.mxu3 %v11929_v20  ;;  %v11943_v20 = vld [vmem:[#allocation5 + $0x1640] sm:$0xff] }
 0x2d7   :  { %7758 = vmatpush.bf16.msrb.mxu0 %v11904_v21 }
 0x2d8   :  { %7771 = vmatpush.bf16.msrb.mxu1 %v11912_v22  ;;  %v1854_v22 = vunpack.c.l.b16 %v173_v16  ;;  %v11991_v16 = vld [vmem:[#allocation5 + $0x17c0] sm:$0xff] }
 0x2d9   :  { %7784 = vmatpush.bf16.msrb.mxu2 %v11920_v23  ;;  %v11951_v23 = vld [vmem:[#allocation5 + $0x1680] sm:$0xff] }
 0x2da   :  { %7797 = vmatpush.bf16.msrb.mxu3 %v11928_v24  ;;  %v11959_v24 = vld [vmem:[#allocation5 + $0x16c0] sm:$0xff]  ;;  %v1950_v32 = vpack.c.b16 %v1854_v22, %v1854_v22 }
 0x2db   :  { %7759 = vmatpush.bf16.msrb.mxu0 %v11903_v29  ;;  %v7553_v53 = vpop.f32.mrf.mxu0  ;;  %v11990_v29 = vld [vmem:[#allocation5 + $0x17b8] sm:$0xff] }
 0x2dc   :  { %7772 = vmatpush.bf16.msrb.mxu1 %v11911_v30  ;;  %v7554_v54 = vadd.f32 %v7553_v53, %v12349_v15  ;;  %v7566_v57 = vpop.f32.mrf.mxu1  ;;  %v172_v15 = vld [vmem:[#allocation2 + $0x160] sm:$0xff]  ;;  %v11998_v30 = vld [vmem:[#allocation5 + $0x17f8] sm:$0xff] }
 0x2dd   :  { %7785 = vmatpush.bf16.msrb.mxu2 %v11919_v33  ;;  %v1852_v21 = vunpack.c.l.b16 %v172_v15  ;;  %v1853_v25 = vunpack.c.h.b16 %v172_v15  ;;  %v11986_v53 = vld [vmem:[#allocation5 + $0x1798] sm:$0xff]  ;;  %v11983_v15 = vld [vmem:[#allocation5 + $0x1780] sm:$0xff] }
 0x2de   :  { %7798 = vmatpush.bf16.msrb.mxu3 %v11927_v34  ;;  %7760 = vmatmul.bf16.vlgmr.msrb.gmra.mxu0 %v1944_v41  ;;  %v7567_v60 = vadd.f32 %v7566_v57, %v7554_v54  ;;  %v1951_v34 = vpack.c.b16 %v1855_v26, %v1855_v26  ;;  %v11988_v41 = vld [vmem:[#allocation5 + $0x17a8] sm:$0xff]  ;;  %v11994_v54 = vld [vmem:[#allocation5 + $0x17d8] sm:$0xff] }
 0x2df   :  { %7804 = vmatpush.bf16.msra.mxu0 %v11942_v37  ;;  %7773 = vmatmul.bf16.vlgmr.msrb.gmra.mxu1 %v1945_v43  ;;  %v1948_v31 = vpack.c.b16 %v1852_v21, %v1852_v21  ;;  %v1949_v33 = vpack.c.b16 %v1853_v25, %v1853_v25  ;;  %v11989_v37 = vld [vmem:[#allocation5 + $0x17b0] sm:$0xff] }
 0x2e0   :  { %7817 = vmatpush.bf16.msra.mxu1 %v11950_v38  ;;  %7786 = vmatmul.bf16.vlgmr.msrb.gmra.mxu2 %v1946_v42  ;;  %v11997_v38 = vld [vmem:[#allocation5 + $0x17f0] sm:$0xff]  ;;  %v11996_v42 = vld [vmem:[#allocation5 + $0x17e8] sm:$0xff] }
 0x2e1   :  { %7830 = vmatpush.bf16.msra.mxu2 %v11958_v39  ;;  %7799 = vmatmul.bf16.vlgmr.msrb.gmra.mxu3 %v1947_v44  ;;  %v11972_v39 = vld [vmem:[#allocation5 + $0x1728] sm:$0xff] }
 0x2e2   :  { %7843 = vmatpush.bf16.msra.mxu3 %v11966_v40  ;;  %v11980_v40 = vld [vmem:[#allocation5 + $0x1768] sm:$0xff] }
 0x2e3   :  { %7805 = vmatpush.bf16.msra.mxu0 %v11941_v45  ;;  %v7579_v1 = vpop.f32.mrf.mxu2  ;;  %v7555_v4 = vpop.f32.mrf.mxu0  ;;  %v11971_v45 = vld [vmem:[#allocation5 + $0x1720] sm:$0xff] }
 0x2e4   :  { %7818 = vmatpush.bf16.msra.mxu1 %v11949_v46  ;;  %v7580_v2 = vadd.f32 %v7579_v1, %v7567_v60  ;;  %v7592_v3 = vpop.f32.mrf.mxu3  ;;  %v7568_v8 = vpop.f32.mrf.mxu1  ;;  %v11979_v46 = vld [vmem:[#allocation5 + $0x1760] sm:$0xff]  ;;  %v11969_v60 = vld [vmem:[#allocation5 + $0x1710] sm:$0xff]  ;;  %v11968_v1 = vld [vmem:[#allocation5 + $0x1708] sm:$0xff] }
 0x2e5   :  { %7831 = vmatpush.bf16.msra.mxu2 %v11957_v47  ;;  %v11984_v4 = vld [vmem:[#allocation5 + $0x1788] sm:$0xff] }
 0x2e6   :  { %7844 = vmatpush.bf16.msra.mxu3 %v11965_v48  ;;  %v12352_v5 = vadd.f32 %v7592_v3, %v7580_v2  ;;  %v11987_v48 = vld [vmem:[#allocation5 + $0x17a0] sm:$0xff]  ;;  %v11976_v2 = vld [vmem:[#allocation5 + $0x1748] sm:$0xff]  ;;  %v174_v3 = vld [vmem:[#allocation2 + $0x170] sm:$0xff] }
 0x2e7   :  { %7806 = vmatpush.bf16.msra.mxu0 %v11940_v49  ;;  %v11995_v49 = vld [vmem:[#allocation5 + $0x17e0] sm:$0xff] }
 0x2e8   :  { %7819 = vmatpush.bf16.msra.mxu1 %v11948_v50 }
 0x2e9   :  { %7832 = vmatpush.bf16.msra.mxu2 %v11956_v51  ;;  %v11970_v51 = vld [vmem:[#allocation5 + $0x1718] sm:$0xff] }
 0x2ea   :  { %7845 = vmatpush.bf16.msra.mxu3 %v11964_v52  ;;  %v11978_v52 = vld [vmem:[#allocation5 + $0x1758] sm:$0xff] }
 0x2eb   :  { %7807 = vmatpush.bf16.msra.mxu0 %v11939_v55  ;;  %v7581_v17 = vpop.f32.mrf.mxu2 }
 0x2ec   :  { %7820 = vmatpush.bf16.msra.mxu1 %v11947_v56  ;;  %v7594_v18 = vpop.f32.mrf.mxu3 }
 0x2ed   :  { %7833 = vmatpush.bf16.msra.mxu2 %v11955_v58 }
 0x2ee   :  { %7846 = vmatpush.bf16.msra.mxu3 %v11963_v59 }
 0x2ef   :  { %7808 = vmatpush.bf16.msra.mxu0 %v11938_v61  ;;  %v11977_v61 = vld [vmem:[#allocation5 + $0x1750] sm:$0xff] }
 0x2f0   :  { %7821 = vmatpush.bf16.msra.mxu1 %v11946_v62 }
 0x2f1   :  { %7834 = vmatpush.bf16.msra.mxu2 %v11954_v63  ;;  %v11985_v63 = vld [vmem:[#allocation5 + $0x1790] sm:$0xff] }
 0x2f2   :  { %7847 = vmatpush.bf16.msra.mxu3 %v11962_v0  ;;  %v11993_v0 = vld [vmem:[#allocation5 + $0x17d0] sm:$0xff] }
 0x2f3   :  { %7809 = vmatpush.bf16.msra.mxu0 %v11937_v6  ;;  %v175_v6 = vld [vmem:[#allocation2 + $0x178] sm:$0xff] }
 0x2f4   :  { %7822 = vmatpush.bf16.msra.mxu1 %v11945_v7 }
 0x2f5   :  { %7835 = vmatpush.bf16.msra.mxu2 %v11953_v9  ;;  %v1856_v9 = vunpack.c.l.b16 %v174_v3 }
 0x2f6   :  { %7848 = vmatpush.bf16.msra.mxu3 %v11961_v10  ;;  %v1857_v10 = vunpack.c.h.b16 %v174_v3 }
 0x2f7   :  { %7810 = vmatpush.bf16.msra.mxu0 %v11936_v11  ;;  %v11967_v11 = vld [vmem:[#allocation5 + $0x1700] sm:$0xff]  ;;  %v1952_v17 = vpack.c.b16 %v1856_v9, %v1856_v9  ;;  %v12013_v9 = vld [vmem:[#allocation11 + $0x30] sm:$0xff] }
 0x2f8   :  { %7823 = vmatpush.bf16.msra.mxu1 %v11944_v12  ;;  %v11975_v12 = vld [vmem:[#allocation5 + $0x1740] sm:$0xff]  ;;  %v1953_v18 = vpack.c.b16 %v1857_v10, %v1857_v10 }
 0x2f9   :  { %7836 = vmatpush.bf16.msra.mxu2 %v11952_v13  ;;  %v1858_v13 = vunpack.c.l.b16 %v175_v6 }
 0x2fa   :  { %7849 = vmatpush.bf16.msra.mxu3 %v11960_v14  ;;  %v1859_v14 = vunpack.c.h.b16 %v175_v6  ;;  %v12014_v6 = vld [vmem:[#allocation11 + $0x38] sm:$0xff] }
 0x2fb   :  { %7811 = vmatpush.bf16.msra.mxu0 %v11935_v19  ;;  %v7605_v43 = vpop.f32.mrf.mxu0  ;;  %v1954_v19 = vpack.c.b16 %v1858_v13, %v1858_v13 }
 0x2fc   :  { %7824 = vmatpush.bf16.msra.mxu1 %v11943_v20  ;;  %v7606_v44 = vadd.f32 %v7605_v43, %v12352_v5  ;;  %v7618_v47 = vpop.f32.mrf.mxu1  ;;  %v11992_v5 = vld [vmem:[#allocation5 + $0x17c8] sm:$0xff]  ;;  %v1955_v20 = vpack.c.b16 %v1859_v14, %v1859_v14 }
 0x2fd   :  { %7837 = vmatpush.bf16.msra.mxu2 %v11951_v23  ;;  %v12011_v14 = vld [vmem:[#allocation11 + $0x20] sm:$0xff] }
 0x2fe   :  { %7850 = vmatpush.bf16.msra.mxu3 %v11959_v24  ;;  %7812 = vmatmul.bf16.vlgmr.msra.gmra.mxu0 %v1948_v31  ;;  %v7619_v50 = vadd.f32 %v7618_v47, %v7606_v44 }
 0x2ff   :  { %7856 = vmatpush.bf16.msrb.mxu0 %v11974_v27  ;;  %7825 = vmatmul.bf16.vlgmr.msra.gmra.mxu1 %v1949_v33 }
 0x300   :  { %7869 = vmatpush.bf16.msrb.mxu1 %v11982_v28  ;;  %7838 = vmatmul.bf16.vlgmr.msra.gmra.mxu2 %v1950_v32 }
 0x301   :  { %7882 = vmatpush.bf16.msrb.mxu2 %v11990_v29  ;;  %7851 = vmatmul.bf16.vlgmr.msra.gmra.mxu3 %v1951_v34 }
 0x302   :  { %7895 = vmatpush.bf16.msrb.mxu3 %v11998_v30 }
 0x303   :  { %7857 = vmatpush.bf16.msrb.mxu0 %v11973_v35  ;;  %v7631_v55 = vpop.f32.mrf.mxu2  ;;  %v7607_v58 = vpop.f32.mrf.mxu0 }
 0x304   :  { %7870 = vmatpush.bf16.msrb.mxu1 %v11981_v36  ;;  %v7632_v56 = vadd.f32 %v7631_v55, %v7619_v50  ;;  %v7644_v57 = vpop.f32.mrf.mxu3  ;;  %v7620_v62 = vpop.f32.mrf.mxu1 }
 0x305   :  { %7883 = vmatpush.bf16.msrb.mxu2 %v11989_v37 }
 0x306   :  { %7896 = vmatpush.bf16.msrb.mxu3 %v11997_v38  ;;  %v7645_v59 = vadd.f32 %v7644_v57, %v7632_v56  ;;  %v12003_v56 = vld [vmem:[#allocation8 + $0x20] sm:$0xff]  ;;  %v12002_v57 = vld [vmem:[#allocation8 + $0x18] sm:$0xff] }
 0x307   :  { %7858 = vmatpush.bf16.msrb.mxu0 %v11972_v39 }
 0x308   :  { %7871 = vmatpush.bf16.msrb.mxu1 %v11980_v40 }
 0x309   :  { %7884 = vmatpush.bf16.msrb.mxu2 %v11988_v41 }
 0x30a   :  { %7897 = vmatpush.bf16.msrb.mxu3 %v11996_v42 }
 0x30b   :  { %7859 = vmatpush.bf16.msrb.mxu0 %v11971_v45  ;;  %v7633_v7 = vpop.f32.mrf.mxu2 }
 0x30c   :  { %7872 = vmatpush.bf16.msrb.mxu1 %v11979_v46  ;;  %v7646_v8 = vpop.f32.mrf.mxu3 }
 0x30d   :  { %7885 = vmatpush.bf16.msrb.mxu2 %v11987_v48 }
 0x30e   :  { %7898 = vmatpush.bf16.msrb.mxu3 %v11995_v49  ;;  %v12006_v49 = vld [vmem:[#allocation8 + $0x38] sm:$0xff] }
 0x30f   :  { %7860 = vmatpush.bf16.msrb.mxu0 %v11970_v51 }
 0x310   :  { %7873 = vmatpush.bf16.msrb.mxu1 %v11978_v52  ;;  %v12005_v52 = vld [vmem:[#allocation8 + $0x30] sm:$0xff] }
 0x311   :  { %7886 = vmatpush.bf16.msrb.mxu2 %v11986_v53  ;;  %v12004_v53 = vld [vmem:[#allocation8 + $0x28] sm:$0xff] }
 0x312   :  { %7899 = vmatpush.bf16.msrb.mxu3 %v11994_v54 }
 0x313   :  { %7861 = vmatpush.bf16.msrb.mxu0 %v11969_v60 }
 0x314   :  { %7874 = vmatpush.bf16.msrb.mxu1 %v11977_v61  ;;  %v12000_v61 = vld [vmem:[#allocation8 + $0x8] sm:$0xff] }
 0x315   :  { %7887 = vmatpush.bf16.msrb.mxu2 %v11985_v63 }
 0x316   :  { %7900 = vmatpush.bf16.msrb.mxu3 %v11993_v0 }
 0x317   :  { %7862 = vmatpush.bf16.msrb.mxu0 %v11968_v1 }
 0x318   :  { %7875 = vmatpush.bf16.msrb.mxu1 %v11976_v2  ;;  %v11999_v2 = vld [vmem:[#allocation8] sm:$0xff] }
 0x319   :  { %7888 = vmatpush.bf16.msrb.mxu2 %v11984_v4 }
 0x31a   :  { %7901 = vmatpush.bf16.msrb.mxu3 %v11992_v5 }
 0x31b   :  { %7863 = vmatpush.bf16.msrb.mxu0 %v11967_v11  ;;  %v7657_v21 = vpop.f32.mrf.mxu0 }
 0x31c   :  { %7876 = vmatpush.bf16.msrb.mxu1 %v11975_v12  ;;  %v7658_v22 = vadd.f32 %v7657_v21, %v7645_v59  ;;  %v7670_v23 = vpop.f32.mrf.mxu1  ;;  %v12001_v59 = vld [vmem:[#allocation8 + $0x10] sm:$0xff] }
 0x31d   :  { %7889 = vmatpush.bf16.msrb.mxu2 %v11983_v15  ;;  %v12012_v12 = vld [vmem:[#allocation11 + $0x28] sm:$0xff]  ;;  %v12009_v21 = vld [vmem:[#allocation11 + $0x10] sm:$0xff] }
 0x31e   :  { %7902 = vmatpush.bf16.msrb.mxu3 %v11991_v16  ;;  %7864 = vmatmul.bf16.vlgmr.msrb.gmra.mxu0 %v1952_v17  ;;  %v7671_v24 = vadd.f32 %v7670_v23, %v7658_v22  ;;  %v12010_v16 = vld [vmem:[#allocation11 + $0x18] sm:$0xff] }
 0x31f   :  { %7877 = vmatmul.bf16.vlgmr.msrb.gmra.mxu1 %v1953_v18  ;;  %7978 = vmatpush.bf16.msra.mxu0 %v12006_v49 }
 0x320   :  { %7890 = vmatmul.bf16.vlgmr.msrb.gmra.mxu2 %v1954_v19  ;;  %8061 = vmatpush.bf16.msra.mxu1 %v12014_v6 }
 0x321   :  { %7903 = vmatmul.bf16.vlgmr.msrb.gmra.mxu3 %v1955_v20 }
 0x323   :  { %v7683_v25 = vpop.f32.mrf.mxu2  ;;  %v7659_v28 = vpop.f32.mrf.mxu0  ;;  %7979 = vmatpush.bf16.msra.mxu0 %v12005_v52 }
 0x324   :  { %v7684_v26 = vadd.f32 %v7683_v25, %v7671_v24  ;;  %v7696_v27 = vpop.f32.mrf.mxu3  ;;  %v7672_v30 = vpop.f32.mrf.mxu1  ;;  %8062 = vmatpush.bf16.msra.mxu1 %v12013_v9 }
 0x326   :  { %v7697_v29 = vadd.f32 %v7696_v27, %v7684_v26 }
 0x327   :  { %7980 = vmatpush.bf16.msra.mxu0 %v12004_v53 }
 0x328   :  { %8063 = vmatpush.bf16.msra.mxu1 %v12012_v12 }
 0x32b   :  { %v7685_v31 = vpop.f32.mrf.mxu2  ;;  %7981 = vmatpush.bf16.msra.mxu0 %v12003_v56 }
 0x32c   :  { %v7698_v32 = vpop.f32.mrf.mxu3  ;;  %8064 = vmatpush.bf16.msra.mxu1 %v12011_v14 }
 0x32f   :  { %7982 = vmatpush.bf16.msra.mxu0 %v12002_v57 }
 0x330   :  { %8065 = vmatpush.bf16.msra.mxu1 %v12010_v16 }
 0x333   :  { %7983 = vmatpush.bf16.msra.mxu0 %v12001_v59 }
 0x334   :  { %8066 = vmatpush.bf16.msra.mxu1 %v12009_v21 }
 0x337   :  { %7984 = vmatpush.bf16.msra.mxu0 %v12000_v61 }
 0x33b   :  { %v7709_v33 = vpop.f32.mrf.mxu0  ;;  %7985 = vmatpush.bf16.msra.mxu0 %v11999_v2 }
 0x33c   :  { %v7710_v34 = vadd.f32 %v7709_v33, %v7697_v29  ;;  %v7722_v35 = vpop.f32.mrf.mxu1  ;;  %v12008_v33 = vld [vmem:[#allocation11 + $0x8] sm:$0xff] }
 0x33d   :  { %8067 = vmatpush.bf16.msra.mxu1 %v12008_v33 }
 0x33e   :  { %v7723_v36 = vadd.f32 %v7722_v35, %v7710_v34  ;;  %v12007_v34 = vld [vmem:[#allocation11] sm:$0xff]  ;;  %v12026_v35 = vld [vmem:[#allocation10] ss:$0 sm:$0xff] }
 0x341   :  { %8068 = vmatpush.bf16.msra.mxu1 %v12007_v34 }
 0x343   :  { %v7735_v37 = vpop.f32.mrf.mxu2  ;;  %v7711_v40 = vpop.f32.mrf.mxu0 }
 0x344   :  { %v7736_v38 = vadd.f32 %v7735_v37, %v7723_v36  ;;  %v7748_v39 = vpop.f32.mrf.mxu3  ;;  %v7724_v42 = vpop.f32.mrf.mxu1 }
 0x346   :  { %v7749_v41 = vadd.f32 %v7748_v39, %v7736_v38 }
 0x34b   :  { %v7737_v43 = vpop.f32.mrf.mxu2 }
 0x34c   :  { %v7750_v44 = vpop.f32.mrf.mxu3 }
 0x35b   :  { %v7761_v45 = vpop.f32.mrf.mxu0 }
 0x35c   :  { %v7774_v46 = vpop.f32.mrf.mxu1  ;;  %v7762_v63 = vadd.f32 %v7761_v45, %v7749_v41  ;;  %v12027_v41 = vld [vmem:[#allocation13] ss:$0 sm:$0xff] }
 0x35e   :  { %v7775_v4 = vadd.f32 %v7774_v46, %v7762_v63 }
 0x363   :  { %v7787_v47 = vpop.f32.mrf.mxu2  ;;  %v7763_v50 = vpop.f32.mrf.mxu0 }
 0x364   :  { %v7800_v48 = vpop.f32.mrf.mxu3  ;;  %v7776_v51 = vpop.f32.mrf.mxu1  ;;  %v7788_v5 = vadd.f32 %v7787_v47, %v7775_v4 }
 0x366   :  { %v7801_v10 = vadd.f32 %v7800_v48, %v7788_v5 }
 0x36b   :  { %v7789_v54 = vpop.f32.mrf.mxu2 }
 0x36c   :  { %v7802_v55 = vpop.f32.mrf.mxu3 }
 0x37b   :  { %v7813_v58 = vpop.f32.mrf.mxu0 }
 0x37c   :  { %v7826_v60 = vpop.f32.mrf.mxu1  ;;  %v7814_v11 = vadd.f32 %v7813_v58, %v7801_v10 }
 0x37e   :  { %v7827_v13 = vadd.f32 %v7826_v60, %v7814_v11 }
 0x383   :  { %v7839_v62 = vpop.f32.mrf.mxu2  ;;  %v7815_v1 = vpop.f32.mrf.mxu0 }
 0x384   :  { %v7852_v0 = vpop.f32.mrf.mxu3  ;;  %v7828_v3 = vpop.f32.mrf.mxu1  ;;  %v7840_v15 = vadd.f32 %v7839_v62, %v7827_v13 }
 0x386   :  { %v7853_v17 = vadd.f32 %v7852_v0, %v7840_v15 }
 0x38b   :  { %v7841_v7 = vpop.f32.mrf.mxu2 }
 0x38c   :  { %v7854_v8 = vpop.f32.mrf.mxu3 }
 0x39b   :  { %v7865_v18 = vpop.f32.mrf.mxu0 }
 0x39c   :  { %v7878_v19 = vpop.f32.mrf.mxu1  ;;  %v7866_v20 = vadd.f32 %v7865_v18, %v7853_v17 }
 0x39e   :  { %v7879_v22 = vadd.f32 %v7878_v19, %v7866_v20 }
 0x3a3   :  { %v7891_v23 = vpop.f32.mrf.mxu2  ;;  %v7867_v26 = vpop.f32.mrf.mxu0 }
 0x3a4   :  { %v7904_v24 = vpop.f32.mrf.mxu3  ;;  %v7892_v25 = vadd.f32 %v7891_v23, %v7879_v22  ;;  %v7880_v27 = vpop.f32.mrf.mxu1 }
 0x3a6   :  { %v7905_v28 = vadd.f32 %v7904_v24, %v7892_v25 }
 0x3a8   :  { %v7908_v29 = vmax.f32 %v7905_v28, 0.0 }
 0x3aa   :  { %v7909_v30 = vpack.c.bf16 %v7908_v29, %v7908_v29 }
 0x3ab   :  { %v7893_v31 = vpop.f32.mrf.mxu2 }
 0x3ac   :  { %v7906_v32 = vpop.f32.mrf.mxu3  ;;  %7986 = vmatmul.bf16.vlgmr.msra.gmra.mxu0 %v7909_v30 }
 0x429   :  { %v7987_v36 = vpop.f32.mrf.mxu0 }
 0x42a   :  { %v7988_v37 = vadd.f32 %v12026_v35, %v7987_v36 }
 0x42c   :  { %v7991_v38 = vmax.f32 %v7988_v37, 0.0 }
 0x42e   :  { %v7992_v39 = vpack.c.bf16 %v7991_v38, %v7991_v38 }
 0x430   :  { %8069 = vmatmul.bf16.vlgmr.msra.gmra.mxu1 %v7992_v39 }
 0x431   :  { %v7989_v40 = vpop.f32.mrf.mxu0 }
 0x4ad   :  { %v8070_v42 = vpop.f32.mrf.mxu1 }
 0x4ae   :  { %v8071_v43 = vadd.f32 %v12027_v41, %v8070_v42 }
 0x4b0   :  { %8074 = vst [vmem:[#allocation14] sm:$0xff] %v8071_v43 }
 0x4b1   :  { %8085 = dma.vmem_to_hbm [thread:$0]  %s8081_s6, 128, %s8083_s12, [#allocation4]  }
 0x4b5   :  { %v8072_v44 = vpop.f32.mrf.mxu1 }
 0x4b6   :  { %12228 = dma.done.wait [#allocation4], 128  }
 0x4b7   :  { %12229 = vsyncadd [#allocation4], 4294967168 }
 0x4b8   :  { %8090 = vsyncpa [#allocation3], 1 }
 0x4b9   :  { %8091 = vsyncpa [#allocation6], 1 }
 0x4ba   :  { %8092 = vsyncpa [#allocation9], 1 }
 0x4bb   :  { %8093 = vsyncpa [#allocation12], 1 }
 0x4bc   :  { %8094 = vsyncpa [#allocation4], 1 }

</bundles_post_ra>
